<compile_context>
chip_gen: v6e
topology: v6e:2x2x1
jax: 0.10.0
libtpu: 0.0.40
codegen_flags: <defaults>
</compile_context>

<pallas_src>
import numpy as np

import jax
import jax.numpy as jnp
from jax.experimental import pallas as pl
from jax.experimental.pallas import tpu as pltpu


# ---------------------------------------------------------------------------
# One-time host-side weight packing.
#
# Column conventions (all layers, "channel-major along lanes"):
#   activation row  = n*H + h                (zero pad rows inserted per batch)
#   activation col  = c*W + w
#   packed-M row    = ki*(Cin*Win) + c*Win + wi
#   packed-M col    = o*Wo + xo
# so   Y = patches(X) @ M (+ bias row)   is exactly the conv, with the W-axis
# taps / stride / zero padding realised as placed / zero blocks inside M, and
# the H-axis handled in-kernel.
# ---------------------------------------------------------------------------
def _pack_conv_weight(w_oihw, h_in, w_in, stride, pad):
    w = np.asarray(w_oihw, np.float32)
    cout, cin, kh, kw = w.shape
    ho = (h_in + 2 * pad - kh) // stride + 1
    wo = (w_in + 2 * pad - kw) // stride + 1
    m = np.zeros((kh, cin * w_in, cout * wo), np.float32)
    for ki in range(kh):
        for xo in range(wo):
            for kj in range(kw):
                wi = stride * xo + kj - pad
                if 0 <= wi < w_in:
                    # rows c*w_in + wi (all c), cols o*wo + xo (all o)
                    m[ki, wi::w_in, xo::wo] = w[:, :, ki, kj].T
    return m.reshape(kh * cin * w_in, cout * wo), (ho, wo, cout)


def pack_encoder_params(params, in_h, in_w):
    """Pack all encoder weights once.  Returns (array list, static meta)."""
    arrays = []
    layers = []

    def add(w, b, hin, win, stride, pad, relu_in, relu_out, res_save, res_add):
        w = np.asarray(w, np.float32)
        cout, cin, kh, kw = w.shape
        m, (ho, wo, _) = _pack_conv_weight(w, hin, win, stride, pad)
        arrays.append(jnp.asarray(m))
        has_bias = b is not None
        if has_bias:
            brow = np.repeat(np.asarray(b, np.float32), wo).reshape(1, cout * wo)
            arrays.append(jnp.asarray(brow))
        layers.append(dict(
            kh=int(kh), kw=int(kw), stride=stride, pad=pad,
            hin=hin, win=win, cin=int(cin),
            ho=ho, wo=wo, cout=int(cout),
            hp=hin + 2 * pad, has_bias=has_bias,
            relu_in=relu_in, relu_out=relu_out,
            res_save=res_save, res_add=res_add,
            direct=(kh == 1 and kw == 1 and stride == 1 and pad == 0),
        ))
        return ho, wo, cout

    h, w = in_h, in_w
    h, w, _ = add(params["conv1_w"], params["conv1_b"], h, w, 2, 1,
                  False, True, False, False)           # conv1 + ReLU
    h, w, _ = add(params["conv2_w"], params["conv2_b"], h, w, 2, 1,
                  False, True, False, False)           # conv2 + ReLU
    h, w, _ = add(params["conv3_w"], params["conv3_b"], h, w, 1, 1,
                  False, False, False, False)          # conv3
    for (w1, w2) in params["res"]:
        # Residual block: save x, relu -> 3x3 conv -> relu -> 1x1 conv -> +x
        h, w, _ = add(w1, None, h, w, 1, 1, True, True, True, False)
        h, w, _ = add(w2, None, h, w, 1, 0, False, False, False, True)

    meta = dict(layers=tuple(layers), n_weights=len(arrays), final_relu=True)
    return arrays, meta


# ---------------------------------------------------------------------------
# Fused encoder kernel: the whole network runs in a single grid step.
# ---------------------------------------------------------------------------
def _make_encoder_kernel(layers, n_batch, in_c, in_h, in_w, n_weights,
                         final_relu):
    def kernel(*refs):
        x_ref = refs[0]
        w_refs = refs[1:1 + n_weights]
        o_ref = refs[1 + n_weights]
        scratch = refs[2 + n_weights:]

        wi = 0          # weight-ref cursor
        si = 0          # scratch-ref cursor
        y = None        # live activation value, shape (N*H, Cout*W)
        res = None      # saved residual input

        for li, L in enumerate(layers):
            m_ref = w_refs[wi]; wi += 1
            b_ref = None
            if L["has_bias"]:
                b_ref = w_refs[wi]; wi += 1

            if L["res_save"]:
                res = y                     # residual taken before leading relu
            if L["relu_in"]:
                y = jnp.maximum(y, 0.0)

            if L["direct"]:
                # 1x1, stride 1, no pad: the activation IS the patch matrix.
                s_mat = y
            else:
                xpad_ref = scratch[si]
                patch_ref = scratch[si + 1]
                si += 2
                hp, hin, ho = L["hp"], L["hin"], L["ho"]
                s, kh, pad = L["stride"], L["kh"], L["pad"]
                wc = L["cin"] * L["win"]

                # Zero-filled H padding rows (per batch element).
                xpad_ref[...] = jnp.zeros((n_batch * hp, wc), jnp.float32)

                # Interior rows.
                if li == 0:
                    # Consume NCHW directly: per-(n, c) slab stores build the
                    # channel-major (H, C*W) row layout -- no wrapper transpose
                    # and no in-kernel relayout.
                    for n in range(n_batch):
                        for c in range(in_c):
                            xpad_ref[pl.ds(n * hp + pad, in_h),
                                     pl.ds(c * in_w, in_w)] = x_ref[n, c]
                else:
                    for n in range(n_batch):
                        xpad_ref[pl.ds(n * hp + pad, hin), :] = (
                            y[n * hin:(n + 1) * hin, :])

                # im2col along H only: gather the kh taps with sublane-strided
                # reads (load/XLU slots, NOT the MXU) into one
                # (N*Ho, kh*Cin*Win) patch matrix.
                for n in range(n_batch):
                    for ki in range(kh):
                        if s == 1:
                            tap = xpad_ref[pl.ds(n * hp + ki, ho), :]
                        else:
                            tap = xpad_ref[pl.ds(n * hp + ki, ho, stride=s), :]
                        patch_ref[pl.ds(n * ho, ho), pl.ds(ki * wc, wc)] = tap
                s_mat = patch_ref[...]

            # ONE MXU matmul per conv layer (K = kh*Cin*Win, batch folded
            # into the rows).
            yn = jnp.dot(s_mat, m_ref[...], preferred_element_type=jnp.float32)
            if b_ref is not None:
                yn = yn + b_ref[...]        # (1, Cout*Wo) broadcast bias row
            if L["res_add"]:
                yn = yn + res               # fused residual add
            if L["relu_out"]:
                yn = jnp.maximum(yn, 0.0)
            y = yn

        if final_relu:
            y = jnp.maximum(y, 0.0)

        # Emit NCHW directly from the kernel (no XLA transpose afterwards):
        # with channel-major lanes, channel o of batch n is the contiguous
        # (Ho, Wo) block of y.
        Lf = layers[-1]
        ho, wo, cout = Lf["ho"], Lf["wo"], Lf["cout"]
        y = y.astype(o_ref.dtype)
        for n in range(n_batch):
            for o in range(cout):
                o_ref[n, o, :, :] = y[n * ho:(n + 1) * ho, o * wo:(o + 1) * wo]

    return kernel


def make_encoder_forward(meta):
    layers = meta["layers"]
    n_weights = meta["n_weights"]
    final_relu = meta["final_relu"]

    @jax.jit
    def forward(arrays, x_nchw):
        n, c, h, w = x_nchw.shape
        kernel = _make_encoder_kernel(layers, n, c, h, w, n_weights, final_relu)

        scratch_shapes = []
        for L in layers:
            if not L["direct"]:
                wc = L["cin"] * L["win"]
                scratch_shapes.append(
                    pltpu.VMEM((n * L["hp"], wc), jnp.float32))           # padded input
                scratch_shapes.append(
                    pltpu.VMEM((n * L["ho"], L["kh"] * wc), jnp.float32))  # patch matrix

        Lf = layers[-1]
        out_shape = jax.ShapeDtypeStruct((n, Lf["cout"], Lf["ho"], Lf["wo"]),
                                         x_nchw.dtype)

        in_specs = [pl.BlockSpec((n, c, h, w), lambda i: (0, 0, 0, 0))]
        for a in arrays:
            in_specs.append(
                pl.BlockSpec(a.shape, lambda i, nd=a.ndim: (0,) * nd))
        out_specs = pl.BlockSpec(out_shape.shape, lambda i: (0, 0, 0, 0))

        return pl.pallas_call(
            kernel,
            out_shape=out_shape,
            grid_spec=pltpu.PrefetchScalarGridSpec(
                num_scalar_prefetch=0,
                grid=(1,),            # whole net per step; batch folded into rows
                in_specs=in_specs,
                out_specs=out_specs,
                scratch_shapes=scratch_shapes,
            ),
            compiler_params=pltpu.CompilerParams(
                dimension_semantics=("arbitrary",),
                vmem_limit_bytes=32 * 1024 * 1024,
            ),
        )(x_nchw, *arrays)

    return forward


# ---------------------------------------------------------------------------
# Plain-JAX reference (correctness check only)
# ---------------------------------------------------------------------------
def encoder_forward_ref(params, x):
    def conv(x, w, b, stride, pad):
        y = jax.lax.conv_general_dilated(
            x, w, (stride, stride), ((pad, pad), (pad, pad)),
            dimension_numbers=("NCHW", "OIHW", "NCHW"),
            precision=jax.lax.Precision.HIGHEST)
        if b is not None:
            y = y + b[None, :, None, None]
        return y

    x = jax.nn.relu(conv(x, params["conv1_w"], params["conv1_b"], 2, 1))
    x = jax.nn.relu(conv(x, params["conv2_w"], params["conv2_b"], 2, 1))
    x = conv(x, params["conv3_w"], params["conv3_b"], 1, 1)
    for w1, w2 in params["res"]:
        h = jax.nn.relu(x)
        h = jax.nn.relu(conv(h, w1, None, 1, 1))
        h = conv(h, w2, None, 1, 0)
        x = x + h
    return jax.nn.relu(x)


# ---------------------------------------------------------------------------
# Deterministic parameter init (shapes mirror Encoder.__init__)
# ---------------------------------------------------------------------------
def init_params(key, in_channels, num_hiddens, num_residual_layers,
                num_residual_hiddens):
    n_keys = 6 + 2 * num_residual_layers
    keys = jax.random.split(key, n_keys)
    ki = iter(range(n_keys))

    def w_init(k, shape):
        fan_in = shape[1] * shape[2] * shape[3]
        return (jax.random.normal(k, shape, jnp.float32) /
                jnp.sqrt(jnp.float32(fan_in)))

    p = {}
    p["conv1_w"] = w_init(keys[next(ki)], (num_hiddens // 2, in_channels, 4, 4))
    p["conv1_b"] = 0.1 * jax.random.normal(keys[next(ki)], (num_hiddens // 2,),
                                           jnp.float32)
    p["conv2_w"] = w_init(keys[next(ki)], (num_hiddens, num_hiddens // 2, 4, 4))
    p["conv2_b"] = 0.1 * jax.random.normal(keys[next(ki)], (num_hiddens,),
                                           jnp.float32)
    p["conv3_w"] = w_init(keys[next(ki)], (num_hiddens, num_hiddens, 3, 3))
    p["conv3_b"] = 0.1 * jax.random.normal(keys[next(ki)], (num_hiddens,),
                                           jnp.float32)
    p["res"] = []
    for _ in range(num_residual_layers):
        w1 = w_init(keys[next(ki)], (num_residual_hiddens, num_hiddens, 3, 3))
        w2 = w_init(keys[next(ki)], (num_hiddens, num_residual_hiddens, 1, 1))
        p["res"].append((w1, w2))
    return p


# ---------------------------------------------------------------------------
if __name__ == "__main__":
    batch, in_channels, spatial = 2, 3, 16
    num_hiddens, num_residual_layers, num_residual_hiddens = 32, 2, 8

    key = jax.random.PRNGKey(0)
    k_params, k_input = jax.random.split(key)
    params = init_params(k_params, in_channels, num_hiddens,
                         num_residual_layers, num_residual_hiddens)
    x = jax.random.normal(k_input, (batch, in_channels, spatial, spatial),
                          jnp.float32)

    # One-time packing (hoisted out of the forward pass), then fused forward.
    arrays, meta = pack_encoder_params(params, spatial, spatial)
    forward = make_encoder_forward(meta)

    out = jax.block_until_ready(forward(arrays, x))
    ref = jax.block_until_ready(encoder_forward_ref(params, x))

    assert out.shape == (batch, num_hiddens, spatial // 4, spatial // 4), out.shape
    assert jnp.allclose(out, ref, rtol=1e-3, atol=1e-3), (
        float(jnp.max(jnp.abs(out - ref))))

    print("KERNEL_OK")
</pallas_src>

<mosaic_0001>
module attributes {stable_mosaic.version = 11 : i64} {
  func.func @kernel(%arg0: i32, %arg1: memref<2x3x16x16xf32, #tpu.memory_space<vmem>>, %arg2: memref<192x128xf32, #tpu.memory_space<vmem>>, %arg3: memref<1x128xf32, #tpu.memory_space<vmem>>, %arg4: memref<512x128xf32, #tpu.memory_space<vmem>>, %arg5: memref<1x128xf32, #tpu.memory_space<vmem>>, %arg6: memref<384x128xf32, #tpu.memory_space<vmem>>, %arg7: memref<1x128xf32, #tpu.memory_space<vmem>>, %arg8: memref<384x32xf32, #tpu.memory_space<vmem>>, %arg9: memref<32x128xf32, #tpu.memory_space<vmem>>, %arg10: memref<384x32xf32, #tpu.memory_space<vmem>>, %arg11: memref<32x128xf32, #tpu.memory_space<vmem>>, %arg12: memref<2x32x4x4xf32, #tpu.memory_space<vmem>>, %arg13: memref<36x48xf32, #tpu.memory_space<vmem>>, %arg14: memref<16x192xf32, #tpu.memory_space<vmem>>, %arg15: memref<20x128xf32, #tpu.memory_space<vmem>>, %arg16: memref<8x512xf32, #tpu.memory_space<vmem>>, %arg17: memref<12x128xf32, #tpu.memory_space<vmem>>, %arg18: memref<8x384xf32, #tpu.memory_space<vmem>>, %arg19: memref<12x128xf32, #tpu.memory_space<vmem>>, %arg20: memref<8x384xf32, #tpu.memory_space<vmem>>, %arg21: memref<12x128xf32, #tpu.memory_space<vmem>>, %arg22: memref<8x384xf32, #tpu.memory_space<vmem>>) attributes {dimension_semantics = [#tpu.dimension_semantics<arbitrary>], iteration_bounds = array<i64: 1>, scalar_prefetch = 0 : i64, scratch_operands = 10 : i64, tpu.core_type = #tpu.core_type<tc>, window_params = [{pipeline_mode = #tpu.pipeline_mode<synchronous>, transform_indices = @transform_0, window_bounds = array<i64: 2, 3, 16, 16>}, {pipeline_mode = #tpu.pipeline_mode<synchronous>, transform_indices = @transform_1, window_bounds = array<i64: 192, 128>}, {pipeline_mode = #tpu.pipeline_mode<synchronous>, transform_indices = @transform_2, window_bounds = array<i64: 1, 128>}, {pipeline_mode = #tpu.pipeline_mode<synchronous>, transform_indices = @transform_3, window_bounds = array<i64: 512, 128>}, {pipeline_mode = #tpu.pipeline_mode<synchronous>, transform_indices = @transform_4, window_bounds = array<i64: 1, 128>}, {pipeline_mode = #tpu.pipeline_mode<synchronous>, transform_indices = @transform_5, window_bounds = array<i64: 384, 128>}, {pipeline_mode = #tpu.pipeline_mode<synchronous>, transform_indices = @transform_6, window_bounds = array<i64: 1, 128>}, {pipeline_mode = #tpu.pipeline_mode<synchronous>, transform_indices = @transform_7, window_bounds = array<i64: 384, 32>}, {pipeline_mode = #tpu.pipeline_mode<synchronous>, transform_indices = @transform_8, window_bounds = array<i64: 32, 128>}, {pipeline_mode = #tpu.pipeline_mode<synchronous>, transform_indices = @transform_9, window_bounds = array<i64: 384, 32>}, {pipeline_mode = #tpu.pipeline_mode<synchronous>, transform_indices = @transform_10, window_bounds = array<i64: 32, 128>}, {pipeline_mode = #tpu.pipeline_mode<synchronous>, transform_indices = @transform_11, window_bounds = array<i64: 2, 32, 4, 4>}]} {
    %cst = arith.constant 0.000000e+00 : f32
    %0 = vector.broadcast %cst : f32 to vector<36x48xf32>
    %c0 = arith.constant 0 : index
    %c0_0 = arith.constant 0 : index
    %1 = vector.load %arg13[%c0, %c0_0] : memref<36x48xf32, #tpu.memory_space<vmem>>, vector<36x48xf32>
    tpu.vector_store %arg13[%c0, %c0_0], %0 {strides = array<i32>} : memref<36x48xf32, #tpu.memory_space<vmem>>, vector<36x48xf32>,
    %c0_1 = arith.constant 0 : index
    %c0_2 = arith.constant 0 : index
    %c0_3 = arith.constant 0 : index
    %c0_4 = arith.constant 0 : index
    %2 = vector.load %arg1[%c0_1, %c0_2, %c0_3, %c0_4] : memref<2x3x16x16xf32, #tpu.memory_space<vmem>>, vector<1x1x16x16xf32>
    %3 = vector.shape_cast %2 : vector<1x1x16x16xf32> to vector<16x16xf32>
    %c1 = arith.constant 1 : index
    %c0_5 = arith.constant 0 : index
    %4 = vector.load %arg13[%c1, %c0_5] : memref<36x48xf32, #tpu.memory_space<vmem>>, vector<16x16xf32>
    tpu.vector_store %arg13[%c1, %c0_5], %3 {strides = array<i32>} : memref<36x48xf32, #tpu.memory_space<vmem>>, vector<16x16xf32>,
    %c0_6 = arith.constant 0 : index
    %c1_7 = arith.constant 1 : index
    %c0_8 = arith.constant 0 : index
    %c0_9 = arith.constant 0 : index
    %5 = vector.load %arg1[%c0_6, %c1_7, %c0_8, %c0_9] : memref<2x3x16x16xf32, #tpu.memory_space<vmem>>, vector<1x1x16x16xf32>
    %6 = vector.shape_cast %5 : vector<1x1x16x16xf32> to vector<16x16xf32>
    %c1_10 = arith.constant 1 : index
    %c16 = arith.constant 16 : index
    %7 = vector.load %arg13[%c1_10, %c16] : memref<36x48xf32, #tpu.memory_space<vmem>>, vector<16x16xf32>
    tpu.vector_store %arg13[%c1_10, %c16], %6 {strides = array<i32>} : memref<36x48xf32, #tpu.memory_space<vmem>>, vector<16x16xf32>,
    %c0_11 = arith.constant 0 : index
    %c2 = arith.constant 2 : index
    %c0_12 = arith.constant 0 : index
    %c0_13 = arith.constant 0 : index
    %8 = vector.load %arg1[%c0_11, %c2, %c0_12, %c0_13] : memref<2x3x16x16xf32, #tpu.memory_space<vmem>>, vector<1x1x16x16xf32>
    %9 = vector.shape_cast %8 : vector<1x1x16x16xf32> to vector<16x16xf32>
    %c1_14 = arith.constant 1 : index
    %c32 = arith.constant 32 : index
    %10 = vector.load %arg13[%c1_14, %c32] : memref<36x48xf32, #tpu.memory_space<vmem>>, vector<16x16xf32>
    tpu.vector_store %arg13[%c1_14, %c32], %9 {strides = array<i32>} : memref<36x48xf32, #tpu.memory_space<vmem>>, vector<16x16xf32>,
    %c1_15 = arith.constant 1 : index
    %c0_16 = arith.constant 0 : index
    %c0_17 = arith.constant 0 : index
    %c0_18 = arith.constant 0 : index
    %11 = vector.load %arg1[%c1_15, %c0_16, %c0_17, %c0_18] : memref<2x3x16x16xf32, #tpu.memory_space<vmem>>, vector<1x1x16x16xf32>
    %12 = vector.shape_cast %11 : vector<1x1x16x16xf32> to vector<16x16xf32>
    %c19 = arith.constant 19 : index
    %c0_19 = arith.constant 0 : index
    %13 = vector.load %arg13[%c19, %c0_19] : memref<36x48xf32, #tpu.memory_space<vmem>>, vector<16x16xf32>
    tpu.vector_store %arg13[%c19, %c0_19], %12 {strides = array<i32>} : memref<36x48xf32, #tpu.memory_space<vmem>>, vector<16x16xf32>,
    %c1_20 = arith.constant 1 : index
    %c1_21 = arith.constant 1 : index
    %c0_22 = arith.constant 0 : index
    %c0_23 = arith.constant 0 : index
    %14 = vector.load %arg1[%c1_20, %c1_21, %c0_22, %c0_23] : memref<2x3x16x16xf32, #tpu.memory_space<vmem>>, vector<1x1x16x16xf32>
    %15 = vector.shape_cast %14 : vector<1x1x16x16xf32> to vector<16x16xf32>
    %c19_24 = arith.constant 19 : index
    %c16_25 = arith.constant 16 : index
    %16 = vector.load %arg13[%c19_24, %c16_25] : memref<36x48xf32, #tpu.memory_space<vmem>>, vector<16x16xf32>
    tpu.vector_store %arg13[%c19_24, %c16_25], %15 {strides = array<i32>} : memref<36x48xf32, #tpu.memory_space<vmem>>, vector<16x16xf32>,
    %c1_26 = arith.constant 1 : index
    %c2_27 = arith.constant 2 : index
    %c0_28 = arith.constant 0 : index
    %c0_29 = arith.constant 0 : index
    %17 = vector.load %arg1[%c1_26, %c2_27, %c0_28, %c0_29] : memref<2x3x16x16xf32, #tpu.memory_space<vmem>>, vector<1x1x16x16xf32>
    %18 = vector.shape_cast %17 : vector<1x1x16x16xf32> to vector<16x16xf32>
    %c19_30 = arith.constant 19 : index
    %c32_31 = arith.constant 32 : index
    %19 = vector.load %arg13[%c19_30, %c32_31] : memref<36x48xf32, #tpu.memory_space<vmem>>, vector<16x16xf32>
    tpu.vector_store %arg13[%c19_30, %c32_31], %18 {strides = array<i32>} : memref<36x48xf32, #tpu.memory_space<vmem>>, vector<16x16xf32>,
    %c0_32 = arith.constant 0 : index
    %c0_33 = arith.constant 0 : index
    %20 = tpu.strided_load %arg13[%c0_32, %c0_33] {strides = array<i32: 2, 1>} : memref<36x48xf32, #tpu.memory_space<vmem>>, vector<8x48xf32>
    %c0_34 = arith.constant 0 : index
    %c0_35 = arith.constant 0 : index
    %21 = vector.load %arg14[%c0_34, %c0_35] : memref<16x192xf32, #tpu.memory_space<vmem>>, vector<8x48xf32>
    tpu.vector_store %arg14[%c0_34, %c0_35], %20 {strides = array<i32>} : memref<16x192xf32, #tpu.memory_space<vmem>>, vector<8x48xf32>,
    %c1_36 = arith.constant 1 : index
    %c0_37 = arith.constant 0 : index
    %22 = tpu.strided_load %arg13[%c1_36, %c0_37] {strides = array<i32: 2, 1>} : memref<36x48xf32, #tpu.memory_space<vmem>>, vector<8x48xf32>
    %c0_38 = arith.constant 0 : index
    %c48 = arith.constant 48 : index
    %23 = vector.load %arg14[%c0_38, %c48] : memref<16x192xf32, #tpu.memory_space<vmem>>, vector<8x48xf32>
    tpu.vector_store %arg14[%c0_38, %c48], %22 {strides = array<i32>} : memref<16x192xf32, #tpu.memory_space<vmem>>, vector<8x48xf32>,
    %c2_39 = arith.constant 2 : index
    %c0_40 = arith.constant 0 : index
    %24 = tpu.strided_load %arg13[%c2_39, %c0_40] {strides = array<i32: 2, 1>} : memref<36x48xf32, #tpu.memory_space<vmem>>, vector<8x48xf32>
    %c0_41 = arith.constant 0 : index
    %c96 = arith.constant 96 : index
    %25 = vector.load %arg14[%c0_41, %c96] : memref<16x192xf32, #tpu.memory_space<vmem>>, vector<8x48xf32>
    tpu.vector_store %arg14[%c0_41, %c96], %24 {strides = array<i32>} : memref<16x192xf32, #tpu.memory_space<vmem>>, vector<8x48xf32>,
    %c3 = arith.constant 3 : index
    %c0_42 = arith.constant 0 : index
    %26 = tpu.strided_load %arg13[%c3, %c0_42] {strides = array<i32: 2, 1>} : memref<36x48xf32, #tpu.memory_space<vmem>>, vector<8x48xf32>
    %c0_43 = arith.constant 0 : index
    %c144 = arith.constant 144 : index
    %27 = vector.load %arg14[%c0_43, %c144] : memref<16x192xf32, #tpu.memory_space<vmem>>, vector<8x48xf32>
    tpu.vector_store %arg14[%c0_43, %c144], %26 {strides = array<i32>} : memref<16x192xf32, #tpu.memory_space<vmem>>, vector<8x48xf32>,
    %c18 = arith.constant 18 : index
    %c0_44 = arith.constant 0 : index
    %28 = tpu.strided_load %arg13[%c18, %c0_44] {strides = array<i32: 2, 1>} : memref<36x48xf32, #tpu.memory_space<vmem>>, vector<8x48xf32>
    %c8 = arith.constant 8 : index
    %c0_45 = arith.constant 0 : index
    %29 = vector.load %arg14[%c8, %c0_45] : memref<16x192xf32, #tpu.memory_space<vmem>>, vector<8x48xf32>
    tpu.vector_store %arg14[%c8, %c0_45], %28 {strides = array<i32>} : memref<16x192xf32, #tpu.memory_space<vmem>>, vector<8x48xf32>,
    %c19_46 = arith.constant 19 : index
    %c0_47 = arith.constant 0 : index
    %30 = tpu.strided_load %arg13[%c19_46, %c0_47] {strides = array<i32: 2, 1>} : memref<36x48xf32, #tpu.memory_space<vmem>>, vector<8x48xf32>
    %c8_48 = arith.constant 8 : index
    %c48_49 = arith.constant 48 : index
    %31 = vector.load %arg14[%c8_48, %c48_49] : memref<16x192xf32, #tpu.memory_space<vmem>>, vector<8x48xf32>
    tpu.vector_store %arg14[%c8_48, %c48_49], %30 {strides = array<i32>} : memref<16x192xf32, #tpu.memory_space<vmem>>, vector<8x48xf32>,
    %c20 = arith.constant 20 : index
    %c0_50 = arith.constant 0 : index
    %32 = tpu.strided_load %arg13[%c20, %c0_50] {strides = array<i32: 2, 1>} : memref<36x48xf32, #tpu.memory_space<vmem>>, vector<8x48xf32>
    %c8_51 = arith.constant 8 : index
    %c96_52 = arith.constant 96 : index
    %33 = vector.load %arg14[%c8_51, %c96_52] : memref<16x192xf32, #tpu.memory_space<vmem>>, vector<8x48xf32>
    tpu.vector_store %arg14[%c8_51, %c96_52], %32 {strides = array<i32>} : memref<16x192xf32, #tpu.memory_space<vmem>>, vector<8x48xf32>,
    %c21 = arith.constant 21 : index
    %c0_53 = arith.constant 0 : index
    %34 = tpu.strided_load %arg13[%c21, %c0_53] {strides = array<i32: 2, 1>} : memref<36x48xf32, #tpu.memory_space<vmem>>, vector<8x48xf32>
    %c8_54 = arith.constant 8 : index
    %c144_55 = arith.constant 144 : index
    %35 = vector.load %arg14[%c8_54, %c144_55] : memref<16x192xf32, #tpu.memory_space<vmem>>, vector<8x48xf32>
    tpu.vector_store %arg14[%c8_54, %c144_55], %34 {strides = array<i32>} : memref<16x192xf32, #tpu.memory_space<vmem>>, vector<8x48xf32>,
    %c0_56 = arith.constant 0 : index
    %c0_57 = arith.constant 0 : index
    %36 = vector.load %arg14[%c0_56, %c0_57] : memref<16x192xf32, #tpu.memory_space<vmem>>, vector<16x192xf32>
    %c0_58 = arith.constant 0 : index
    %c0_59 = arith.constant 0 : index
    %37 = vector.load %arg2[%c0_58, %c0_59] : memref<192x128xf32, #tpu.memory_space<vmem>>, vector<192x128xf32>
    %cst_60 = arith.constant dense<0.000000e+00> : vector<16x128xf32>
    %38 = tpu.matmul %36, %37, %cst_60 {dimension_numbers = #tpu.dot_dimension_numbers<[1], [0], [0], [1], [0, 0, 1, 1], [], []>} : vector<16x192xf32>, vector<192x128xf32>, vector<16x128xf32> -> vector<16x128xf32>
    %c0_61 = arith.constant 0 : index
    %c0_62 = arith.constant 0 : index
    %39 = vector.load %arg3[%c0_61, %c0_62] : memref<1x128xf32, #tpu.memory_space<vmem>>, vector<1x128xf32>
    %40 = vector.broadcast %39 : vector<1x128xf32> to vector<16x128xf32>
    %41 = arith.addf %38, %40 : vector<16x128xf32>
    %cst_63 = arith.constant 0.000000e+00 : f32
    %42 = vector.broadcast %cst_63 : f32 to vector<16x128xf32>
    %43 = arith.maximumf %41, %42 : vector<16x128xf32>
    %cst_64 = arith.constant 0.000000e+00 : f32
    %44 = vector.broadcast %cst_64 : f32 to vector<20x128xf32>
    %c0_65 = arith.constant 0 : index
    %c0_66 = arith.constant 0 : index
    %45 = vector.load %arg15[%c0_65, %c0_66] : memref<20x128xf32, #tpu.memory_space<vmem>>, vector<20x128xf32>
    tpu.vector_store %arg15[%c0_65, %c0_66], %44 {strides = array<i32>} : memref<20x128xf32, #tpu.memory_space<vmem>>, vector<20x128xf32>,
    %46 = vector.extract_strided_slice %43 {offsets = [0, 0], sizes = [8, 128], strides = [1, 1]} : vector<16x128xf32> to vector<8x128xf32>
    %c1_67 = arith.constant 1 : index
    %c0_68 = arith.constant 0 : index
    %47 = vector.load %arg15[%c1_67, %c0_68] : memref<20x128xf32, #tpu.memory_space<vmem>>, vector<8x128xf32>
    tpu.vector_store %arg15[%c1_67, %c0_68], %46 {strides = array<i32>} : memref<20x128xf32, #tpu.memory_space<vmem>>, vector<8x128xf32>,
    %48 = vector.extract_strided_slice %43 {offsets = [8, 0], sizes = [8, 128], strides = [1, 1]} : vector<16x128xf32> to vector<8x128xf32>
    %c11 = arith.constant 11 : index
    %c0_69 = arith.constant 0 : index
    %49 = vector.load %arg15[%c11, %c0_69] : memref<20x128xf32, #tpu.memory_space<vmem>>, vector<8x128xf32>
    tpu.vector_store %arg15[%c11, %c0_69], %48 {strides = array<i32>} : memref<20x128xf32, #tpu.memory_space<vmem>>, vector<8x128xf32>,
    %c0_70 = arith.constant 0 : index
    %c0_71 = arith.constant 0 : index
    %50 = tpu.strided_load %arg15[%c0_70, %c0_71] {strides = array<i32: 2, 1>} : memref<20x128xf32, #tpu.memory_space<vmem>>, vector<4x128xf32>
    %c0_72 = arith.constant 0 : index
    %c0_73 = arith.constant 0 : index
    %51 = vector.load %arg16[%c0_72, %c0_73] : memref<8x512xf32, #tpu.memory_space<vmem>>, vector<4x128xf32>
    tpu.vector_store %arg16[%c0_72, %c0_73], %50 {strides = array<i32>} : memref<8x512xf32, #tpu.memory_space<vmem>>, vector<4x128xf32>,
    %c1_74 = arith.constant 1 : index
    %c0_75 = arith.constant 0 : index
    %52 = tpu.strided_load %arg15[%c1_74, %c0_75] {strides = array<i32: 2, 1>} : memref<20x128xf32, #tpu.memory_space<vmem>>, vector<4x128xf32>
    %c0_76 = arith.constant 0 : index
    %c128 = arith.constant 128 : index
    %53 = vector.load %arg16[%c0_76, %c128] : memref<8x512xf32, #tpu.memory_space<vmem>>, vector<4x128xf32>
    tpu.vector_store %arg16[%c0_76, %c128], %52 {strides = array<i32>} : memref<8x512xf32, #tpu.memory_space<vmem>>, vector<4x128xf32>,
    %c2_77 = arith.constant 2 : index
    %c0_78 = arith.constant 0 : index
    %54 = tpu.strided_load %arg15[%c2_77, %c0_78] {strides = array<i32: 2, 1>} : memref<20x128xf32, #tpu.memory_space<vmem>>, vector<4x128xf32>
    %c0_79 = arith.constant 0 : index
    %c256 = arith.constant 256 : index
    %55 = vector.load %arg16[%c0_79, %c256] : memref<8x512xf32, #tpu.memory_space<vmem>>, vector<4x128xf32>
    tpu.vector_store %arg16[%c0_79, %c256], %54 {strides = array<i32>} : memref<8x512xf32, #tpu.memory_space<vmem>>, vector<4x128xf32>,
    %c3_80 = arith.constant 3 : index
    %c0_81 = arith.constant 0 : index
    %56 = tpu.strided_load %arg15[%c3_80, %c0_81] {strides = array<i32: 2, 1>} : memref<20x128xf32, #tpu.memory_space<vmem>>, vector<4x128xf32>
    %c0_82 = arith.constant 0 : index
    %c384 = arith.constant 384 : index
    %57 = vector.load %arg16[%c0_82, %c384] : memref<8x512xf32, #tpu.memory_space<vmem>>, vector<4x128xf32>
    tpu.vector_store %arg16[%c0_82, %c384], %56 {strides = array<i32>} : memref<8x512xf32, #tpu.memory_space<vmem>>, vector<4x128xf32>,
    %c10 = arith.constant 10 : index
    %c0_83 = arith.constant 0 : index
    %58 = tpu.strided_load %arg15[%c10, %c0_83] {strides = array<i32: 2, 1>} : memref<20x128xf32, #tpu.memory_space<vmem>>, vector<4x128xf32>
    %c4 = arith.constant 4 : index
    %c0_84 = arith.constant 0 : index
    %59 = vector.load %arg16[%c4, %c0_84] : memref<8x512xf32, #tpu.memory_space<vmem>>, vector<4x128xf32>
    tpu.vector_store %arg16[%c4, %c0_84], %58 {strides = array<i32>} : memref<8x512xf32, #tpu.memory_space<vmem>>, vector<4x128xf32>,
    %c11_85 = arith.constant 11 : index
    %c0_86 = arith.constant 0 : index
    %60 = tpu.strided_load %arg15[%c11_85, %c0_86] {strides = array<i32: 2, 1>} : memref<20x128xf32, #tpu.memory_space<vmem>>, vector<4x128xf32>
    %c4_87 = arith.constant 4 : index
    %c128_88 = arith.constant 128 : index
    %61 = vector.load %arg16[%c4_87, %c128_88] : memref<8x512xf32, #tpu.memory_space<vmem>>, vector<4x128xf32>
    tpu.vector_store %arg16[%c4_87, %c128_88], %60 {strides = array<i32>} : memref<8x512xf32, #tpu.memory_space<vmem>>, vector<4x128xf32>,
    %c12 = arith.constant 12 : index
    %c0_89 = arith.constant 0 : index
    %62 = tpu.strided_load %arg15[%c12, %c0_89] {strides = array<i32: 2, 1>} : memref<20x128xf32, #tpu.memory_space<vmem>>, vector<4x128xf32>
    %c4_90 = arith.constant 4 : index
    %c256_91 = arith.constant 256 : index
    %63 = vector.load %arg16[%c4_90, %c256_91] : memref<8x512xf32, #tpu.memory_space<vmem>>, vector<4x128xf32>
    tpu.vector_store %arg16[%c4_90, %c256_91], %62 {strides = array<i32>} : memref<8x512xf32, #tpu.memory_space<vmem>>, vector<4x128xf32>,
    %c13 = arith.constant 13 : index
    %c0_92 = arith.constant 0 : index
    %64 = tpu.strided_load %arg15[%c13, %c0_92] {strides = array<i32: 2, 1>} : memref<20x128xf32, #tpu.memory_space<vmem>>, vector<4x128xf32>
    %c4_93 = arith.constant 4 : index
    %c384_94 = arith.constant 384 : index
    %65 = vector.load %arg16[%c4_93, %c384_94] : memref<8x512xf32, #tpu.memory_space<vmem>>, vector<4x128xf32>
    tpu.vector_store %arg16[%c4_93, %c384_94], %64 {strides = array<i32>} : memref<8x512xf32, #tpu.memory_space<vmem>>, vector<4x128xf32>,
    %c0_95 = arith.constant 0 : index
    %c0_96 = arith.constant 0 : index
    %66 = vector.load %arg16[%c0_95, %c0_96] : memref<8x512xf32, #tpu.memory_space<vmem>>, vector<8x512xf32>
    %c0_97 = arith.constant 0 : index
    %c0_98 = arith.constant 0 : index
    %67 = vector.load %arg4[%c0_97, %c0_98] : memref<512x128xf32, #tpu.memory_space<vmem>>, vector<512x128xf32>
    %cst_99 = arith.constant dense<0.000000e+00> : vector<8x128xf32>
    %68 = tpu.matmul %66, %67, %cst_99 {dimension_numbers = #tpu.dot_dimension_numbers<[1], [0], [0], [1], [0, 0, 1, 1], [], []>} : vector<8x512xf32>, vector<512x128xf32>, vector<8x128xf32> -> vector<8x128xf32>
    %c0_100 = arith.constant 0 : index
    %c0_101 = arith.constant 0 : index
    %69 = vector.load %arg5[%c0_100, %c0_101] : memref<1x128xf32, #tpu.memory_space<vmem>>, vector<1x128xf32>
    %70 = vector.broadcast %69 : vector<1x128xf32> to vector<8x128xf32>
    %71 = arith.addf %68, %70 : vector<8x128xf32>
    %cst_102 = arith.constant 0.000000e+00 : f32
    %72 = vector.broadcast %cst_102 : f32 to vector<8x128xf32>
    %73 = arith.maximumf %71, %72 : vector<8x128xf32>
    %cst_103 = arith.constant 0.000000e+00 : f32
    %74 = vector.broadcast %cst_103 : f32 to vector<12x128xf32>
    %c0_104 = arith.constant 0 : index
    %c0_105 = arith.constant 0 : index
    %75 = vector.load %arg17[%c0_104, %c0_105] : memref<12x128xf32, #tpu.memory_space<vmem>>, vector<12x128xf32>
    tpu.vector_store %arg17[%c0_104, %c0_105], %74 {strides = array<i32>} : memref<12x128xf32, #tpu.memory_space<vmem>>, vector<12x128xf32>,
    %76 = vector.extract_strided_slice %73 {offsets = [0, 0], sizes = [4, 128], strides = [1, 1]} : vector<8x128xf32> to vector<4x128xf32>
    %c1_106 = arith.constant 1 : index
    %c0_107 = arith.constant 0 : index
    %77 = vector.load %arg17[%c1_106, %c0_107] : memref<12x128xf32, #tpu.memory_space<vmem>>, vector<4x128xf32>
    tpu.vector_store %arg17[%c1_106, %c0_107], %76 {strides = array<i32>} : memref<12x128xf32, #tpu.memory_space<vmem>>, vector<4x128xf32>,
    %78 = vector.extract_strided_slice %73 {offsets = [4, 0], sizes = [4, 128], strides = [1, 1]} : vector<8x128xf32> to vector<4x128xf32>
    %c7 = arith.constant 7 : index
    %c0_108 = arith.constant 0 : index
    %79 = vector.load %arg17[%c7, %c0_108] : memref<12x128xf32, #tpu.memory_space<vmem>>, vector<4x128xf32>
    tpu.vector_store %arg17[%c7, %c0_108], %78 {strides = array<i32>} : memref<12x128xf32, #tpu.memory_space<vmem>>, vector<4x128xf32>,
    %c0_109 = arith.constant 0 : index
    %c0_110 = arith.constant 0 : index
    %80 = vector.load %arg17[%c0_109, %c0_110] : memref<12x128xf32, #tpu.memory_space<vmem>>, vector<4x128xf32>
    %c0_111 = arith.constant 0 : index
    %c0_112 = arith.constant 0 : index
    %81 = vector.load %arg18[%c0_111, %c0_112] : memref<8x384xf32, #tpu.memory_space<vmem>>, vector<4x128xf32>
    tpu.vector_store %arg18[%c0_111, %c0_112], %80 {strides = array<i32>} : memref<8x384xf32, #tpu.memory_space<vmem>>, vector<4x128xf32>,
    %c1_113 = arith.constant 1 : index
    %c0_114 = arith.constant 0 : index
    %82 = vector.load %arg17[%c1_113, %c0_114] : memref<12x128xf32, #tpu.memory_space<vmem>>, vector<4x128xf32>
    %c0_115 = arith.constant 0 : index
    %c128_116 = arith.constant 128 : index
    %83 = vector.load %arg18[%c0_115, %c128_116] : memref<8x384xf32, #tpu.memory_space<vmem>>, vector<4x128xf32>
    tpu.vector_store %arg18[%c0_115, %c128_116], %82 {strides = array<i32>} : memref<8x384xf32, #tpu.memory_space<vmem>>, vector<4x128xf32>,
    %c2_117 = arith.constant 2 : index
    %c0_118 = arith.constant 0 : index
    %84 = vector.load %arg17[%c2_117, %c0_118] : memref<12x128xf32, #tpu.memory_space<vmem>>, vector<4x128xf32>
    %c0_119 = arith.constant 0 : index
    %c256_120 = arith.constant 256 : index
    %85 = vector.load %arg18[%c0_119, %c256_120] : memref<8x384xf32, #tpu.memory_space<vmem>>, vector<4x128xf32>
    tpu.vector_store %arg18[%c0_119, %c256_120], %84 {strides = array<i32>} : memref<8x384xf32, #tpu.memory_space<vmem>>, vector<4x128xf32>,
    %c6 = arith.constant 6 : index
    %c0_121 = arith.constant 0 : index
    %86 = vector.load %arg17[%c6, %c0_121] : memref<12x128xf32, #tpu.memory_space<vmem>>, vector<4x128xf32>
    %c4_122 = arith.constant 4 : index
    %c0_123 = arith.constant 0 : index
    %87 = vector.load %arg18[%c4_122, %c0_123] : memref<8x384xf32, #tpu.memory_space<vmem>>, vector<4x128xf32>
    tpu.vector_store %arg18[%c4_122, %c0_123], %86 {strides = array<i32>} : memref<8x384xf32, #tpu.memory_space<vmem>>, vector<4x128xf32>,
    %c7_124 = arith.constant 7 : index
    %c0_125 = arith.constant 0 : index
    %88 = vector.load %arg17[%c7_124, %c0_125] : memref<12x128xf32, #tpu.memory_space<vmem>>, vector<4x128xf32>
    %c4_126 = arith.constant 4 : index
    %c128_127 = arith.constant 128 : index
    %89 = vector.load %arg18[%c4_126, %c128_127] : memref<8x384xf32, #tpu.memory_space<vmem>>, vector<4x128xf32>
    tpu.vector_store %arg18[%c4_126, %c128_127], %88 {strides = array<i32>} : memref<8x384xf32, #tpu.memory_space<vmem>>, vector<4x128xf32>,
    %c8_128 = arith.constant 8 : index
    %c0_129 = arith.constant 0 : index
    %90 = vector.load %arg17[%c8_128, %c0_129] : memref<12x128xf32, #tpu.memory_space<vmem>>, vector<4x128xf32>
    %c4_130 = arith.constant 4 : index
    %c256_131 = arith.constant 256 : index
    %91 = vector.load %arg18[%c4_130, %c256_131] : memref<8x384xf32, #tpu.memory_space<vmem>>, vector<4x128xf32>
    tpu.vector_store %arg18[%c4_130, %c256_131], %90 {strides = array<i32>} : memref<8x384xf32, #tpu.memory_space<vmem>>, vector<4x128xf32>,
    %c0_132 = arith.constant 0 : index
    %c0_133 = arith.constant 0 : index
    %92 = vector.load %arg18[%c0_132, %c0_133] : memref<8x384xf32, #tpu.memory_space<vmem>>, vector<8x384xf32>
    %c0_134 = arith.constant 0 : index
    %c0_135 = arith.constant 0 : index
    %93 = vector.load %arg6[%c0_134, %c0_135] : memref<384x128xf32, #tpu.memory_space<vmem>>, vector<384x128xf32>
    %cst_136 = arith.constant dense<0.000000e+00> : vector<8x128xf32>
    %94 = tpu.matmul %92, %93, %cst_136 {dimension_numbers = #tpu.dot_dimension_numbers<[1], [0], [0], [1], [0, 0, 1, 1], [], []>} : vector<8x384xf32>, vector<384x128xf32>, vector<8x128xf32> -> vector<8x128xf32>
    %c0_137 = arith.constant 0 : index
    %c0_138 = arith.constant 0 : index
    %95 = vector.load %arg7[%c0_137, %c0_138] : memref<1x128xf32, #tpu.memory_space<vmem>>, vector<1x128xf32>
    %96 = vector.broadcast %95 : vector<1x128xf32> to vector<8x128xf32>
    %97 = arith.addf %94, %96 : vector<8x128xf32>
    %cst_139 = arith.constant 0.000000e+00 : f32
    %98 = vector.broadcast %cst_139 : f32 to vector<8x128xf32>
    %99 = arith.maximumf %97, %98 : vector<8x128xf32>
    %cst_140 = arith.constant 0.000000e+00 : f32
    %100 = vector.broadcast %cst_140 : f32 to vector<12x128xf32>
    %c0_141 = arith.constant 0 : index
    %c0_142 = arith.constant 0 : index
    %101 = vector.load %arg19[%c0_141, %c0_142] : memref<12x128xf32, #tpu.memory_space<vmem>>, vector<12x128xf32>
    tpu.vector_store %arg19[%c0_141, %c0_142], %100 {strides = array<i32>} : memref<12x128xf32, #tpu.memory_space<vmem>>, vector<12x128xf32>,
    %102 = vector.extract_strided_slice %99 {offsets = [0, 0], sizes = [4, 128], strides = [1, 1]} : vector<8x128xf32> to vector<4x128xf32>
    %c1_143 = arith.constant 1 : index
    %c0_144 = arith.constant 0 : index
    %103 = vector.load %arg19[%c1_143, %c0_144] : memref<12x128xf32, #tpu.memory_space<vmem>>, vector<4x128xf32>
    tpu.vector_store %arg19[%c1_143, %c0_144], %102 {strides = array<i32>} : memref<12x128xf32, #tpu.memory_space<vmem>>, vector<4x128xf32>,
    %104 = vector.extract_strided_slice %99 {offsets = [4, 0], sizes = [4, 128], strides = [1, 1]} : vector<8x128xf32> to vector<4x128xf32>
    %c7_145 = arith.constant 7 : index
    %c0_146 = arith.constant 0 : index
    %105 = vector.load %arg19[%c7_145, %c0_146] : memref<12x128xf32, #tpu.memory_space<vmem>>, vector<4x128xf32>
    tpu.vector_store %arg19[%c7_145, %c0_146], %104 {strides = array<i32>} : memref<12x128xf32, #tpu.memory_space<vmem>>, vector<4x128xf32>,
    %c0_147 = arith.constant 0 : index
    %c0_148 = arith.constant 0 : index
    %106 = vector.load %arg19[%c0_147, %c0_148] : memref<12x128xf32, #tpu.memory_space<vmem>>, vector<4x128xf32>
    %c0_149 = arith.constant 0 : index
    %c0_150 = arith.constant 0 : index
    %107 = vector.load %arg20[%c0_149, %c0_150] : memref<8x384xf32, #tpu.memory_space<vmem>>, vector<4x128xf32>
    tpu.vector_store %arg20[%c0_149, %c0_150], %106 {strides = array<i32>} : memref<8x384xf32, #tpu.memory_space<vmem>>, vector<4x128xf32>,
    %c1_151 = arith.constant 1 : index
    %c0_152 = arith.constant 0 : index
    %108 = vector.load %arg19[%c1_151, %c0_152] : memref<12x128xf32, #tpu.memory_space<vmem>>, vector<4x128xf32>
    %c0_153 = arith.constant 0 : index
    %c128_154 = arith.constant 128 : index
    %109 = vector.load %arg20[%c0_153, %c128_154] : memref<8x384xf32, #tpu.memory_space<vmem>>, vector<4x128xf32>
    tpu.vector_store %arg20[%c0_153, %c128_154], %108 {strides = array<i32>} : memref<8x384xf32, #tpu.memory_space<vmem>>, vector<4x128xf32>,
    %c2_155 = arith.constant 2 : index
    %c0_156 = arith.constant 0 : index
    %110 = vector.load %arg19[%c2_155, %c0_156] : memref<12x128xf32, #tpu.memory_space<vmem>>, vector<4x128xf32>
    %c0_157 = arith.constant 0 : index
    %c256_158 = arith.constant 256 : index
    %111 = vector.load %arg20[%c0_157, %c256_158] : memref<8x384xf32, #tpu.memory_space<vmem>>, vector<4x128xf32>
    tpu.vector_store %arg20[%c0_157, %c256_158], %110 {strides = array<i32>} : memref<8x384xf32, #tpu.memory_space<vmem>>, vector<4x128xf32>,
    %c6_159 = arith.constant 6 : index
    %c0_160 = arith.constant 0 : index
    %112 = vector.load %arg19[%c6_159, %c0_160] : memref<12x128xf32, #tpu.memory_space<vmem>>, vector<4x128xf32>
    %c4_161 = arith.constant 4 : index
    %c0_162 = arith.constant 0 : index
    %113 = vector.load %arg20[%c4_161, %c0_162] : memref<8x384xf32, #tpu.memory_space<vmem>>, vector<4x128xf32>
    tpu.vector_store %arg20[%c4_161, %c0_162], %112 {strides = array<i32>} : memref<8x384xf32, #tpu.memory_space<vmem>>, vector<4x128xf32>,
    %c7_163 = arith.constant 7 : index
    %c0_164 = arith.constant 0 : index
    %114 = vector.load %arg19[%c7_163, %c0_164] : memref<12x128xf32, #tpu.memory_space<vmem>>, vector<4x128xf32>
    %c4_165 = arith.constant 4 : index
    %c128_166 = arith.constant 128 : index
    %115 = vector.load %arg20[%c4_165, %c128_166] : memref<8x384xf32, #tpu.memory_space<vmem>>, vector<4x128xf32>
    tpu.vector_store %arg20[%c4_165, %c128_166], %114 {strides = array<i32>} : memref<8x384xf32, #tpu.memory_space<vmem>>, vector<4x128xf32>,
    %c8_167 = arith.constant 8 : index
    %c0_168 = arith.constant 0 : index
    %116 = vector.load %arg19[%c8_167, %c0_168] : memref<12x128xf32, #tpu.memory_space<vmem>>, vector<4x128xf32>
    %c4_169 = arith.constant 4 : index
    %c256_170 = arith.constant 256 : index
    %117 = vector.load %arg20[%c4_169, %c256_170] : memref<8x384xf32, #tpu.memory_space<vmem>>, vector<4x128xf32>
    tpu.vector_store %arg20[%c4_169, %c256_170], %116 {strides = array<i32>} : memref<8x384xf32, #tpu.memory_space<vmem>>, vector<4x128xf32>,
    %c0_171 = arith.constant 0 : index
    %c0_172 = arith.constant 0 : index
    %118 = vector.load %arg20[%c0_171, %c0_172] : memref<8x384xf32, #tpu.memory_space<vmem>>, vector<8x384xf32>
    %c0_173 = arith.constant 0 : index
    %c0_174 = arith.constant 0 : index
    %119 = vector.load %arg8[%c0_173, %c0_174] : memref<384x32xf32, #tpu.memory_space<vmem>>, vector<384x32xf32>
    %cst_175 = arith.constant dense<0.000000e+00> : vector<8x32xf32>
    %120 = tpu.matmul %118, %119, %cst_175 {dimension_numbers = #tpu.dot_dimension_numbers<[1], [0], [0], [1], [0, 0, 1, 1], [], []>} : vector<8x384xf32>, vector<384x32xf32>, vector<8x32xf32> -> vector<8x32xf32>
    %cst_176 = arith.constant 0.000000e+00 : f32
    %121 = vector.broadcast %cst_176 : f32 to vector<8x32xf32>
    %122 = arith.maximumf %120, %121 : vector<8x32xf32>
    %c0_177 = arith.constant 0 : index
    %c0_178 = arith.constant 0 : index
    %123 = vector.load %arg9[%c0_177, %c0_178] : memref<32x128xf32, #tpu.memory_space<vmem>>, vector<32x128xf32>
    %cst_179 = arith.constant dense<0.000000e+00> : vector<8x128xf32>
    %124 = tpu.matmul %122, %123, %cst_179 {dimension_numbers = #tpu.dot_dimension_numbers<[1], [0], [0], [1], [0, 0, 1, 1], [], []>} : vector<8x32xf32>, vector<32x128xf32>, vector<8x128xf32> -> vector<8x128xf32>
    %125 = arith.addf %124, %97 : vector<8x128xf32>
    %cst_180 = arith.constant 0.000000e+00 : f32
    %126 = vector.broadcast %cst_180 : f32 to vector<8x128xf32>
    %127 = arith.maximumf %125, %126 : vector<8x128xf32>
    %cst_181 = arith.constant 0.000000e+00 : f32
    %128 = vector.broadcast %cst_181 : f32 to vector<12x128xf32>
    %c0_182 = arith.constant 0 : index
    %c0_183 = arith.constant 0 : index
    %129 = vector.load %arg21[%c0_182, %c0_183] : memref<12x128xf32, #tpu.memory_space<vmem>>, vector<12x128xf32>
    tpu.vector_store %arg21[%c0_182, %c0_183], %128 {strides = array<i32>} : memref<12x128xf32, #tpu.memory_space<vmem>>, vector<12x128xf32>,
    %130 = vector.extract_strided_slice %127 {offsets = [0, 0], sizes = [4, 128], strides = [1, 1]} : vector<8x128xf32> to vector<4x128xf32>
    %c1_184 = arith.constant 1 : index
    %c0_185 = arith.constant 0 : index
    %131 = vector.load %arg21[%c1_184, %c0_185] : memref<12x128xf32, #tpu.memory_space<vmem>>, vector<4x128xf32>
    tpu.vector_store %arg21[%c1_184, %c0_185], %130 {strides = array<i32>} : memref<12x128xf32, #tpu.memory_space<vmem>>, vector<4x128xf32>,
    %132 = vector.extract_strided_slice %127 {offsets = [4, 0], sizes = [4, 128], strides = [1, 1]} : vector<8x128xf32> to vector<4x128xf32>
    %c7_186 = arith.constant 7 : index
    %c0_187 = arith.constant 0 : index
    %133 = vector.load %arg21[%c7_186, %c0_187] : memref<12x128xf32, #tpu.memory_space<vmem>>, vector<4x128xf32>
    tpu.vector_store %arg21[%c7_186, %c0_187], %132 {strides = array<i32>} : memref<12x128xf32, #tpu.memory_space<vmem>>, vector<4x128xf32>,
    %c0_188 = arith.constant 0 : index
    %c0_189 = arith.constant 0 : index
    %134 = vector.load %arg21[%c0_188, %c0_189] : memref<12x128xf32, #tpu.memory_space<vmem>>, vector<4x128xf32>
    %c0_190 = arith.constant 0 : index
    %c0_191 = arith.constant 0 : index
    %135 = vector.load %arg22[%c0_190, %c0_191] : memref<8x384xf32, #tpu.memory_space<vmem>>, vector<4x128xf32>
    tpu.vector_store %arg22[%c0_190, %c0_191], %134 {strides = array<i32>} : memref<8x384xf32, #tpu.memory_space<vmem>>, vector<4x128xf32>,
    %c1_192 = arith.constant 1 : index
    %c0_193 = arith.constant 0 : index
    %136 = vector.load %arg21[%c1_192, %c0_193] : memref<12x128xf32, #tpu.memory_space<vmem>>, vector<4x128xf32>
    %c0_194 = arith.constant 0 : index
    %c128_195 = arith.constant 128 : index
    %137 = vector.load %arg22[%c0_194, %c128_195] : memref<8x384xf32, #tpu.memory_space<vmem>>, vector<4x128xf32>
    tpu.vector_store %arg22[%c0_194, %c128_195], %136 {strides = array<i32>} : memref<8x384xf32, #tpu.memory_space<vmem>>, vector<4x128xf32>,
    %c2_196 = arith.constant 2 : index
    %c0_197 = arith.constant 0 : index
    %138 = vector.load %arg21[%c2_196, %c0_197] : memref<12x128xf32, #tpu.memory_space<vmem>>, vector<4x128xf32>
    %c0_198 = arith.constant 0 : index
    %c256_199 = arith.constant 256 : index
    %139 = vector.load %arg22[%c0_198, %c256_199] : memref<8x384xf32, #tpu.memory_space<vmem>>, vector<4x128xf32>
    tpu.vector_store %arg22[%c0_198, %c256_199], %138 {strides = array<i32>} : memref<8x384xf32, #tpu.memory_space<vmem>>, vector<4x128xf32>,
    %c6_200 = arith.constant 6 : index
    %c0_201 = arith.constant 0 : index
    %140 = vector.load %arg21[%c6_200, %c0_201] : memref<12x128xf32, #tpu.memory_space<vmem>>, vector<4x128xf32>
    %c4_202 = arith.constant 4 : index
    %c0_203 = arith.constant 0 : index
    %141 = vector.load %arg22[%c4_202, %c0_203] : memref<8x384xf32, #tpu.memory_space<vmem>>, vector<4x128xf32>
    tpu.vector_store %arg22[%c4_202, %c0_203], %140 {strides = array<i32>} : memref<8x384xf32, #tpu.memory_space<vmem>>, vector<4x128xf32>,
    %c7_204 = arith.constant 7 : index
    %c0_205 = arith.constant 0 : index
    %142 = vector.load %arg21[%c7_204, %c0_205] : memref<12x128xf32, #tpu.memory_space<vmem>>, vector<4x128xf32>
    %c4_206 = arith.constant 4 : index
    %c128_207 = arith.constant 128 : index
    %143 = vector.load %arg22[%c4_206, %c128_207] : memref<8x384xf32, #tpu.memory_space<vmem>>, vector<4x128xf32>
    tpu.vector_store %arg22[%c4_206, %c128_207], %142 {strides = array<i32>} : memref<8x384xf32, #tpu.memory_space<vmem>>, vector<4x128xf32>,
    %c8_208 = arith.constant 8 : index
    %c0_209 = arith.constant 0 : index
    %144 = vector.load %arg21[%c8_208, %c0_209] : memref<12x128xf32, #tpu.memory_space<vmem>>, vector<4x128xf32>
    %c4_210 = arith.constant 4 : index
    %c256_211 = arith.constant 256 : index
    %145 = vector.load %arg22[%c4_210, %c256_211] : memref<8x384xf32, #tpu.memory_space<vmem>>, vector<4x128xf32>
    tpu.vector_store %arg22[%c4_210, %c256_211], %144 {strides = array<i32>} : memref<8x384xf32, #tpu.memory_space<vmem>>, vector<4x128xf32>,
    %c0_212 = arith.constant 0 : index
    %c0_213 = arith.constant 0 : index
    %146 = vector.load %arg22[%c0_212, %c0_213] : memref<8x384xf32, #tpu.memory_space<vmem>>, vector<8x384xf32>
    %c0_214 = arith.constant 0 : index
    %c0_215 = arith.constant 0 : index
    %147 = vector.load %arg10[%c0_214, %c0_215] : memref<384x32xf32, #tpu.memory_space<vmem>>, vector<384x32xf32>
    %cst_216 = arith.constant dense<0.000000e+00> : vector<8x32xf32>
    %148 = tpu.matmul %146, %147, %cst_216 {dimension_numbers = #tpu.dot_dimension_numbers<[1], [0], [0], [1], [0, 0, 1, 1], [], []>} : vector<8x384xf32>, vector<384x32xf32>, vector<8x32xf32> -> vector<8x32xf32>
    %cst_217 = arith.constant 0.000000e+00 : f32
    %149 = vector.broadcast %cst_217 : f32 to vector<8x32xf32>
    %150 = arith.maximumf %148, %149 : vector<8x32xf32>
    %c0_218 = arith.constant 0 : index
    %c0_219 = arith.constant 0 : index
    %151 = vector.load %arg11[%c0_218, %c0_219] : memref<32x128xf32, #tpu.memory_space<vmem>>, vector<32x128xf32>
    %cst_220 = arith.constant dense<0.000000e+00> : vector<8x128xf32>
    %152 = tpu.matmul %150, %151, %cst_220 {dimension_numbers = #tpu.dot_dimension_numbers<[1], [0], [0], [1], [0, 0, 1, 1], [], []>} : vector<8x32xf32>, vector<32x128xf32>, vector<8x128xf32> -> vector<8x128xf32>
    %153 = arith.addf %152, %125 : vector<8x128xf32>
    %cst_221 = arith.constant 0.000000e+00 : f32
    %154 = vector.broadcast %cst_221 : f32 to vector<8x128xf32>
    %155 = arith.maximumf %153, %154 : vector<8x128xf32>
    %156 = vector.extract_strided_slice %155 {offsets = [0, 0], sizes = [4, 4], strides = [1, 1]} : vector<8x128xf32> to vector<4x4xf32>
    %c0_222 = arith.constant 0 : index
    %c0_223 = arith.constant 0 : index
    %c0_224 = arith.constant 0 : index
    %c0_225 = arith.constant 0 : index
    %157 = vector.load %arg12[%c0_222, %c0_223, %c0_224, %c0_225] : memref<2x32x4x4xf32, #tpu.memory_space<vmem>>, vector<1x1x4x4xf32>
    %158 = vector.shape_cast %157 : vector<1x1x4x4xf32> to vector<4x4xf32>
    %159 = vector.shape_cast %156 : vector<4x4xf32> to vector<1x1x4x4xf32>
    tpu.vector_store %arg12[%c0_222, %c0_223, %c0_224, %c0_225], %159 {strides = array<i32>} : memref<2x32x4x4xf32, #tpu.memory_space<vmem>>, vector<1x1x4x4xf32>,
    %160 = vector.extract_strided_slice %155 {offsets = [0, 4], sizes = [4, 4], strides = [1, 1]} : vector<8x128xf32> to vector<4x4xf32>
    %c0_226 = arith.constant 0 : index
    %c1_227 = arith.constant 1 : index
    %c0_228 = arith.constant 0 : index
    %c0_229 = arith.constant 0 : index
    %161 = vector.load %arg12[%c0_226, %c1_227, %c0_228, %c0_229] : memref<2x32x4x4xf32, #tpu.memory_space<vmem>>, vector<1x1x4x4xf32>
    %162 = vector.shape_cast %161 : vector<1x1x4x4xf32> to vector<4x4xf32>
    %163 = vector.shape_cast %160 : vector<4x4xf32> to vector<1x1x4x4xf32>
    tpu.vector_store %arg12[%c0_226, %c1_227, %c0_228, %c0_229], %163 {strides = array<i32>} : memref<2x32x4x4xf32, #tpu.memory_space<vmem>>, vector<1x1x4x4xf32>,
    %164 = vector.extract_strided_slice %155 {offsets = [0, 8], sizes = [4, 4], strides = [1, 1]} : vector<8x128xf32> to vector<4x4xf32>
    %c0_230 = arith.constant 0 : index
    %c2_231 = arith.constant 2 : index
    %c0_232 = arith.constant 0 : index
    %c0_233 = arith.constant 0 : index
    %165 = vector.load %arg12[%c0_230, %c2_231, %c0_232, %c0_233] : memref<2x32x4x4xf32, #tpu.memory_space<vmem>>, vector<1x1x4x4xf32>
    %166 = vector.shape_cast %165 : vector<1x1x4x4xf32> to vector<4x4xf32>
    %167 = vector.shape_cast %164 : vector<4x4xf32> to vector<1x1x4x4xf32>
    tpu.vector_store %arg12[%c0_230, %c2_231, %c0_232, %c0_233], %167 {strides = array<i32>} : memref<2x32x4x4xf32, #tpu.memory_space<vmem>>, vector<1x1x4x4xf32>,
    %168 = vector.extract_strided_slice %155 {offsets = [0, 12], sizes = [4, 4], strides = [1, 1]} : vector<8x128xf32> to vector<4x4xf32>
    %c0_234 = arith.constant 0 : index
    %c3_235 = arith.constant 3 : index
    %c0_236 = arith.constant 0 : index
    %c0_237 = arith.constant 0 : index
    %169 = vector.load %arg12[%c0_234, %c3_235, %c0_236, %c0_237] : memref<2x32x4x4xf32, #tpu.memory_space<vmem>>, vector<1x1x4x4xf32>
    %170 = vector.shape_cast %169 : vector<1x1x4x4xf32> to vector<4x4xf32>
    %171 = vector.shape_cast %168 : vector<4x4xf32> to vector<1x1x4x4xf32>
    tpu.vector_store %arg12[%c0_234, %c3_235, %c0_236, %c0_237], %171 {strides = array<i32>} : memref<2x32x4x4xf32, #tpu.memory_space<vmem>>, vector<1x1x4x4xf32>,
    %172 = vector.extract_strided_slice %155 {offsets = [0, 16], sizes = [4, 4], strides = [1, 1]} : vector<8x128xf32> to vector<4x4xf32>
    %c0_238 = arith.constant 0 : index
    %c4_239 = arith.constant 4 : index
    %c0_240 = arith.constant 0 : index
    %c0_241 = arith.constant 0 : index
    %173 = vector.load %arg12[%c0_238, %c4_239, %c0_240, %c0_241] : memref<2x32x4x4xf32, #tpu.memory_space<vmem>>, vector<1x1x4x4xf32>
    %174 = vector.shape_cast %173 : vector<1x1x4x4xf32> to vector<4x4xf32>
    %175 = vector.shape_cast %172 : vector<4x4xf32> to vector<1x1x4x4xf32>
    tpu.vector_store %arg12[%c0_238, %c4_239, %c0_240, %c0_241], %175 {strides = array<i32>} : memref<2x32x4x4xf32, #tpu.memory_space<vmem>>, vector<1x1x4x4xf32>,
    %176 = vector.extract_strided_slice %155 {offsets = [0, 20], sizes = [4, 4], strides = [1, 1]} : vector<8x128xf32> to vector<4x4xf32>
    %c0_242 = arith.constant 0 : index
    %c5 = arith.constant 5 : index
    %c0_243 = arith.constant 0 : index
    %c0_244 = arith.constant 0 : index
    %177 = vector.load %arg12[%c0_242, %c5, %c0_243, %c0_244] : memref<2x32x4x4xf32, #tpu.memory_space<vmem>>, vector<1x1x4x4xf32>
    %178 = vector.shape_cast %177 : vector<1x1x4x4xf32> to vector<4x4xf32>
    %179 = vector.shape_cast %176 : vector<4x4xf32> to vector<1x1x4x4xf32>
    tpu.vector_store %arg12[%c0_242, %c5, %c0_243, %c0_244], %179 {strides = array<i32>} : memref<2x32x4x4xf32, #tpu.memory_space<vmem>>, vector<1x1x4x4xf32>,
    %180 = vector.extract_strided_slice %155 {offsets = [0, 24], sizes = [4, 4], strides = [1, 1]} : vector<8x128xf32> to vector<4x4xf32>
    %c0_245 = arith.constant 0 : index
    %c6_246 = arith.constant 6 : index
    %c0_247 = arith.constant 0 : index
    %c0_248 = arith.constant 0 : index
    %181 = vector.load %arg12[%c0_245, %c6_246, %c0_247, %c0_248] : memref<2x32x4x4xf32, #tpu.memory_space<vmem>>, vector<1x1x4x4xf32>
    %182 = vector.shape_cast %181 : vector<1x1x4x4xf32> to vector<4x4xf32>
    %183 = vector.shape_cast %180 : vector<4x4xf32> to vector<1x1x4x4xf32>
    tpu.vector_store %arg12[%c0_245, %c6_246, %c0_247, %c0_248], %183 {strides = array<i32>} : memref<2x32x4x4xf32, #tpu.memory_space<vmem>>, vector<1x1x4x4xf32>,
    %184 = vector.extract_strided_slice %155 {offsets = [0, 28], sizes = [4, 4], strides = [1, 1]} : vector<8x128xf32> to vector<4x4xf32>
    %c0_249 = arith.constant 0 : index
    %c7_250 = arith.constant 7 : index
    %c0_251 = arith.constant 0 : index
    %c0_252 = arith.constant 0 : index
    %185 = vector.load %arg12[%c0_249, %c7_250, %c0_251, %c0_252] : memref<2x32x4x4xf32, #tpu.memory_space<vmem>>, vector<1x1x4x4xf32>
    %186 = vector.shape_cast %185 : vector<1x1x4x4xf32> to vector<4x4xf32>
    %187 = vector.shape_cast %184 : vector<4x4xf32> to vector<1x1x4x4xf32>
    tpu.vector_store %arg12[%c0_249, %c7_250, %c0_251, %c0_252], %187 {strides = array<i32>} : memref<2x32x4x4xf32, #tpu.memory_space<vmem>>, vector<1x1x4x4xf32>,
    %188 = vector.extract_strided_slice %155 {offsets = [0, 32], sizes = [4, 4], strides = [1, 1]} : vector<8x128xf32> to vector<4x4xf32>
    %c0_253 = arith.constant 0 : index
    %c8_254 = arith.constant 8 : index
    %c0_255 = arith.constant 0 : index
    %c0_256 = arith.constant 0 : index
    %189 = vector.load %arg12[%c0_253, %c8_254, %c0_255, %c0_256] : memref<2x32x4x4xf32, #tpu.memory_space<vmem>>, vector<1x1x4x4xf32>
    %190 = vector.shape_cast %189 : vector<1x1x4x4xf32> to vector<4x4xf32>
    %191 = vector.shape_cast %188 : vector<4x4xf32> to vector<1x1x4x4xf32>
    tpu.vector_store %arg12[%c0_253, %c8_254, %c0_255, %c0_256], %191 {strides = array<i32>} : memref<2x32x4x4xf32, #tpu.memory_space<vmem>>, vector<1x1x4x4xf32>,
    %192 = vector.extract_strided_slice %155 {offsets = [0, 36], sizes = [4, 4], strides = [1, 1]} : vector<8x128xf32> to vector<4x4xf32>
    %c0_257 = arith.constant 0 : index
    %c9 = arith.constant 9 : index
    %c0_258 = arith.constant 0 : index
    %c0_259 = arith.constant 0 : index
    %193 = vector.load %arg12[%c0_257, %c9, %c0_258, %c0_259] : memref<2x32x4x4xf32, #tpu.memory_space<vmem>>, vector<1x1x4x4xf32>
    %194 = vector.shape_cast %193 : vector<1x1x4x4xf32> to vector<4x4xf32>
    %195 = vector.shape_cast %192 : vector<4x4xf32> to vector<1x1x4x4xf32>
    tpu.vector_store %arg12[%c0_257, %c9, %c0_258, %c0_259], %195 {strides = array<i32>} : memref<2x32x4x4xf32, #tpu.memory_space<vmem>>, vector<1x1x4x4xf32>,
    %196 = vector.extract_strided_slice %155 {offsets = [0, 40], sizes = [4, 4], strides = [1, 1]} : vector<8x128xf32> to vector<4x4xf32>
    %c0_260 = arith.constant 0 : index
    %c10_261 = arith.constant 10 : index
    %c0_262 = arith.constant 0 : index
    %c0_263 = arith.constant 0 : index
    %197 = vector.load %arg12[%c0_260, %c10_261, %c0_262, %c0_263] : memref<2x32x4x4xf32, #tpu.memory_space<vmem>>, vector<1x1x4x4xf32>
    %198 = vector.shape_cast %197 : vector<1x1x4x4xf32> to vector<4x4xf32>
    %199 = vector.shape_cast %196 : vector<4x4xf32> to vector<1x1x4x4xf32>
    tpu.vector_store %arg12[%c0_260, %c10_261, %c0_262, %c0_263], %199 {strides = array<i32>} : memref<2x32x4x4xf32, #tpu.memory_space<vmem>>, vector<1x1x4x4xf32>,
    %200 = vector.extract_strided_slice %155 {offsets = [0, 44], sizes = [4, 4], strides = [1, 1]} : vector<8x128xf32> to vector<4x4xf32>
    %c0_264 = arith.constant 0 : index
    %c11_265 = arith.constant 11 : index
    %c0_266 = arith.constant 0 : index
    %c0_267 = arith.constant 0 : index
    %201 = vector.load %arg12[%c0_264, %c11_265, %c0_266, %c0_267] : memref<2x32x4x4xf32, #tpu.memory_space<vmem>>, vector<1x1x4x4xf32>
    %202 = vector.shape_cast %201 : vector<1x1x4x4xf32> to vector<4x4xf32>
    %203 = vector.shape_cast %200 : vector<4x4xf32> to vector<1x1x4x4xf32>
    tpu.vector_store %arg12[%c0_264, %c11_265, %c0_266, %c0_267], %203 {strides = array<i32>} : memref<2x32x4x4xf32, #tpu.memory_space<vmem>>, vector<1x1x4x4xf32>,
    %204 = vector.extract_strided_slice %155 {offsets = [0, 48], sizes = [4, 4], strides = [1, 1]} : vector<8x128xf32> to vector<4x4xf32>
    %c0_268 = arith.constant 0 : index
    %c12_269 = arith.constant 12 : index
    %c0_270 = arith.constant 0 : index
    %c0_271 = arith.constant 0 : index
    %205 = vector.load %arg12[%c0_268, %c12_269, %c0_270, %c0_271] : memref<2x32x4x4xf32, #tpu.memory_space<vmem>>, vector<1x1x4x4xf32>
    %206 = vector.shape_cast %205 : vector<1x1x4x4xf32> to vector<4x4xf32>
    %207 = vector.shape_cast %204 : vector<4x4xf32> to vector<1x1x4x4xf32>
    tpu.vector_store %arg12[%c0_268, %c12_269, %c0_270, %c0_271], %207 {strides = array<i32>} : memref<2x32x4x4xf32, #tpu.memory_space<vmem>>, vector<1x1x4x4xf32>,
    %208 = vector.extract_strided_slice %155 {offsets = [0, 52], sizes = [4, 4], strides = [1, 1]} : vector<8x128xf32> to vector<4x4xf32>
    %c0_272 = arith.constant 0 : index
    %c13_273 = arith.constant 13 : index
    %c0_274 = arith.constant 0 : index
    %c0_275 = arith.constant 0 : index
    %209 = vector.load %arg12[%c0_272, %c13_273, %c0_274, %c0_275] : memref<2x32x4x4xf32, #tpu.memory_space<vmem>>, vector<1x1x4x4xf32>
    %210 = vector.shape_cast %209 : vector<1x1x4x4xf32> to vector<4x4xf32>
    %211 = vector.shape_cast %208 : vector<4x4xf32> to vector<1x1x4x4xf32>
    tpu.vector_store %arg12[%c0_272, %c13_273, %c0_274, %c0_275], %211 {strides = array<i32>} : memref<2x32x4x4xf32, #tpu.memory_space<vmem>>, vector<1x1x4x4xf32>,
    %212 = vector.extract_strided_slice %155 {offsets = [0, 56], sizes = [4, 4], strides = [1, 1]} : vector<8x128xf32> to vector<4x4xf32>
    %c0_276 = arith.constant 0 : index
    %c14 = arith.constant 14 : index
    %c0_277 = arith.constant 0 : index
    %c0_278 = arith.constant 0 : index
    %213 = vector.load %arg12[%c0_276, %c14, %c0_277, %c0_278] : memref<2x32x4x4xf32, #tpu.memory_space<vmem>>, vector<1x1x4x4xf32>
    %214 = vector.shape_cast %213 : vector<1x1x4x4xf32> to vector<4x4xf32>
    %215 = vector.shape_cast %212 : vector<4x4xf32> to vector<1x1x4x4xf32>
    tpu.vector_store %arg12[%c0_276, %c14, %c0_277, %c0_278], %215 {strides = array<i32>} : memref<2x32x4x4xf32, #tpu.memory_space<vmem>>, vector<1x1x4x4xf32>,
    %216 = vector.extract_strided_slice %155 {offsets = [0, 60], sizes = [4, 4], strides = [1, 1]} : vector<8x128xf32> to vector<4x4xf32>
    %c0_279 = arith.constant 0 : index
    %c15 = arith.constant 15 : index
    %c0_280 = arith.constant 0 : index
    %c0_281 = arith.constant 0 : index
    %217 = vector.load %arg12[%c0_279, %c15, %c0_280, %c0_281] : memref<2x32x4x4xf32, #tpu.memory_space<vmem>>, vector<1x1x4x4xf32>
    %218 = vector.shape_cast %217 : vector<1x1x4x4xf32> to vector<4x4xf32>
    %219 = vector.shape_cast %216 : vector<4x4xf32> to vector<1x1x4x4xf32>
    tpu.vector_store %arg12[%c0_279, %c15, %c0_280, %c0_281], %219 {strides = array<i32>} : memref<2x32x4x4xf32, #tpu.memory_space<vmem>>, vector<1x1x4x4xf32>,
    %220 = vector.extract_strided_slice %155 {offsets = [0, 64], sizes = [4, 4], strides = [1, 1]} : vector<8x128xf32> to vector<4x4xf32>
    %c0_282 = arith.constant 0 : index
    %c16_283 = arith.constant 16 : index
    %c0_284 = arith.constant 0 : index
    %c0_285 = arith.constant 0 : index
    %221 = vector.load %arg12[%c0_282, %c16_283, %c0_284, %c0_285] : memref<2x32x4x4xf32, #tpu.memory_space<vmem>>, vector<1x1x4x4xf32>
    %222 = vector.shape_cast %221 : vector<1x1x4x4xf32> to vector<4x4xf32>
    %223 = vector.shape_cast %220 : vector<4x4xf32> to vector<1x1x4x4xf32>
    tpu.vector_store %arg12[%c0_282, %c16_283, %c0_284, %c0_285], %223 {strides = array<i32>} : memref<2x32x4x4xf32, #tpu.memory_space<vmem>>, vector<1x1x4x4xf32>,
    %224 = vector.extract_strided_slice %155 {offsets = [0, 68], sizes = [4, 4], strides = [1, 1]} : vector<8x128xf32> to vector<4x4xf32>
    %c0_286 = arith.constant 0 : index
    %c17 = arith.constant 17 : index
    %c0_287 = arith.constant 0 : index
    %c0_288 = arith.constant 0 : index
    %225 = vector.load %arg12[%c0_286, %c17, %c0_287, %c0_288] : memref<2x32x4x4xf32, #tpu.memory_space<vmem>>, vector<1x1x4x4xf32>
    %226 = vector.shape_cast %225 : vector<1x1x4x4xf32> to vector<4x4xf32>
    %227 = vector.shape_cast %224 : vector<4x4xf32> to vector<1x1x4x4xf32>
    tpu.vector_store %arg12[%c0_286, %c17, %c0_287, %c0_288], %227 {strides = array<i32>} : memref<2x32x4x4xf32, #tpu.memory_space<vmem>>, vector<1x1x4x4xf32>,
    %228 = vector.extract_strided_slice %155 {offsets = [0, 72], sizes = [4, 4], strides = [1, 1]} : vector<8x128xf32> to vector<4x4xf32>
    %c0_289 = arith.constant 0 : index
    %c18_290 = arith.constant 18 : index
    %c0_291 = arith.constant 0 : index
    %c0_292 = arith.constant 0 : index
    %229 = vector.load %arg12[%c0_289, %c18_290, %c0_291, %c0_292] : memref<2x32x4x4xf32, #tpu.memory_space<vmem>>, vector<1x1x4x4xf32>
    %230 = vector.shape_cast %229 : vector<1x1x4x4xf32> to vector<4x4xf32>
    %231 = vector.shape_cast %228 : vector<4x4xf32> to vector<1x1x4x4xf32>
    tpu.vector_store %arg12[%c0_289, %c18_290, %c0_291, %c0_292], %231 {strides = array<i32>} : memref<2x32x4x4xf32, #tpu.memory_space<vmem>>, vector<1x1x4x4xf32>,
    %232 = vector.extract_strided_slice %155 {offsets = [0, 76], sizes = [4, 4], strides = [1, 1]} : vector<8x128xf32> to vector<4x4xf32>
    %c0_293 = arith.constant 0 : index
    %c19_294 = arith.constant 19 : index
    %c0_295 = arith.constant 0 : index
    %c0_296 = arith.constant 0 : index
    %233 = vector.load %arg12[%c0_293, %c19_294, %c0_295, %c0_296] : memref<2x32x4x4xf32, #tpu.memory_space<vmem>>, vector<1x1x4x4xf32>
    %234 = vector.shape_cast %233 : vector<1x1x4x4xf32> to vector<4x4xf32>
    %235 = vector.shape_cast %232 : vector<4x4xf32> to vector<1x1x4x4xf32>
    tpu.vector_store %arg12[%c0_293, %c19_294, %c0_295, %c0_296], %235 {strides = array<i32>} : memref<2x32x4x4xf32, #tpu.memory_space<vmem>>, vector<1x1x4x4xf32>,
    %236 = vector.extract_strided_slice %155 {offsets = [0, 80], sizes = [4, 4], strides = [1, 1]} : vector<8x128xf32> to vector<4x4xf32>
    %c0_297 = arith.constant 0 : index
    %c20_298 = arith.constant 20 : index
    %c0_299 = arith.constant 0 : index
    %c0_300 = arith.constant 0 : index
    %237 = vector.load %arg12[%c0_297, %c20_298, %c0_299, %c0_300] : memref<2x32x4x4xf32, #tpu.memory_space<vmem>>, vector<1x1x4x4xf32>
    %238 = vector.shape_cast %237 : vector<1x1x4x4xf32> to vector<4x4xf32>
    %239 = vector.shape_cast %236 : vector<4x4xf32> to vector<1x1x4x4xf32>
    tpu.vector_store %arg12[%c0_297, %c20_298, %c0_299, %c0_300], %239 {strides = array<i32>} : memref<2x32x4x4xf32, #tpu.memory_space<vmem>>, vector<1x1x4x4xf32>,
    %240 = vector.extract_strided_slice %155 {offsets = [0, 84], sizes = [4, 4], strides = [1, 1]} : vector<8x128xf32> to vector<4x4xf32>
    %c0_301 = arith.constant 0 : index
    %c21_302 = arith.constant 21 : index
    %c0_303 = arith.constant 0 : index
    %c0_304 = arith.constant 0 : index
    %241 = vector.load %arg12[%c0_301, %c21_302, %c0_303, %c0_304] : memref<2x32x4x4xf32, #tpu.memory_space<vmem>>, vector<1x1x4x4xf32>
    %242 = vector.shape_cast %241 : vector<1x1x4x4xf32> to vector<4x4xf32>
    %243 = vector.shape_cast %240 : vector<4x4xf32> to vector<1x1x4x4xf32>
    tpu.vector_store %arg12[%c0_301, %c21_302, %c0_303, %c0_304], %243 {strides = array<i32>} : memref<2x32x4x4xf32, #tpu.memory_space<vmem>>, vector<1x1x4x4xf32>,
    %244 = vector.extract_strided_slice %155 {offsets = [0, 88], sizes = [4, 4], strides = [1, 1]} : vector<8x128xf32> to vector<4x4xf32>
    %c0_305 = arith.constant 0 : index
    %c22 = arith.constant 22 : index
    %c0_306 = arith.constant 0 : index
    %c0_307 = arith.constant 0 : index
    %245 = vector.load %arg12[%c0_305, %c22, %c0_306, %c0_307] : memref<2x32x4x4xf32, #tpu.memory_space<vmem>>, vector<1x1x4x4xf32>
    %246 = vector.shape_cast %245 : vector<1x1x4x4xf32> to vector<4x4xf32>
    %247 = vector.shape_cast %244 : vector<4x4xf32> to vector<1x1x4x4xf32>
    tpu.vector_store %arg12[%c0_305, %c22, %c0_306, %c0_307], %247 {strides = array<i32>} : memref<2x32x4x4xf32, #tpu.memory_space<vmem>>, vector<1x1x4x4xf32>,
    %248 = vector.extract_strided_slice %155 {offsets = [0, 92], sizes = [4, 4], strides = [1, 1]} : vector<8x128xf32> to vector<4x4xf32>
    %c0_308 = arith.constant 0 : index
    %c23 = arith.constant 23 : index
    %c0_309 = arith.constant 0 : index
    %c0_310 = arith.constant 0 : index
    %249 = vector.load %arg12[%c0_308, %c23, %c0_309, %c0_310] : memref<2x32x4x4xf32, #tpu.memory_space<vmem>>, vector<1x1x4x4xf32>
    %250 = vector.shape_cast %249 : vector<1x1x4x4xf32> to vector<4x4xf32>
    %251 = vector.shape_cast %248 : vector<4x4xf32> to vector<1x1x4x4xf32>
    tpu.vector_store %arg12[%c0_308, %c23, %c0_309, %c0_310], %251 {strides = array<i32>} : memref<2x32x4x4xf32, #tpu.memory_space<vmem>>, vector<1x1x4x4xf32>,
    %252 = vector.extract_strided_slice %155 {offsets = [0, 96], sizes = [4, 4], strides = [1, 1]} : vector<8x128xf32> to vector<4x4xf32>
    %c0_311 = arith.constant 0 : index
    %c24 = arith.constant 24 : index
    %c0_312 = arith.constant 0 : index
    %c0_313 = arith.constant 0 : index
    %253 = vector.load %arg12[%c0_311, %c24, %c0_312, %c0_313] : memref<2x32x4x4xf32, #tpu.memory_space<vmem>>, vector<1x1x4x4xf32>
    %254 = vector.shape_cast %253 : vector<1x1x4x4xf32> to vector<4x4xf32>
    %255 = vector.shape_cast %252 : vector<4x4xf32> to vector<1x1x4x4xf32>
    tpu.vector_store %arg12[%c0_311, %c24, %c0_312, %c0_313], %255 {strides = array<i32>} : memref<2x32x4x4xf32, #tpu.memory_space<vmem>>, vector<1x1x4x4xf32>,
    %256 = vector.extract_strided_slice %155 {offsets = [0, 100], sizes = [4, 4], strides = [1, 1]} : vector<8x128xf32> to vector<4x4xf32>
    %c0_314 = arith.constant 0 : index
    %c25 = arith.constant 25 : index
    %c0_315 = arith.constant 0 : index
    %c0_316 = arith.constant 0 : index
    %257 = vector.load %arg12[%c0_314, %c25, %c0_315, %c0_316] : memref<2x32x4x4xf32, #tpu.memory_space<vmem>>, vector<1x1x4x4xf32>
    %258 = vector.shape_cast %257 : vector<1x1x4x4xf32> to vector<4x4xf32>
    %259 = vector.shape_cast %256 : vector<4x4xf32> to vector<1x1x4x4xf32>
    tpu.vector_store %arg12[%c0_314, %c25, %c0_315, %c0_316], %259 {strides = array<i32>} : memref<2x32x4x4xf32, #tpu.memory_space<vmem>>, vector<1x1x4x4xf32>,
    %260 = vector.extract_strided_slice %155 {offsets = [0, 104], sizes = [4, 4], strides = [1, 1]} : vector<8x128xf32> to vector<4x4xf32>
    %c0_317 = arith.constant 0 : index
    %c26 = arith.constant 26 : index
    %c0_318 = arith.constant 0 : index
    %c0_319 = arith.constant 0 : index
    %261 = vector.load %arg12[%c0_317, %c26, %c0_318, %c0_319] : memref<2x32x4x4xf32, #tpu.memory_space<vmem>>, vector<1x1x4x4xf32>
    %262 = vector.shape_cast %261 : vector<1x1x4x4xf32> to vector<4x4xf32>
    %263 = vector.shape_cast %260 : vector<4x4xf32> to vector<1x1x4x4xf32>
    tpu.vector_store %arg12[%c0_317, %c26, %c0_318, %c0_319], %263 {strides = array<i32>} : memref<2x32x4x4xf32, #tpu.memory_space<vmem>>, vector<1x1x4x4xf32>,
    %264 = vector.extract_strided_slice %155 {offsets = [0, 108], sizes = [4, 4], strides = [1, 1]} : vector<8x128xf32> to vector<4x4xf32>
    %c0_320 = arith.constant 0 : index
    %c27 = arith.constant 27 : index
    %c0_321 = arith.constant 0 : index
    %c0_322 = arith.constant 0 : index
    %265 = vector.load %arg12[%c0_320, %c27, %c0_321, %c0_322] : memref<2x32x4x4xf32, #tpu.memory_space<vmem>>, vector<1x1x4x4xf32>
    %266 = vector.shape_cast %265 : vector<1x1x4x4xf32> to vector<4x4xf32>
    %267 = vector.shape_cast %264 : vector<4x4xf32> to vector<1x1x4x4xf32>
    tpu.vector_store %arg12[%c0_320, %c27, %c0_321, %c0_322], %267 {strides = array<i32>} : memref<2x32x4x4xf32, #tpu.memory_space<vmem>>, vector<1x1x4x4xf32>,
    %268 = vector.extract_strided_slice %155 {offsets = [0, 112], sizes = [4, 4], strides = [1, 1]} : vector<8x128xf32> to vector<4x4xf32>
    %c0_323 = arith.constant 0 : index
    %c28 = arith.constant 28 : index
    %c0_324 = arith.constant 0 : index
    %c0_325 = arith.constant 0 : index
    %269 = vector.load %arg12[%c0_323, %c28, %c0_324, %c0_325] : memref<2x32x4x4xf32, #tpu.memory_space<vmem>>, vector<1x1x4x4xf32>
    %270 = vector.shape_cast %269 : vector<1x1x4x4xf32> to vector<4x4xf32>
    %271 = vector.shape_cast %268 : vector<4x4xf32> to vector<1x1x4x4xf32>
    tpu.vector_store %arg12[%c0_323, %c28, %c0_324, %c0_325], %271 {strides = array<i32>} : memref<2x32x4x4xf32, #tpu.memory_space<vmem>>, vector<1x1x4x4xf32>,
    %272 = vector.extract_strided_slice %155 {offsets = [0, 116], sizes = [4, 4], strides = [1, 1]} : vector<8x128xf32> to vector<4x4xf32>
    %c0_326 = arith.constant 0 : index
    %c29 = arith.constant 29 : index
    %c0_327 = arith.constant 0 : index
    %c0_328 = arith.constant 0 : index
    %273 = vector.load %arg12[%c0_326, %c29, %c0_327, %c0_328] : memref<2x32x4x4xf32, #tpu.memory_space<vmem>>, vector<1x1x4x4xf32>
    %274 = vector.shape_cast %273 : vector<1x1x4x4xf32> to vector<4x4xf32>
    %275 = vector.shape_cast %272 : vector<4x4xf32> to vector<1x1x4x4xf32>
    tpu.vector_store %arg12[%c0_326, %c29, %c0_327, %c0_328], %275 {strides = array<i32>} : memref<2x32x4x4xf32, #tpu.memory_space<vmem>>, vector<1x1x4x4xf32>,
    %276 = vector.extract_strided_slice %155 {offsets = [0, 120], sizes = [4, 4], strides = [1, 1]} : vector<8x128xf32> to vector<4x4xf32>
    %c0_329 = arith.constant 0 : index
    %c30 = arith.constant 30 : index
    %c0_330 = arith.constant 0 : index
    %c0_331 = arith.constant 0 : index
    %277 = vector.load %arg12[%c0_329, %c30, %c0_330, %c0_331] : memref<2x32x4x4xf32, #tpu.memory_space<vmem>>, vector<1x1x4x4xf32>
    %278 = vector.shape_cast %277 : vector<1x1x4x4xf32> to vector<4x4xf32>
    %279 = vector.shape_cast %276 : vector<4x4xf32> to vector<1x1x4x4xf32>
    tpu.vector_store %arg12[%c0_329, %c30, %c0_330, %c0_331], %279 {strides = array<i32>} : memref<2x32x4x4xf32, #tpu.memory_space<vmem>>, vector<1x1x4x4xf32>,
    %280 = vector.extract_strided_slice %155 {offsets = [0, 124], sizes = [4, 4], strides = [1, 1]} : vector<8x128xf32> to vector<4x4xf32>
    %c0_332 = arith.constant 0 : index
    %c31 = arith.constant 31 : index
    %c0_333 = arith.constant 0 : index
    %c0_334 = arith.constant 0 : index
    %281 = vector.load %arg12[%c0_332, %c31, %c0_333, %c0_334] : memref<2x32x4x4xf32, #tpu.memory_space<vmem>>, vector<1x1x4x4xf32>
    %282 = vector.shape_cast %281 : vector<1x1x4x4xf32> to vector<4x4xf32>
    %283 = vector.shape_cast %280 : vector<4x4xf32> to vector<1x1x4x4xf32>
    tpu.vector_store %arg12[%c0_332, %c31, %c0_333, %c0_334], %283 {strides = array<i32>} : memref<2x32x4x4xf32, #tpu.memory_space<vmem>>, vector<1x1x4x4xf32>,
    %284 = vector.extract_strided_slice %155 {offsets = [4, 0], sizes = [4, 4], strides = [1, 1]} : vector<8x128xf32> to vector<4x4xf32>
    %c1_335 = arith.constant 1 : index
    %c0_336 = arith.constant 0 : index
    %c0_337 = arith.constant 0 : index
    %c0_338 = arith.constant 0 : index
    %285 = vector.load %arg12[%c1_335, %c0_336, %c0_337, %c0_338] : memref<2x32x4x4xf32, #tpu.memory_space<vmem>>, vector<1x1x4x4xf32>
    %286 = vector.shape_cast %285 : vector<1x1x4x4xf32> to vector<4x4xf32>
    %287 = vector.shape_cast %284 : vector<4x4xf32> to vector<1x1x4x4xf32>
    tpu.vector_store %arg12[%c1_335, %c0_336, %c0_337, %c0_338], %287 {strides = array<i32>} : memref<2x32x4x4xf32, #tpu.memory_space<vmem>>, vector<1x1x4x4xf32>,
    %288 = vector.extract_strided_slice %155 {offsets = [4, 4], sizes = [4, 4], strides = [1, 1]} : vector<8x128xf32> to vector<4x4xf32>
    %c1_339 = arith.constant 1 : index
    %c1_340 = arith.constant 1 : index
    %c0_341 = arith.constant 0 : index
    %c0_342 = arith.constant 0 : index
    %289 = vector.load %arg12[%c1_339, %c1_340, %c0_341, %c0_342] : memref<2x32x4x4xf32, #tpu.memory_space<vmem>>, vector<1x1x4x4xf32>
    %290 = vector.shape_cast %289 : vector<1x1x4x4xf32> to vector<4x4xf32>
    %291 = vector.shape_cast %288 : vector<4x4xf32> to vector<1x1x4x4xf32>
    tpu.vector_store %arg12[%c1_339, %c1_340, %c0_341, %c0_342], %291 {strides = array<i32>} : memref<2x32x4x4xf32, #tpu.memory_space<vmem>>, vector<1x1x4x4xf32>,
    %292 = vector.extract_strided_slice %155 {offsets = [4, 8], sizes = [4, 4], strides = [1, 1]} : vector<8x128xf32> to vector<4x4xf32>
    %c1_343 = arith.constant 1 : index
    %c2_344 = arith.constant 2 : index
    %c0_345 = arith.constant 0 : index
    %c0_346 = arith.constant 0 : index
    %293 = vector.load %arg12[%c1_343, %c2_344, %c0_345, %c0_346] : memref<2x32x4x4xf32, #tpu.memory_space<vmem>>, vector<1x1x4x4xf32>
    %294 = vector.shape_cast %293 : vector<1x1x4x4xf32> to vector<4x4xf32>
    %295 = vector.shape_cast %292 : vector<4x4xf32> to vector<1x1x4x4xf32>
    tpu.vector_store %arg12[%c1_343, %c2_344, %c0_345, %c0_346], %295 {strides = array<i32>} : memref<2x32x4x4xf32, #tpu.memory_space<vmem>>, vector<1x1x4x4xf32>,
    %296 = vector.extract_strided_slice %155 {offsets = [4, 12], sizes = [4, 4], strides = [1, 1]} : vector<8x128xf32> to vector<4x4xf32>
    %c1_347 = arith.constant 1 : index
    %c3_348 = arith.constant 3 : index
    %c0_349 = arith.constant 0 : index
    %c0_350 = arith.constant 0 : index
    %297 = vector.load %arg12[%c1_347, %c3_348, %c0_349, %c0_350] : memref<2x32x4x4xf32, #tpu.memory_space<vmem>>, vector<1x1x4x4xf32>
    %298 = vector.shape_cast %297 : vector<1x1x4x4xf32> to vector<4x4xf32>
    %299 = vector.shape_cast %296 : vector<4x4xf32> to vector<1x1x4x4xf32>
    tpu.vector_store %arg12[%c1_347, %c3_348, %c0_349, %c0_350], %299 {strides = array<i32>} : memref<2x32x4x4xf32, #tpu.memory_space<vmem>>, vector<1x1x4x4xf32>,
    %300 = vector.extract_strided_slice %155 {offsets = [4, 16], sizes = [4, 4], strides = [1, 1]} : vector<8x128xf32> to vector<4x4xf32>
    %c1_351 = arith.constant 1 : index
    %c4_352 = arith.constant 4 : index
    %c0_353 = arith.constant 0 : index
    %c0_354 = arith.constant 0 : index
    %301 = vector.load %arg12[%c1_351, %c4_352, %c0_353, %c0_354] : memref<2x32x4x4xf32, #tpu.memory_space<vmem>>, vector<1x1x4x4xf32>
    %302 = vector.shape_cast %301 : vector<1x1x4x4xf32> to vector<4x4xf32>
    %303 = vector.shape_cast %300 : vector<4x4xf32> to vector<1x1x4x4xf32>
    tpu.vector_store %arg12[%c1_351, %c4_352, %c0_353, %c0_354], %303 {strides = array<i32>} : memref<2x32x4x4xf32, #tpu.memory_space<vmem>>, vector<1x1x4x4xf32>,
    %304 = vector.extract_strided_slice %155 {offsets = [4, 20], sizes = [4, 4], strides = [1, 1]} : vector<8x128xf32> to vector<4x4xf32>
    %c1_355 = arith.constant 1 : index
    %c5_356 = arith.constant 5 : index
    %c0_357 = arith.constant 0 : index
    %c0_358 = arith.constant 0 : index
    %305 = vector.load %arg12[%c1_355, %c5_356, %c0_357, %c0_358] : memref<2x32x4x4xf32, #tpu.memory_space<vmem>>, vector<1x1x4x4xf32>
    %306 = vector.shape_cast %305 : vector<1x1x4x4xf32> to vector<4x4xf32>
    %307 = vector.shape_cast %304 : vector<4x4xf32> to vector<1x1x4x4xf32>
    tpu.vector_store %arg12[%c1_355, %c5_356, %c0_357, %c0_358], %307 {strides = array<i32>} : memref<2x32x4x4xf32, #tpu.memory_space<vmem>>, vector<1x1x4x4xf32>,
    %308 = vector.extract_strided_slice %155 {offsets = [4, 24], sizes = [4, 4], strides = [1, 1]} : vector<8x128xf32> to vector<4x4xf32>
    %c1_359 = arith.constant 1 : index
    %c6_360 = arith.constant 6 : index
    %c0_361 = arith.constant 0 : index
    %c0_362 = arith.constant 0 : index
    %309 = vector.load %arg12[%c1_359, %c6_360, %c0_361, %c0_362] : memref<2x32x4x4xf32, #tpu.memory_space<vmem>>, vector<1x1x4x4xf32>
    %310 = vector.shape_cast %309 : vector<1x1x4x4xf32> to vector<4x4xf32>
    %311 = vector.shape_cast %308 : vector<4x4xf32> to vector<1x1x4x4xf32>
    tpu.vector_store %arg12[%c1_359, %c6_360, %c0_361, %c0_362], %311 {strides = array<i32>} : memref<2x32x4x4xf32, #tpu.memory_space<vmem>>, vector<1x1x4x4xf32>,
    %312 = vector.extract_strided_slice %155 {offsets = [4, 28], sizes = [4, 4], strides = [1, 1]} : vector<8x128xf32> to vector<4x4xf32>
    %c1_363 = arith.constant 1 : index
    %c7_364 = arith.constant 7 : index
    %c0_365 = arith.constant 0 : index
    %c0_366 = arith.constant 0 : index
    %313 = vector.load %arg12[%c1_363, %c7_364, %c0_365, %c0_366] : memref<2x32x4x4xf32, #tpu.memory_space<vmem>>, vector<1x1x4x4xf32>
    %314 = vector.shape_cast %313 : vector<1x1x4x4xf32> to vector<4x4xf32>
    %315 = vector.shape_cast %312 : vector<4x4xf32> to vector<1x1x4x4xf32>
    tpu.vector_store %arg12[%c1_363, %c7_364, %c0_365, %c0_366], %315 {strides = array<i32>} : memref<2x32x4x4xf32, #tpu.memory_space<vmem>>, vector<1x1x4x4xf32>,
    %316 = vector.extract_strided_slice %155 {offsets = [4, 32], sizes = [4, 4], strides = [1, 1]} : vector<8x128xf32> to vector<4x4xf32>
    %c1_367 = arith.constant 1 : index
    %c8_368 = arith.constant 8 : index
    %c0_369 = arith.constant 0 : index
    %c0_370 = arith.constant 0 : index
    %317 = vector.load %arg12[%c1_367, %c8_368, %c0_369, %c0_370] : memref<2x32x4x4xf32, #tpu.memory_space<vmem>>, vector<1x1x4x4xf32>
    %318 = vector.shape_cast %317 : vector<1x1x4x4xf32> to vector<4x4xf32>
    %319 = vector.shape_cast %316 : vector<4x4xf32> to vector<1x1x4x4xf32>
    tpu.vector_store %arg12[%c1_367, %c8_368, %c0_369, %c0_370], %319 {strides = array<i32>} : memref<2x32x4x4xf32, #tpu.memory_space<vmem>>, vector<1x1x4x4xf32>,
    %320 = vector.extract_strided_slice %155 {offsets = [4, 36], sizes = [4, 4], strides = [1, 1]} : vector<8x128xf32> to vector<4x4xf32>
    %c1_371 = arith.constant 1 : index
    %c9_372 = arith.constant 9 : index
    %c0_373 = arith.constant 0 : index
    %c0_374 = arith.constant 0 : index
    %321 = vector.load %arg12[%c1_371, %c9_372, %c0_373, %c0_374] : memref<2x32x4x4xf32, #tpu.memory_space<vmem>>, vector<1x1x4x4xf32>
    %322 = vector.shape_cast %321 : vector<1x1x4x4xf32> to vector<4x4xf32>
    %323 = vector.shape_cast %320 : vector<4x4xf32> to vector<1x1x4x4xf32>
    tpu.vector_store %arg12[%c1_371, %c9_372, %c0_373, %c0_374], %323 {strides = array<i32>} : memref<2x32x4x4xf32, #tpu.memory_space<vmem>>, vector<1x1x4x4xf32>,
    %324 = vector.extract_strided_slice %155 {offsets = [4, 40], sizes = [4, 4], strides = [1, 1]} : vector<8x128xf32> to vector<4x4xf32>
    %c1_375 = arith.constant 1 : index
    %c10_376 = arith.constant 10 : index
    %c0_377 = arith.constant 0 : index
    %c0_378 = arith.constant 0 : index
    %325 = vector.load %arg12[%c1_375, %c10_376, %c0_377, %c0_378] : memref<2x32x4x4xf32, #tpu.memory_space<vmem>>, vector<1x1x4x4xf32>
    %326 = vector.shape_cast %325 : vector<1x1x4x4xf32> to vector<4x4xf32>
    %327 = vector.shape_cast %324 : vector<4x4xf32> to vector<1x1x4x4xf32>
    tpu.vector_store %arg12[%c1_375, %c10_376, %c0_377, %c0_378], %327 {strides = array<i32>} : memref<2x32x4x4xf32, #tpu.memory_space<vmem>>, vector<1x1x4x4xf32>,
    %328 = vector.extract_strided_slice %155 {offsets = [4, 44], sizes = [4, 4], strides = [1, 1]} : vector<8x128xf32> to vector<4x4xf32>
    %c1_379 = arith.constant 1 : index
    %c11_380 = arith.constant 11 : index
    %c0_381 = arith.constant 0 : index
    %c0_382 = arith.constant 0 : index
    %329 = vector.load %arg12[%c1_379, %c11_380, %c0_381, %c0_382] : memref<2x32x4x4xf32, #tpu.memory_space<vmem>>, vector<1x1x4x4xf32>
    %330 = vector.shape_cast %329 : vector<1x1x4x4xf32> to vector<4x4xf32>
    %331 = vector.shape_cast %328 : vector<4x4xf32> to vector<1x1x4x4xf32>
    tpu.vector_store %arg12[%c1_379, %c11_380, %c0_381, %c0_382], %331 {strides = array<i32>} : memref<2x32x4x4xf32, #tpu.memory_space<vmem>>, vector<1x1x4x4xf32>,
    %332 = vector.extract_strided_slice %155 {offsets = [4, 48], sizes = [4, 4], strides = [1, 1]} : vector<8x128xf32> to vector<4x4xf32>
    %c1_383 = arith.constant 1 : index
    %c12_384 = arith.constant 12 : index
    %c0_385 = arith.constant 0 : index
    %c0_386 = arith.constant 0 : index
    %333 = vector.load %arg12[%c1_383, %c12_384, %c0_385, %c0_386] : memref<2x32x4x4xf32, #tpu.memory_space<vmem>>, vector<1x1x4x4xf32>
    %334 = vector.shape_cast %333 : vector<1x1x4x4xf32> to vector<4x4xf32>
    %335 = vector.shape_cast %332 : vector<4x4xf32> to vector<1x1x4x4xf32>
    tpu.vector_store %arg12[%c1_383, %c12_384, %c0_385, %c0_386], %335 {strides = array<i32>} : memref<2x32x4x4xf32, #tpu.memory_space<vmem>>, vector<1x1x4x4xf32>,
    %336 = vector.extract_strided_slice %155 {offsets = [4, 52], sizes = [4, 4], strides = [1, 1]} : vector<8x128xf32> to vector<4x4xf32>
    %c1_387 = arith.constant 1 : index
    %c13_388 = arith.constant 13 : index
    %c0_389 = arith.constant 0 : index
    %c0_390 = arith.constant 0 : index
    %337 = vector.load %arg12[%c1_387, %c13_388, %c0_389, %c0_390] : memref<2x32x4x4xf32, #tpu.memory_space<vmem>>, vector<1x1x4x4xf32>
    %338 = vector.shape_cast %337 : vector<1x1x4x4xf32> to vector<4x4xf32>
    %339 = vector.shape_cast %336 : vector<4x4xf32> to vector<1x1x4x4xf32>
    tpu.vector_store %arg12[%c1_387, %c13_388, %c0_389, %c0_390], %339 {strides = array<i32>} : memref<2x32x4x4xf32, #tpu.memory_space<vmem>>, vector<1x1x4x4xf32>,
    %340 = vector.extract_strided_slice %155 {offsets = [4, 56], sizes = [4, 4], strides = [1, 1]} : vector<8x128xf32> to vector<4x4xf32>
    %c1_391 = arith.constant 1 : index
    %c14_392 = arith.constant 14 : index
    %c0_393 = arith.constant 0 : index
    %c0_394 = arith.constant 0 : index
    %341 = vector.load %arg12[%c1_391, %c14_392, %c0_393, %c0_394] : memref<2x32x4x4xf32, #tpu.memory_space<vmem>>, vector<1x1x4x4xf32>
    %342 = vector.shape_cast %341 : vector<1x1x4x4xf32> to vector<4x4xf32>
    %343 = vector.shape_cast %340 : vector<4x4xf32> to vector<1x1x4x4xf32>
    tpu.vector_store %arg12[%c1_391, %c14_392, %c0_393, %c0_394], %343 {strides = array<i32>} : memref<2x32x4x4xf32, #tpu.memory_space<vmem>>, vector<1x1x4x4xf32>,
    %344 = vector.extract_strided_slice %155 {offsets = [4, 60], sizes = [4, 4], strides = [1, 1]} : vector<8x128xf32> to vector<4x4xf32>
    %c1_395 = arith.constant 1 : index
    %c15_396 = arith.constant 15 : index
    %c0_397 = arith.constant 0 : index
    %c0_398 = arith.constant 0 : index
    %345 = vector.load %arg12[%c1_395, %c15_396, %c0_397, %c0_398] : memref<2x32x4x4xf32, #tpu.memory_space<vmem>>, vector<1x1x4x4xf32>
    %346 = vector.shape_cast %345 : vector<1x1x4x4xf32> to vector<4x4xf32>
    %347 = vector.shape_cast %344 : vector<4x4xf32> to vector<1x1x4x4xf32>
    tpu.vector_store %arg12[%c1_395, %c15_396, %c0_397, %c0_398], %347 {strides = array<i32>} : memref<2x32x4x4xf32, #tpu.memory_space<vmem>>, vector<1x1x4x4xf32>,
    %348 = vector.extract_strided_slice %155 {offsets = [4, 64], sizes = [4, 4], strides = [1, 1]} : vector<8x128xf32> to vector<4x4xf32>
    %c1_399 = arith.constant 1 : index
    %c16_400 = arith.constant 16 : index
    %c0_401 = arith.constant 0 : index
    %c0_402 = arith.constant 0 : index
    %349 = vector.load %arg12[%c1_399, %c16_400, %c0_401, %c0_402] : memref<2x32x4x4xf32, #tpu.memory_space<vmem>>, vector<1x1x4x4xf32>
    %350 = vector.shape_cast %349 : vector<1x1x4x4xf32> to vector<4x4xf32>
    %351 = vector.shape_cast %348 : vector<4x4xf32> to vector<1x1x4x4xf32>
    tpu.vector_store %arg12[%c1_399, %c16_400, %c0_401, %c0_402], %351 {strides = array<i32>} : memref<2x32x4x4xf32, #tpu.memory_space<vmem>>, vector<1x1x4x4xf32>,
    %352 = vector.extract_strided_slice %155 {offsets = [4, 68], sizes = [4, 4], strides = [1, 1]} : vector<8x128xf32> to vector<4x4xf32>
    %c1_403 = arith.constant 1 : index
    %c17_404 = arith.constant 17 : index
    %c0_405 = arith.constant 0 : index
    %c0_406 = arith.constant 0 : index
    %353 = vector.load %arg12[%c1_403, %c17_404, %c0_405, %c0_406] : memref<2x32x4x4xf32, #tpu.memory_space<vmem>>, vector<1x1x4x4xf32>
    %354 = vector.shape_cast %353 : vector<1x1x4x4xf32> to vector<4x4xf32>
    %355 = vector.shape_cast %352 : vector<4x4xf32> to vector<1x1x4x4xf32>
    tpu.vector_store %arg12[%c1_403, %c17_404, %c0_405, %c0_406], %355 {strides = array<i32>} : memref<2x32x4x4xf32, #tpu.memory_space<vmem>>, vector<1x1x4x4xf32>,
    %356 = vector.extract_strided_slice %155 {offsets = [4, 72], sizes = [4, 4], strides = [1, 1]} : vector<8x128xf32> to vector<4x4xf32>
    %c1_407 = arith.constant 1 : index
    %c18_408 = arith.constant 18 : index
    %c0_409 = arith.constant 0 : index
    %c0_410 = arith.constant 0 : index
    %357 = vector.load %arg12[%c1_407, %c18_408, %c0_409, %c0_410] : memref<2x32x4x4xf32, #tpu.memory_space<vmem>>, vector<1x1x4x4xf32>
    %358 = vector.shape_cast %357 : vector<1x1x4x4xf32> to vector<4x4xf32>
    %359 = vector.shape_cast %356 : vector<4x4xf32> to vector<1x1x4x4xf32>
    tpu.vector_store %arg12[%c1_407, %c18_408, %c0_409, %c0_410], %359 {strides = array<i32>} : memref<2x32x4x4xf32, #tpu.memory_space<vmem>>, vector<1x1x4x4xf32>,
    %360 = vector.extract_strided_slice %155 {offsets = [4, 76], sizes = [4, 4], strides = [1, 1]} : vector<8x128xf32> to vector<4x4xf32>
    %c1_411 = arith.constant 1 : index
    %c19_412 = arith.constant 19 : index
    %c0_413 = arith.constant 0 : index
    %c0_414 = arith.constant 0 : index
    %361 = vector.load %arg12[%c1_411, %c19_412, %c0_413, %c0_414] : memref<2x32x4x4xf32, #tpu.memory_space<vmem>>, vector<1x1x4x4xf32>
    %362 = vector.shape_cast %361 : vector<1x1x4x4xf32> to vector<4x4xf32>
    %363 = vector.shape_cast %360 : vector<4x4xf32> to vector<1x1x4x4xf32>
    tpu.vector_store %arg12[%c1_411, %c19_412, %c0_413, %c0_414], %363 {strides = array<i32>} : memref<2x32x4x4xf32, #tpu.memory_space<vmem>>, vector<1x1x4x4xf32>,
    %364 = vector.extract_strided_slice %155 {offsets = [4, 80], sizes = [4, 4], strides = [1, 1]} : vector<8x128xf32> to vector<4x4xf32>
    %c1_415 = arith.constant 1 : index
    %c20_416 = arith.constant 20 : index
    %c0_417 = arith.constant 0 : index
    %c0_418 = arith.constant 0 : index
    %365 = vector.load %arg12[%c1_415, %c20_416, %c0_417, %c0_418] : memref<2x32x4x4xf32, #tpu.memory_space<vmem>>, vector<1x1x4x4xf32>
    %366 = vector.shape_cast %365 : vector<1x1x4x4xf32> to vector<4x4xf32>
    %367 = vector.shape_cast %364 : vector<4x4xf32> to vector<1x1x4x4xf32>
    tpu.vector_store %arg12[%c1_415, %c20_416, %c0_417, %c0_418], %367 {strides = array<i32>} : memref<2x32x4x4xf32, #tpu.memory_space<vmem>>, vector<1x1x4x4xf32>,
    %368 = vector.extract_strided_slice %155 {offsets = [4, 84], sizes = [4, 4], strides = [1, 1]} : vector<8x128xf32> to vector<4x4xf32>
    %c1_419 = arith.constant 1 : index
    %c21_420 = arith.constant 21 : index
    %c0_421 = arith.constant 0 : index
    %c0_422 = arith.constant 0 : index
    %369 = vector.load %arg12[%c1_419, %c21_420, %c0_421, %c0_422] : memref<2x32x4x4xf32, #tpu.memory_space<vmem>>, vector<1x1x4x4xf32>
    %370 = vector.shape_cast %369 : vector<1x1x4x4xf32> to vector<4x4xf32>
    %371 = vector.shape_cast %368 : vector<4x4xf32> to vector<1x1x4x4xf32>
    tpu.vector_store %arg12[%c1_419, %c21_420, %c0_421, %c0_422], %371 {strides = array<i32>} : memref<2x32x4x4xf32, #tpu.memory_space<vmem>>, vector<1x1x4x4xf32>,
    %372 = vector.extract_strided_slice %155 {offsets = [4, 88], sizes = [4, 4], strides = [1, 1]} : vector<8x128xf32> to vector<4x4xf32>
    %c1_423 = arith.constant 1 : index
    %c22_424 = arith.constant 22 : index
    %c0_425 = arith.constant 0 : index
    %c0_426 = arith.constant 0 : index
    %373 = vector.load %arg12[%c1_423, %c22_424, %c0_425, %c0_426] : memref<2x32x4x4xf32, #tpu.memory_space<vmem>>, vector<1x1x4x4xf32>
    %374 = vector.shape_cast %373 : vector<1x1x4x4xf32> to vector<4x4xf32>
    %375 = vector.shape_cast %372 : vector<4x4xf32> to vector<1x1x4x4xf32>
    tpu.vector_store %arg12[%c1_423, %c22_424, %c0_425, %c0_426], %375 {strides = array<i32>} : memref<2x32x4x4xf32, #tpu.memory_space<vmem>>, vector<1x1x4x4xf32>,
    %376 = vector.extract_strided_slice %155 {offsets = [4, 92], sizes = [4, 4], strides = [1, 1]} : vector<8x128xf32> to vector<4x4xf32>
    %c1_427 = arith.constant 1 : index
    %c23_428 = arith.constant 23 : index
    %c0_429 = arith.constant 0 : index
    %c0_430 = arith.constant 0 : index
    %377 = vector.load %arg12[%c1_427, %c23_428, %c0_429, %c0_430] : memref<2x32x4x4xf32, #tpu.memory_space<vmem>>, vector<1x1x4x4xf32>
    %378 = vector.shape_cast %377 : vector<1x1x4x4xf32> to vector<4x4xf32>
    %379 = vector.shape_cast %376 : vector<4x4xf32> to vector<1x1x4x4xf32>
    tpu.vector_store %arg12[%c1_427, %c23_428, %c0_429, %c0_430], %379 {strides = array<i32>} : memref<2x32x4x4xf32, #tpu.memory_space<vmem>>, vector<1x1x4x4xf32>,
    %380 = vector.extract_strided_slice %155 {offsets = [4, 96], sizes = [4, 4], strides = [1, 1]} : vector<8x128xf32> to vector<4x4xf32>
    %c1_431 = arith.constant 1 : index
    %c24_432 = arith.constant 24 : index
    %c0_433 = arith.constant 0 : index
    %c0_434 = arith.constant 0 : index
    %381 = vector.load %arg12[%c1_431, %c24_432, %c0_433, %c0_434] : memref<2x32x4x4xf32, #tpu.memory_space<vmem>>, vector<1x1x4x4xf32>
    %382 = vector.shape_cast %381 : vector<1x1x4x4xf32> to vector<4x4xf32>
    %383 = vector.shape_cast %380 : vector<4x4xf32> to vector<1x1x4x4xf32>
    tpu.vector_store %arg12[%c1_431, %c24_432, %c0_433, %c0_434], %383 {strides = array<i32>} : memref<2x32x4x4xf32, #tpu.memory_space<vmem>>, vector<1x1x4x4xf32>,
    %384 = vector.extract_strided_slice %155 {offsets = [4, 100], sizes = [4, 4], strides = [1, 1]} : vector<8x128xf32> to vector<4x4xf32>
    %c1_435 = arith.constant 1 : index
    %c25_436 = arith.constant 25 : index
    %c0_437 = arith.constant 0 : index
    %c0_438 = arith.constant 0 : index
    %385 = vector.load %arg12[%c1_435, %c25_436, %c0_437, %c0_438] : memref<2x32x4x4xf32, #tpu.memory_space<vmem>>, vector<1x1x4x4xf32>
    %386 = vector.shape_cast %385 : vector<1x1x4x4xf32> to vector<4x4xf32>
    %387 = vector.shape_cast %384 : vector<4x4xf32> to vector<1x1x4x4xf32>
    tpu.vector_store %arg12[%c1_435, %c25_436, %c0_437, %c0_438], %387 {strides = array<i32>} : memref<2x32x4x4xf32, #tpu.memory_space<vmem>>, vector<1x1x4x4xf32>,
    %388 = vector.extract_strided_slice %155 {offsets = [4, 104], sizes = [4, 4], strides = [1, 1]} : vector<8x128xf32> to vector<4x4xf32>
    %c1_439 = arith.constant 1 : index
    %c26_440 = arith.constant 26 : index
    %c0_441 = arith.constant 0 : index
    %c0_442 = arith.constant 0 : index
    %389 = vector.load %arg12[%c1_439, %c26_440, %c0_441, %c0_442] : memref<2x32x4x4xf32, #tpu.memory_space<vmem>>, vector<1x1x4x4xf32>
    %390 = vector.shape_cast %389 : vector<1x1x4x4xf32> to vector<4x4xf32>
    %391 = vector.shape_cast %388 : vector<4x4xf32> to vector<1x1x4x4xf32>
    tpu.vector_store %arg12[%c1_439, %c26_440, %c0_441, %c0_442], %391 {strides = array<i32>} : memref<2x32x4x4xf32, #tpu.memory_space<vmem>>, vector<1x1x4x4xf32>,
    %392 = vector.extract_strided_slice %155 {offsets = [4, 108], sizes = [4, 4], strides = [1, 1]} : vector<8x128xf32> to vector<4x4xf32>
    %c1_443 = arith.constant 1 : index
    %c27_444 = arith.constant 27 : index
    %c0_445 = arith.constant 0 : index
    %c0_446 = arith.constant 0 : index
    %393 = vector.load %arg12[%c1_443, %c27_444, %c0_445, %c0_446] : memref<2x32x4x4xf32, #tpu.memory_space<vmem>>, vector<1x1x4x4xf32>
    %394 = vector.shape_cast %393 : vector<1x1x4x4xf32> to vector<4x4xf32>
    %395 = vector.shape_cast %392 : vector<4x4xf32> to vector<1x1x4x4xf32>
    tpu.vector_store %arg12[%c1_443, %c27_444, %c0_445, %c0_446], %395 {strides = array<i32>} : memref<2x32x4x4xf32, #tpu.memory_space<vmem>>, vector<1x1x4x4xf32>,
    %396 = vector.extract_strided_slice %155 {offsets = [4, 112], sizes = [4, 4], strides = [1, 1]} : vector<8x128xf32> to vector<4x4xf32>
    %c1_447 = arith.constant 1 : index
    %c28_448 = arith.constant 28 : index
    %c0_449 = arith.constant 0 : index
    %c0_450 = arith.constant 0 : index
    %397 = vector.load %arg12[%c1_447, %c28_448, %c0_449, %c0_450] : memref<2x32x4x4xf32, #tpu.memory_space<vmem>>, vector<1x1x4x4xf32>
    %398 = vector.shape_cast %397 : vector<1x1x4x4xf32> to vector<4x4xf32>
    %399 = vector.shape_cast %396 : vector<4x4xf32> to vector<1x1x4x4xf32>
    tpu.vector_store %arg12[%c1_447, %c28_448, %c0_449, %c0_450], %399 {strides = array<i32>} : memref<2x32x4x4xf32, #tpu.memory_space<vmem>>, vector<1x1x4x4xf32>,
    %400 = vector.extract_strided_slice %155 {offsets = [4, 116], sizes = [4, 4], strides = [1, 1]} : vector<8x128xf32> to vector<4x4xf32>
    %c1_451 = arith.constant 1 : index
    %c29_452 = arith.constant 29 : index
    %c0_453 = arith.constant 0 : index
    %c0_454 = arith.constant 0 : index
    %401 = vector.load %arg12[%c1_451, %c29_452, %c0_453, %c0_454] : memref<2x32x4x4xf32, #tpu.memory_space<vmem>>, vector<1x1x4x4xf32>
    %402 = vector.shape_cast %401 : vector<1x1x4x4xf32> to vector<4x4xf32>
    %403 = vector.shape_cast %400 : vector<4x4xf32> to vector<1x1x4x4xf32>
    tpu.vector_store %arg12[%c1_451, %c29_452, %c0_453, %c0_454], %403 {strides = array<i32>} : memref<2x32x4x4xf32, #tpu.memory_space<vmem>>, vector<1x1x4x4xf32>,
    %404 = vector.extract_strided_slice %155 {offsets = [4, 120], sizes = [4, 4], strides = [1, 1]} : vector<8x128xf32> to vector<4x4xf32>
    %c1_455 = arith.constant 1 : index
    %c30_456 = arith.constant 30 : index
    %c0_457 = arith.constant 0 : index
    %c0_458 = arith.constant 0 : index
    %405 = vector.load %arg12[%c1_455, %c30_456, %c0_457, %c0_458] : memref<2x32x4x4xf32, #tpu.memory_space<vmem>>, vector<1x1x4x4xf32>
    %406 = vector.shape_cast %405 : vector<1x1x4x4xf32> to vector<4x4xf32>
    %407 = vector.shape_cast %404 : vector<4x4xf32> to vector<1x1x4x4xf32>
    tpu.vector_store %arg12[%c1_455, %c30_456, %c0_457, %c0_458], %407 {strides = array<i32>} : memref<2x32x4x4xf32, #tpu.memory_space<vmem>>, vector<1x1x4x4xf32>,
    %408 = vector.extract_strided_slice %155 {offsets = [4, 124], sizes = [4, 4], strides = [1, 1]} : vector<8x128xf32> to vector<4x4xf32>
    %c1_459 = arith.constant 1 : index
    %c31_460 = arith.constant 31 : index
    %c0_461 = arith.constant 0 : index
    %c0_462 = arith.constant 0 : index
    %409 = vector.load %arg12[%c1_459, %c31_460, %c0_461, %c0_462] : memref<2x32x4x4xf32, #tpu.memory_space<vmem>>, vector<1x1x4x4xf32>
    %410 = vector.shape_cast %409 : vector<1x1x4x4xf32> to vector<4x4xf32>
    %411 = vector.shape_cast %408 : vector<4x4xf32> to vector<1x1x4x4xf32>
    tpu.vector_store %arg12[%c1_459, %c31_460, %c0_461, %c0_462], %411 {strides = array<i32>} : memref<2x32x4x4xf32, #tpu.memory_space<vmem>>, vector<1x1x4x4xf32>,
    return
  }
  func.func @transform_0(%arg0: i32) -> (i32, i32, i32, i32) {
    %c0_i32 = arith.constant 0 : i32
    %c0_i32_0 = arith.constant 0 : i32
    %c0_i32_1 = arith.constant 0 : i32
    %c0_i32_2 = arith.constant 0 : i32
    %c0_i32_3 = arith.constant 0 : i32
    return %c0_i32, %c0_i32_0, %c0_i32_1, %c0_i32_2 : i32, i32, i32, i32
  }
  func.func @transform_1(%arg0: i32) -> (i32, i32) {
    %c0_i32 = arith.constant 0 : i32
    %c0_i32_0 = arith.constant 0 : i32
    %c0_i32_1 = arith.constant 0 : i32
    return %c0_i32, %c0_i32_0 : i32, i32
  }
  func.func @transform_2(%arg0: i32) -> (i32, i32) {
    %c0_i32 = arith.constant 0 : i32
    %c0_i32_0 = arith.constant 0 : i32
    %c0_i32_1 = arith.constant 0 : i32
    return %c0_i32, %c0_i32_0 : i32, i32
  }
  func.func @transform_3(%arg0: i32) -> (i32, i32) {
    %c0_i32 = arith.constant 0 : i32
    %c0_i32_0 = arith.constant 0 : i32
    %c0_i32_1 = arith.constant 0 : i32
    return %c0_i32, %c0_i32_0 : i32, i32
  }
  func.func @transform_4(%arg0: i32) -> (i32, i32) {
    %c0_i32 = arith.constant 0 : i32
    %c0_i32_0 = arith.constant 0 : i32
    %c0_i32_1 = arith.constant 0 : i32
    return %c0_i32, %c0_i32_0 : i32, i32
  }
  func.func @transform_5(%arg0: i32) -> (i32, i32) {
    %c0_i32 = arith.constant 0 : i32
    %c0_i32_0 = arith.constant 0 : i32
    %c0_i32_1 = arith.constant 0 : i32
    return %c0_i32, %c0_i32_0 : i32, i32
  }
  func.func @transform_6(%arg0: i32) -> (i32, i32) {
    %c0_i32 = arith.constant 0 : i32
    %c0_i32_0 = arith.constant 0 : i32
    %c0_i32_1 = arith.constant 0 : i32
    return %c0_i32, %c0_i32_0 : i32, i32
  }
  func.func @transform_7(%arg0: i32) -> (i32, i32) {
    %c0_i32 = arith.constant 0 : i32
    %c0_i32_0 = arith.constant 0 : i32
    %c0_i32_1 = arith.constant 0 : i32
    return %c0_i32, %c0_i32_0 : i32, i32
  }
  func.func @transform_8(%arg0: i32) -> (i32, i32) {
    %c0_i32 = arith.constant 0 : i32
    %c0_i32_0 = arith.constant 0 : i32
    %c0_i32_1 = arith.constant 0 : i32
    return %c0_i32, %c0_i32_0 : i32, i32
  }
  func.func @transform_9(%arg0: i32) -> (i32, i32) {
    %c0_i32 = arith.constant 0 : i32
    %c0_i32_0 = arith.constant 0 : i32
    %c0_i32_1 = arith.constant 0 : i32
    return %c0_i32, %c0_i32_0 : i32, i32
  }
  func.func @transform_10(%arg0: i32) -> (i32, i32) {
    %c0_i32 = arith.constant 0 : i32
    %c0_i32_0 = arith.constant 0 : i32
    %c0_i32_1 = arith.constant 0 : i32
    return %c0_i32, %c0_i32_0 : i32, i32
  }
  func.func @transform_11(%arg0: i32) -> (i32, i32, i32, i32) {
    %c0_i32 = arith.constant 0 : i32
    %c0_i32_0 = arith.constant 0 : i32
    %c0_i32_1 = arith.constant 0 : i32
    %c0_i32_2 = arith.constant 0 : i32
    %c0_i32_3 = arith.constant 0 : i32
    return %c0_i32, %c0_i32_0, %c0_i32_1, %c0_i32_2 : i32, i32, i32, i32
  }
}

</mosaic_0001>

<bundles_post_ra>
// kernel: forward.1
= control target key start
LH: loop header
LB: loop body
LE: loop exit
PB: predicated region body
PF: predicated region fallthrough
CT: control target
= control target key end

     0   :  { %16 = vsyncpa [#allocation13], 0  ;;  %s3290_s0 = inlined_call_operand.hbm [shape: f32[2,3,16,16], index: 0, kind: input, shape index: {}]   ;;  %s3291_s1 = inlined_call_operand.hbm [shape: f32[192,128], index: 1, kind: input, shape index: {}]   ;;  %s3292_s2 = inlined_call_operand.vmem [shape: f32[1,128], index: 2, kind: input, shape index: {}]   ;;  %s3293_s3 = inlined_call_operand.vmem [shape: f32[512,128], index: 3, kind: input, shape index: {}]   ;;  %s3294_s4 = inlined_call_operand.vmem [shape: f32[1,128], index: 4, kind: input, shape index: {}]   ;;  %s3295_s5 = inlined_call_operand.vmem [shape: f32[384,128], index: 5, kind: input, shape index: {}]   ;;  %s3296_s6 = inlined_call_operand.vmem [shape: f32[1,128], index: 6, kind: input, shape index: {}]   ;;  %s3297_s7 = inlined_call_operand.vmem [shape: f32[384,32], index: 7, kind: input, shape index: {}]   ;;  %s3298_s8 = inlined_call_operand.vmem [shape: f32[32,128], index: 8, kind: input, shape index: {}]   ;;  %s3299_s9 = inlined_call_operand.vmem [shape: f32[384,32], index: 9, kind: input, shape index: {}]   ;;  %s3300_s10 = inlined_call_operand.vmem [shape: f32[32,128], index: 10, kind: input, shape index: {}]   ;;  %s3301_s11 = inlined_call_operand.vmem [shape: f32[2,32,4,4], index: 11, kind: output, shape index: {}]  }
   0x1   :  { %17 = vsyncpa [#allocation15], 0  ;;  %s2122_s17 = smov [#allocation12]  }
   0x2   :  { %s23_s18 = sshll.u32 %s2122_s17, 4  ;;  %s24_s18 = int_to_ptr.vmem [resolvable:$true] %s23_s18 }
   0x3   :  { %s2086_s19 = scalar_lea.vmem %s24_s18, 1536  ;;  %p2091_p1 = scmp.lt.s32.totalorder %s24_s18, %s24_s18 }
   0x4   :  { %p2087_p0 = scmp.ne.s32.totalorder %s24_s18, %s2086_s19  ;;  %p2092_p2 = scmp.lt.s32.totalorder %s2086_s19, %s2086_s19 }
   0x6   :  { %p2093_p3 = por %p2092_p2, %p2091_p1 }
   0x8   :  { %p2094_p4 = pnand %p2093_p3, %p2087_p0 }
   0xa   :  { %2097 = shalt.err (!%p2094_p4)
}
   0xb   :  { %s2123_s20 = smov 128   ;;  %s2124_s21 = smov 8  }
   0xc   :  { %29 = dma.hbm_to_vmem [thread:$0]  %s3290_s0, 1536, %s24_s18, [#allocation13], %s2123_s20, %s2123_s20, %s2124_s21  }
   0xd   :  { %s2125_s24 = smov [#allocation14]  }
   0xe   :  { %s35_s25 = sshll.u32 %s2125_s24, 4  ;;  %s36_s25 = int_to_ptr.vmem [resolvable:$true] %s35_s25 }
   0xf   :  { %s2106_s26 = scalar_lea.vmem %s36_s25, 3072  ;;  %p2111_p6 = scmp.lt.s32.totalorder %s36_s25, %s36_s25 }
  0x10   :  { %p2107_p5 = scmp.ne.s32.totalorder %s36_s25, %s2106_s26  ;;  %p2112_p7 = scmp.lt.s32.totalorder %s2106_s26, %s2106_s26 }
  0x12   :  { %p2113_p8 = por %p2112_p7, %p2111_p6 }
  0x14   :  { %p2114_p9 = pnand %p2113_p8, %p2107_p5 }
  0x16   :  { %2117 = shalt.err (!%p2114_p9)
}
  0x17   :  { %41 = dma.hbm_to_vmem [thread:$0]  %s3291_s1, 3072, %s36_s25, [#allocation15], %s2123_s20, %s2123_s20, %s2124_s21  }
  0x18   :  { %2118 = dma.done.wait [#allocation13], 1536  }
  0x19   :  { %2119 = vsyncadd [#allocation13], 4294965760 }
  0x1a   :  { %2120 = dma.done.wait [#allocation15], 3072  }
  0x1b   :  { %2121 = vsyncadd [#allocation15], 4294964224  ;;  %vm66_vm0 = vcmask 392192   ;;  %v2126_v0 = vmov 0.0   ;;  %vm71_vm1 = vcmask 388096   ;;  %v93_v1 = vld [vmem:[#allocation12 + $0x20] sm:$0xff] }
  0x1c   :  { %67 = vst.msk [vmem:[#allocation2] sm:$0xff] %vm66_vm0, %v2126_v0  ;;  %68 = vst.msk [vmem:[#allocation2 + $0x8] sm:$0xff] %vm66_vm0, %v2126_v0  ;;  %231 = vmatprep.subr.mxu0 %v2126_v0  ;;  %v79_v2 = vld [vmem:[#allocation12 + $0x10] sm:$0xff]  ;;  %vm75_vm2 = vcmask 130048   ;;  %s2127_s0 = smov 32   ;;  %s2128_s1 = smov 16  }
  0x1d   :  { %69 = vst.msk [vmem:[#allocation2 + $0x10] sm:$0xff] %vm66_vm0, %v2126_v0  ;;  %70 = vst.msk [vmem:[#allocation2 + $0x18] sm:$0xff] %vm66_vm0, %v2126_v0  ;;  %97 = vrot.lane.b32.xlu1 %v93_v1, %s2127_s0  ;;  %83 = vrot.lane.b32.xlu0 %v79_v2, %s2128_s1  ;;  %v94_v3 = vld [vmem:[#allocation12 + $0x28] sm:$0xff]  ;;  %v80_v4 = vld [vmem:[#allocation12 + $0x18] sm:$0xff]  ;;  %vm89_vm3 = vcmask 261248   ;;  %vm103_vm4 = vcmask 392448  }
  0x1e   :  { %308 = vst [vmem:[#allocation4] sm:$0xff] %v2126_v0  ;;  %309 = vst [vmem:[#allocation4 + $0x8] sm:$0xff] %v2126_v0  ;;  %v73_v5 = vld [vmem:[#allocation12] sm:$0xff]  ;;  %v74_v6 = vld [vmem:[#allocation12 + $0x8] sm:$0xff]  ;;  %s2129_s29 = smov 96   ;;  %s2130_s30 = smov 48  }
  0x1f   :  { %310 = vst [vmem:[#allocation4 + $0x10] sm:$0xf] %v2126_v0  ;;  %564 = vst [vmem:[#allocation6] sm:$0xff] %v2126_v0  ;;  %v108_v7 = vld [vmem:[#allocation12 + $0x38] sm:$0xff]  ;;  %v107_v8 = vld [vmem:[#allocation12 + $0x30] sm:$0xff]  ;;  %vm145_vm5 = vcmask 785792  }
  0x20   :  { %565 = vst [vmem:[#allocation6 + $0x8] sm:$0xf] %v2126_v0  ;;  %788 = vst [vmem:[#allocation8] sm:$0xff] %v2126_v0  ;;  %v113_v9 = vld [vmem:[#allocation12 + $0x48] sm:$0xff]  ;;  %v112_v10 = vld [vmem:[#allocation12 + $0x40] sm:$0xff]  ;;  %vm153_vm6 = vcmask 1048320  }
  0x21   :  { %789 = vst [vmem:[#allocation8 + $0x8] sm:$0xf] %v2126_v0  ;;  %1084 = vst [vmem:[#allocation10] sm:$0xff] %v2126_v0  ;;  %99 = vrot.lane.b32.xlu1 %v94_v3, %s2127_s0  ;;  %85 = vrot.lane.b32.xlu0 %v80_v4, %s2128_s1  ;;  %v126_v11 = vld [vmem:[#allocation12 + $0x58] sm:$0xff]  ;;  %v125_v12 = vld [vmem:[#allocation12 + $0x50] sm:$0xff]  ;;  %vm162_vm7 = vcmask 523392  }
  0x22   :  { %1085 = vst [vmem:[#allocation10 + $0x8] sm:$0xf] %v2126_v0  ;;  %72 = vst.msk [vmem:[#allocation2 + $0x20] sm:$0xf] %vm71_vm1, %v2126_v0  ;;  %v208_v13 = vld [vmem:[#allocation14 + $0x78] sm:$0xff]  ;;  %v207_v14 = vld [vmem:[#allocation14 + $0x70] sm:$0xff] }
  0x23   :  { %76 = vst.msk [vmem:[#allocation2 + $0x1] sm:$0xff] %vm75_vm2, %v73_v5  ;;  %77 = vst.msk [vmem:[#allocation2 + $0x9] sm:$0xff] %vm75_vm2, %v74_v6  ;;  %232 = vmatpush1.msra.mxu0 %v208_v13  ;;  %v206_v15 = vld [vmem:[#allocation14 + $0x68] sm:$0xff]  ;;  %v205_v16 = vld [vmem:[#allocation14 + $0x60] sm:$0xff]  ;;  %vm224_vm8 = vcmask 523264   ;;  %vm2131_vm9 = vmmov 0  }
  0x24   :  { %110 = vst.msk [vmem:[#allocation2 + $0x1b] sm:$0xff] %vm75_vm2, %v108_v7  ;;  %109 = vst.msk [vmem:[#allocation2 + $0x13] sm:$0xff] %vm75_vm2, %v107_v8  ;;  %233 = vmatprep.subr.mxu0 %v2126_v0  ;;  %v204_v17 = vld [vmem:[#allocation14 + $0x58] sm:$0xff]  ;;  %v203_v18 = vld [vmem:[#allocation14 + $0x50] sm:$0xff]  ;;  %vm1009_vm10 = vcmask 261120   ;;  %vm1379_vm11 = vcmask 27648  }
  0x25   :  { %118 = vrot.lane.b32.xlu1 %v113_v9, %s2128_s1  ;;  %116 = vrot.lane.b32.xlu0 %v112_v10, %s2128_s1  ;;  %v202_v19 = vld [vmem:[#allocation14 + $0x48] sm:$0xff]  ;;  %v201_v20 = vld [vmem:[#allocation14 + $0x40] sm:$0xff]  ;;  %v200_v21 = vld [vmem:[#allocation14 + $0x38] sm:$0xff]  ;;  %vm1538_vm12 = vcmask 31748   ;;  %s2132_s15 = smov 120   ;;  %s2138_s16 = smov 100  }
  0x26   :  { %234 = vmatpush1.msra.mxu0 %v207_v14  ;;  %v199_v22 = vld [vmem:[#allocation14 + $0x30] sm:$0xff]  ;;  %v198_v23 = vld [vmem:[#allocation14 + $0x28] sm:$0xff]  ;;  %v197_v24 = vld [vmem:[#allocation14 + $0x20] sm:$0xff]  ;;  %s2140_s17 = smov 92   ;;  %s2141_s18 = smov 80  }
  0x27   :  { %235 = vmatprep.subr.mxu0 %v2126_v0  ;;  %v196_v25 = vld [vmem:[#allocation14 + $0x18] sm:$0xff]  ;;  %v195_v26 = vld [vmem:[#allocation14 + $0x10] sm:$0xff]  ;;  %v194_v27 = vld [vmem:[#allocation14 + $0x8] sm:$0xff]  ;;  %s2142_s19 = smov 84   ;;  %s2143_s20 = smov 72  }
  0x28   :  { %236 = vmatpush1.msra.mxu0 %v206_v15  ;;  %v193_v28 = vld [vmem:[#allocation14] sm:$0xff]  ;;  %v216_v29 = vld [vmem:[#allocation14 + $0xb8] sm:$0xff]  ;;  %v215_v32 = vld [vmem:[#allocation14 + $0xb0] sm:$0xff]  ;;  %s2144_s22 = smov 76   ;;  %s2146_s23 = smov 68  }
  0x29   :  { %131 = vrot.lane.b32.xlu1 %v126_v11, %s2127_s0  ;;  %129 = vrot.lane.b32.xlu0 %v125_v12, %s2127_s0  ;;  %v214_v33 = vld [vmem:[#allocation14 + $0xa8] sm:$0xff]  ;;  %v213_v36 = vld [vmem:[#allocation14 + $0xa0] sm:$0xff]  ;;  %v212_v37 = vld [vmem:[#allocation14 + $0x98] sm:$0xff]  ;;  %s2147_s24 = smov 56   ;;  %s2150_s25 = smov 40  }
  0x2a   :  { %237 = vmatprep.subr.mxu0 %v2126_v0  ;;  %v211_v40 = vld [vmem:[#allocation14 + $0x90] sm:$0xff]  ;;  %v210_v41 = vld [vmem:[#allocation14 + $0x88] sm:$0xff]  ;;  %v209_v44 = vld [vmem:[#allocation14 + $0x80] sm:$0xff]  ;;  %s2151_s26 = smov 44   ;;  %s2152_s27 = smov 36  }
  0x2b   :  { %238 = vmatpush1.msra.mxu0 %v205_v16  ;;  %v383_v52 = vld [vmem:[%s3293_s3 + $0xf8] sm:$0xff]  ;;  %v382_v2 = vld [vmem:[%s3293_s3 + $0xf0] sm:$0xff]  ;;  %v381_v4 = vld [vmem:[%s3293_s3 + $0xe8] sm:$0xff]  ;;  %s2153_s28 = smov 24   ;;  %s2155_s12 = smov 20  }
  0x2c   :  { %239 = vmatprep.subr.mxu0 %v2126_v0  ;;  %v367_v53 = vld [vmem:[%s3293_s3 + $0x78] sm:$0xff]  ;;  %1678 = vmatprep.subr.mxu1 %v383_v52  ;;  %v366_v3 = vld [vmem:[%s3293_s3 + $0x70] sm:$0xff]  ;;  %v365_v5 = vld [vmem:[%s3293_s3 + $0x68] sm:$0xff]  ;;  %s2157_s13 = smov 4  }
  0x2d   :  { %240 = vmatpush1.msra.mxu0 %v204_v17  ;;  %1679 = vmatpush3.msra.mxu1 %v367_v53  ;;  %v380_v6 = vld [vmem:[%s3293_s3 + $0xe0] sm:$0xff]  ;;  %v379_v8 = vld [vmem:[%s3293_s3 + $0xd8] sm:$0xff]  ;;  %v378_v10 = vld [vmem:[%s3293_s3 + $0xd0] sm:$0xff] }
  0x2e   :  { %241 = vmatprep.subr.mxu0 %v2126_v0  ;;  %1680 = vmatprep.subr.mxu1 %v382_v2  ;;  %v364_v7 = vld [vmem:[%s3293_s3 + $0x60] sm:$0xff]  ;;  %v363_v9 = vld [vmem:[%s3293_s3 + $0x58] sm:$0xff]  ;;  %v362_v11 = vld [vmem:[%s3293_s3 + $0x50] sm:$0xff] }
  0x2f   :  { %242 = vmatpush1.msra.mxu0 %v203_v18  ;;  %1681 = vmatpush3.msra.mxu1 %v366_v3  ;;  %v377_v12 = vld [vmem:[%s3293_s3 + $0xc8] sm:$0xff]  ;;  %v376_v14 = vld [vmem:[%s3293_s3 + $0xc0] sm:$0xff]  ;;  %v375_v16 = vld [vmem:[%s3293_s3 + $0xb8] sm:$0xff] }
  0x30   :  { %243 = vmatprep.subr.mxu0 %v2126_v0  ;;  %1682 = vmatprep.subr.mxu1 %v381_v4  ;;  %v361_v13 = vld [vmem:[%s3293_s3 + $0x48] sm:$0xff]  ;;  %v360_v15 = vld [vmem:[%s3293_s3 + $0x40] sm:$0xff]  ;;  %v359_v17 = vld [vmem:[%s3293_s3 + $0x38] sm:$0xff] }
  0x31   :  { %244 = vmatpush1.msra.mxu0 %v202_v19  ;;  %1683 = vmatpush3.msra.mxu1 %v365_v5  ;;  %v374_v18 = vld [vmem:[%s3293_s3 + $0xb0] sm:$0xff]  ;;  %v395_v2 = vld [vmem:[%s3293_s3 + $0x158] sm:$0xff]  ;;  %v409_v5 = vld [vmem:[%s3293_s3 + $0x1c8] sm:$0xff] }
  0x32   :  { %245 = vmatprep.subr.mxu0 %v2126_v0  ;;  %1684 = vmatprep.subr.mxu1 %v380_v6  ;;  %v358_v19 = vld [vmem:[%s3293_s3 + $0x30] sm:$0xff]  ;;  %v393_v6 = vld [vmem:[%s3293_s3 + $0x148] sm:$0xff] }
  0x33   :  { %246 = vmatpush1.msra.mxu0 %v201_v20  ;;  %1685 = vmatpush3.msra.mxu1 %v364_v7  ;;  %v373_v20 = vld [vmem:[%s3293_s3 + $0xa8] sm:$0xff]  ;;  %v410_v3 = vld [vmem:[%s3293_s3 + $0x1d0] sm:$0xff]  ;;  %v408_v7 = vld [vmem:[%s3293_s3 + $0x1c0] sm:$0xff] }
  0x34   :  { %247 = vmatprep.subr.mxu0 %v2126_v0  ;;  %1686 = vmatprep.subr.mxu1 %v379_v8  ;;  %v394_v4 = vld [vmem:[%s3293_s3 + $0x150] sm:$0xff]  ;;  %v392_v8 = vld [vmem:[%s3293_s3 + $0x140] sm:$0xff] }
  0x35   :  { %248 = vmatpush1.msra.mxu0 %v200_v21  ;;  %1687 = vmatpush3.msra.mxu1 %v363_v9  ;;  %v357_v21 = vld [vmem:[%s3293_s3 + $0x28] sm:$0xff]  ;;  %v407_v9 = vld [vmem:[%s3293_s3 + $0x1b8] sm:$0xff] }
  0x36   :  { %249 = vmatprep.subr.mxu0 %v2126_v0  ;;  %1688 = vmatprep.subr.mxu1 %v378_v10  ;;  %v391_v10 = vld [vmem:[%s3293_s3 + $0x138] sm:$0xff] }
  0x37   :  { %250 = vmatpush1.msra.mxu0 %v199_v22  ;;  %1689 = vmatpush3.msra.mxu1 %v362_v11  ;;  %v372_v22 = vld [vmem:[%s3293_s3 + $0xa0] sm:$0xff]  ;;  %v406_v11 = vld [vmem:[%s3293_s3 + $0x1b0] sm:$0xff] }
  0x38   :  { %251 = vmatprep.subr.mxu0 %v2126_v0  ;;  %1690 = vmatprep.subr.mxu1 %v377_v12  ;;  %v390_v12 = vld [vmem:[%s3293_s3 + $0x130] sm:$0xff] }
  0x39   :  { %252 = vmatpush1.msra.mxu0 %v198_v23  ;;  %1691 = vmatpush3.msra.mxu1 %v361_v13  ;;  %v356_v23 = vld [vmem:[%s3293_s3 + $0x20] sm:$0xff]  ;;  %v405_v13 = vld [vmem:[%s3293_s3 + $0x1a8] sm:$0xff] }
  0x3a   :  { %253 = vmatprep.subr.mxu0 %v2126_v0  ;;  %1692 = vmatprep.subr.mxu1 %v376_v14  ;;  %v389_v14 = vld [vmem:[%s3293_s3 + $0x128] sm:$0xff] }
  0x3b   :  { %254 = vmatpush1.msra.mxu0 %v197_v24  ;;  %1693 = vmatpush3.msra.mxu1 %v360_v15  ;;  %v371_v24 = vld [vmem:[%s3293_s3 + $0x98] sm:$0xff]  ;;  %v404_v15 = vld [vmem:[%s3293_s3 + $0x1a0] sm:$0xff] }
  0x3c   :  { %255 = vmatprep.subr.mxu0 %v2126_v0  ;;  %1694 = vmatprep.subr.mxu1 %v375_v16  ;;  %v388_v16 = vld [vmem:[%s3293_s3 + $0x120] sm:$0xff] }
  0x3d   :  { %256 = vmatpush1.msra.mxu0 %v196_v25  ;;  %1695 = vmatpush3.msra.mxu1 %v359_v17  ;;  %v355_v25 = vld [vmem:[%s3293_s3 + $0x18] sm:$0xff] }
  0x3e   :  { %257 = vmatprep.subr.mxu0 %v2126_v0  ;;  %1696 = vmatprep.subr.mxu1 %v374_v18  ;;  %v403_v17 = vld [vmem:[%s3293_s3 + $0x198] sm:$0xff] }
  0x3f   :  { %258 = vmatpush1.msra.mxu0 %v195_v26  ;;  %1697 = vmatpush3.msra.mxu1 %v358_v19  ;;  %v370_v26 = vld [vmem:[%s3293_s3 + $0x90] sm:$0xff]  ;;  %v387_v18 = vld [vmem:[%s3293_s3 + $0x118] sm:$0xff] }
  0x40   :  { %259 = vmatprep.subr.mxu0 %v2126_v0  ;;  %1698 = vmatprep.subr.mxu1 %v373_v20  ;;  %v402_v19 = vld [vmem:[%s3293_s3 + $0x190] sm:$0xff] }
  0x41   :  { %260 = vmatpush1.msra.mxu0 %v194_v27  ;;  %1699 = vmatpush3.msra.mxu1 %v357_v21  ;;  %v354_v27 = vld [vmem:[%s3293_s3 + $0x10] sm:$0xff]  ;;  %v401_v21 = vld [vmem:[%s3293_s3 + $0x188] sm:$0xff] }
  0x42   :  { %261 = vmatprep.subr.mxu0 %v2126_v0  ;;  %1700 = vmatprep.subr.mxu1 %v372_v22  ;;  %v386_v20 = vld [vmem:[%s3293_s3 + $0x110] sm:$0xff]  ;;  %v385_v22 = vld [vmem:[%s3293_s3 + $0x108] sm:$0xff] }
  0x43   :  { %262 = vmatpush1.msra.mxu0 %v193_v28  ;;  %1701 = vmatpush3.msra.mxu1 %v356_v23  ;;  %v369_v28 = vld [vmem:[%s3293_s3 + $0x88] sm:$0xff]  ;;  %v400_v23 = vld [vmem:[%s3293_s3 + $0x180] sm:$0xff] }
  0x44   :  { %279 = vmatprep.subr.mxu0 %v2126_v0  ;;  %1702 = vmatprep.subr.mxu1 %v371_v24  ;;  %v384_v24 = vld [vmem:[%s3293_s3 + $0x100] sm:$0xff] }
  0x45   :  { %280 = vmatpush2.msra.mxu0 %v216_v29  ;;  %1703 = vmatpush3.msra.mxu1 %v355_v25  ;;  %v353_v29 = vld [vmem:[%s3293_s3 + $0x8] sm:$0xff] }
  0x46   :  { %281 = vmatprep.subr.mxu0 %v2126_v0  ;;  %1704 = vmatprep.subr.mxu1 %v370_v26  ;;  %v623_v26 = vld [vmem:[%s3295_s5 + $0xf8] sm:$0xff] }
  0x47   :  { %282 = vmatpush2.msra.mxu0 %v215_v32  ;;  %1705 = vmatpush3.msra.mxu1 %v354_v27  ;;  %v415_v32 = vld [vmem:[%s3293_s3 + $0x1f8] sm:$0xff] }
  0x48   :  { %283 = vmatprep.subr.mxu0 %v2126_v0  ;;  %1706 = vmatprep.subr.mxu1 %v369_v28  ;;  %v639_v27 = vld [vmem:[%s3295_s5 + $0x178] sm:$0xff] }
  0x49   :  { %284 = vmatpush2.msra.mxu0 %v214_v33  ;;  %1707 = vmatpush3.msra.mxu1 %v353_v29  ;;  %v1608_v33 = vld [vmem:[%s3292_s2] ss:$0 sm:$0xff]  ;;  %v607_v28 = vld [vmem:[%s3295_s5 + $0x78] sm:$0xff]  ;;  %v622_v29 = vld [vmem:[%s3295_s5 + $0xf0] sm:$0xff]  ;;  %s2136_s2 = smov 104  }
  0x4a   :  { %285 = vmatprep.subr.mxu0 %v2126_v0 }
  0x4b   :  { %286 = vmatpush2.msra.mxu0 %v213_v36 }
  0x4c   :  { %287 = vmatprep.subr.mxu0 %v2126_v0 }
  0x4d   :  { %288 = vmatpush2.msra.mxu0 %v212_v37 }
  0x4e   :  { %289 = vmatprep.subr.mxu0 %v2126_v0 }
  0x4f   :  { %290 = vmatpush2.msra.mxu0 %v211_v40 }
  0x50   :  { %291 = vmatprep.subr.mxu0 %v2126_v0 }
  0x51   :  { %292 = vmatpush2.msra.mxu0 %v210_v41 }
  0x52   :  { %293 = vmatprep.subr.mxu0 %v2126_v0 }
  0x53   :  { %294 = vmatpush2.msra.mxu0 %v209_v44 }
  0x54   :  { %1748 = vmatprep.subr.mxu0 %v623_v26 }
  0x8f   :  { %v98_v30 = vpop.permute.xlu1 %97  ;;  %v84_v31 = vpop.permute.xlu0 %83 }
  0x90   :  { %90 = vst.msk [vmem:[#allocation2 + $0x1] sm:$0xff] %vm89_vm3, %v84_v31  ;;  %v352_v31 = vld [vmem:[%s3293_s3] sm:$0xff] }
  0x91   :  { %104 = vst.msk [vmem:[#allocation2 + $0x1] sm:$0xff] %vm103_vm4, %v98_v30  ;;  %v368_v30 = vld [vmem:[%s3293_s3 + $0x80] sm:$0xff] }
  0x92   :  { %1708 = vmatprep.subr.mxu1 %v368_v30  ;;  %v638_v30 = vld [vmem:[%s3295_s5 + $0x170] sm:$0xff] }
  0x93   :  { %v100_v34 = vpop.permute.xlu1 %99  ;;  %v86_v35 = vpop.permute.xlu0 %85  ;;  %1709 = vmatpush3.msra.mxu1 %v352_v31  ;;  %v606_v31 = vld [vmem:[%s3295_s5 + $0x70] sm:$0xff] }
  0x94   :  { %91 = vst.msk [vmem:[#allocation2 + $0x9] sm:$0xff] %vm89_vm3, %v86_v35  ;;  %1713 = vmatprep.subr.mxu1 %v415_v32  ;;  %v621_v32 = vld [vmem:[%s3295_s5 + $0xe8] sm:$0xff] }
  0x95   :  { %105 = vst.msk [vmem:[#allocation2 + $0x9] sm:$0xff] %vm103_vm4, %v100_v34 }
  0x97   :  { %v119_v38 = vpop.permute.xlu1 %118  ;;  %v117_v39 = vpop.permute.xlu0 %116 }
  0x98   :  { %123 = vst.msk [vmem:[#allocation2 + $0x1b] sm:$0xff] %vm89_vm3, %v119_v38  ;;  %122 = vst.msk [vmem:[#allocation2 + $0x13] sm:$0xff] %vm89_vm3, %v117_v39 }
  0x9b   :  { %v132_v42 = vpop.permute.xlu1 %131  ;;  %v130_v43 = vpop.permute.xlu0 %129 }
  0x9c   :  { %136 = vst.msk [vmem:[#allocation2 + $0x1b] sm:$0xff] %vm103_vm4, %v132_v42  ;;  %135 = vst.msk [vmem:[#allocation2 + $0x13] sm:$0xff] %vm103_vm4, %v130_v43  ;;  %v148_v45 = vld [vmem:[#allocation2 + $0x2] ss:$2 sm:$0xff]  ;;  %v140_v46 = vld [vmem:[#allocation2 + $0x1] ss:$2 sm:$0xff] }
  0x9d   :  { %150 = vrot.lane.b32.xlu0 %v148_v45, %s2129_s29  ;;  %142 = vrot.lane.b32.xlu1 %v140_v46, %s2130_s30  ;;  %v137_v47 = vld [vmem:[#allocation2] ss:$2 sm:$0xff]  ;;  %v157_v48 = vld [vmem:[#allocation2 + $0x3] ss:$2 sm:$0xff] }
  0x9e   :  { %138 = vst.msk [vmem:[#allocation3] sm:$0xff] %vm66_vm0, %v137_v47 }
  0xa1   :  { %159 = vrot.lane.b32.xlu0 %v157_v48, %s2128_s1 }
  0xa3   :  { %v175_v49 = vld [vmem:[#allocation2 + $0x14] ss:$2 sm:$0xff]  ;;  %v168_v50 = vld [vmem:[#allocation2 + $0x13] ss:$2 sm:$0xff] }
  0xa4   :  { %177 = vrot.lane.b32.xlu1 %v175_v49, %s2129_s29  ;;  %v165_v51 = vld [vmem:[#allocation2 + $0x12] ss:$2 sm:$0xff]  ;;  %v183_v54 = vld [vmem:[#allocation2 + $0x15] ss:$2 sm:$0xff] }
  0xa5   :  { %170 = vrot.lane.b32.xlu0 %v168_v50, %s2130_s30  ;;  %166 = vst.msk [vmem:[#allocation3 + $0x10] sm:$0xff] %vm66_vm0, %v165_v51 }
  0xa8   :  { %185 = vrot.lane.b32.xlu1 %v183_v54, %s2128_s1 }
 0x10f   :  { %v151_v55 = vpop.permute.xlu0 %150  ;;  %v143_v56 = vpop.permute.xlu1 %142 }
 0x110   :  { %155 = vst.msk [vmem:[#allocation3 + $0x8] sm:$0xff] %vm75_vm2, %v151_v55 }
 0x111   :  { %146 = vst.msk [vmem:[#allocation3] sm:$0xff] %vm145_vm5, %v143_v56  ;;  %v399_v56 = vld [vmem:[%s3293_s3 + $0x178] sm:$0xff] }
 0x112   :  { %154 = vst.msk [vmem:[#allocation3] sm:$0xff] %vm153_vm6, %v151_v55 }
 0x113   :  { %v160_v57 = vpop.permute.xlu0 %159 }
 0x114   :  { %163 = vst.msk [vmem:[#allocation3 + $0x8] sm:$0xff] %vm162_vm7, %v160_v57  ;;  %v414_v57 = vld [vmem:[%s3293_s3 + $0x1f0] sm:$0xff] }
 0x116   :  { %v178_v58 = vpop.permute.xlu1 %177 }
 0x117   :  { %181 = vst.msk [vmem:[#allocation3 + $0x18] sm:$0xff] %vm75_vm2, %v178_v58  ;;  %v171_v59 = vpop.permute.xlu0 %170 }
 0x118   :  { %173 = vst.msk [vmem:[#allocation3 + $0x10] sm:$0xff] %vm145_vm5, %v171_v59  ;;  %v398_v59 = vld [vmem:[%s3293_s3 + $0x170] sm:$0xff] }
 0x119   :  { %180 = vst.msk [vmem:[#allocation3 + $0x10] sm:$0xff] %vm153_vm6, %v178_v58  ;;  %v189_v62 = vld [vmem:[#allocation3] sm:$0xff] }
 0x11a   :  { %v186_v60 = vpop.permute.xlu1 %185 }
 0x11b   :  { %188 = vst.msk [vmem:[#allocation3 + $0x18] sm:$0xff] %vm162_vm7, %v186_v60  ;;  %v190_v61 = vld [vmem:[#allocation3 + $0x8] sm:$0xff]  ;;  %v413_v60 = vld [vmem:[%s3293_s3 + $0x1e8] sm:$0xff] }
 0x11c   :  { %1609 = vmatprep.mubr.msk.f32.mxu0 %vm224_vm8, %v190_v61  ;;  %v397_v61 = vld [vmem:[%s3293_s3 + $0x168] sm:$0xff] }
 0x11d   :  { %296 = vmatmul.mubr.f32.vlgmr.msra.gmra.mxu0 %v189_v62  ;;  %v412_v62 = vld [vmem:[%s3293_s3 + $0x1e0] sm:$0xff] }
 0x11e   :  { %1749 = vmatpush3.msra.mxu0 %v607_v28 }
 0x11f   :  { %1750 = vmatprep.subr.mxu0 %v622_v29 }
 0x120   :  { %v191_v1 = vld [vmem:[#allocation3 + $0x10] sm:$0xff]  ;;  %1751 = vmatpush3.msra.mxu0 %v606_v31 }
 0x121   :  { %1752 = vmatprep.subr.mxu0 %v621_v32  ;;  %v863_v32 = vld [vmem:[%s3297_s7 + $0x178] sm:$0xff] }
 0x122   :  { %v192_v63 = vld [vmem:[#allocation3 + $0x18] sm:$0xff] }
 0x123   :  { %1610 = vmatprep.mubr.msk.f32.mxu0 %vm224_vm8, %v192_v63  ;;  %v396_v63 = vld [vmem:[%s3293_s3 + $0x160] sm:$0xff] }
 0x124   :  { %301 = vmatmul.mubr.f32.gmra.mxu0 %v191_v1  ;;  %v411_v1 = vld [vmem:[%s3293_s3 + $0x1d8] sm:$0xff]  ;;  %s2135_s3 = smov 116  }
 0x1dd   :  { %v297_v34 = vpop.f32.mrf.mxu0 }
 0x1de   :  { %v298_v35 = vadd.f32 %v1608_v33, %v297_v34  ;;  %v605_v34 = vld [vmem:[%s3295_s5 + $0x68] sm:$0xff] }
 0x1df   :  { %v299_v36 = vpop.f32.mrf.mxu0  ;;  %1753 = vmatpush3.msra.mxu0 %v605_v34 }
 0x1e0   :  { %v306_v37 = vmax.f32 %v298_v35, 0.0  ;;  %v620_v35 = vld [vmem:[%s3295_s5 + $0xe0] sm:$0xff] }
 0x1e1   :  { %v636_v36 = vld [vmem:[%s3295_s5 + $0x160] sm:$0xff]  ;;  %1754 = vmatprep.subr.mxu0 %v620_v35  ;;  %v831_v35 = vld [vmem:[%s3297_s7 + $0x78] sm:$0xff] }
 0x1e2   :  { %311 = vst [vmem:[#allocation4 + $0x1] sm:$0xff] %v306_v37  ;;  %v604_v37 = vld [vmem:[%s3295_s5 + $0x60] sm:$0xff] }
 0x1e3   :  { %1755 = vmatpush3.msra.mxu0 %v604_v37  ;;  %v862_v37 = vld [vmem:[%s3297_s7 + $0x170] sm:$0xff] }
 0x1e4   :  { %v302_v38 = vpop.f32.mrf.mxu0 }
 0x1e5   :  { %v303_v39 = vadd.f32 %v1608_v33, %v302_v38  ;;  %v637_v33 = vld [vmem:[%s3295_s5 + $0x168] sm:$0xff]  ;;  %v619_v38 = vld [vmem:[%s3295_s5 + $0xd8] sm:$0xff] }
 0x1e6   :  { %v304_v40 = vpop.f32.mrf.mxu0  ;;  %1756 = vmatprep.subr.mxu0 %v619_v38  ;;  %v830_v38 = vld [vmem:[%s3297_s7 + $0x70] sm:$0xff] }
 0x1e7   :  { %v307_v41 = vmax.f32 %v303_v39, 0.0  ;;  %v635_v39 = vld [vmem:[%s3295_s5 + $0x158] sm:$0xff] }
 0x1e8   :  { %v603_v40 = vld [vmem:[%s3295_s5 + $0x58] sm:$0xff] }
 0x1e9   :  { %312 = vst [vmem:[#allocation4 + $0xb] sm:$0xff] %v307_v41  ;;  %v316_v42 = vld [vmem:[#allocation4 + $0x1] ss:$2 sm:$0xf]  ;;  %1757 = vmatpush3.msra.mxu0 %v603_v40  ;;  %v618_v41 = vld [vmem:[%s3295_s5 + $0xd0] sm:$0xff] }
 0x1ea   :  { %v313_v43 = vld [vmem:[#allocation4] ss:$2 sm:$0xf]  ;;  %317 = vst [vmem:[#allocation5] sm:$0xf] %v316_v42  ;;  %v634_v42 = vld [vmem:[%s3295_s5 + $0x150] sm:$0xff]  ;;  %1758 = vmatprep.subr.mxu0 %v618_v41 }
 0x1eb   :  { %314 = vst [vmem:[#allocation5 + $0x10] sm:$0xf] %v313_v43  ;;  %v322_v44 = vld [vmem:[#allocation4 + $0x3] ss:$2 sm:$0xf] }
 0x1ec   :  { %v319_v45 = vld [vmem:[#allocation4 + $0x2] ss:$2 sm:$0xf]  ;;  %323 = vst [vmem:[#allocation5 + $0x8] sm:$0xf] %v322_v44 }
 0x1ed   :  { %320 = vst [vmem:[#allocation5 + $0x18] sm:$0xf] %v319_v45  ;;  %v602_v43 = vld [vmem:[%s3295_s5 + $0x50] sm:$0xff]  ;;  %v617_v44 = vld [vmem:[%s3295_s5 + $0xc8] sm:$0xff] }
 0x1ee   :  { %1759 = vmatpush3.msra.mxu0 %v602_v43  ;;  %v633_v45 = vld [vmem:[%s3295_s5 + $0x148] sm:$0xff]  ;;  %v860_v43 = vld [vmem:[%s3297_s7 + $0x160] sm:$0xff] }
 0x1ef   :  { %1760 = vmatprep.subr.mxu0 %v617_v44  ;;  %v861_v40 = vld [vmem:[%s3297_s7 + $0x168] sm:$0xff]  ;;  %v828_v44 = vld [vmem:[%s3297_s7 + $0x60] sm:$0xff] }
 0x1f0   :  { %v331_v46 = vld [vmem:[#allocation4 + $0xb] ss:$2 sm:$0xf]  ;;  %v325_v47 = vld [vmem:[#allocation4 + $0xa] ss:$2 sm:$0xf] }
 0x1f1   :  { %v333_v48 = vrot.slane %v331_v46, 4  ;;  %v327_v49 = vrot.slane %v325_v47, 4  ;;  %v343_v50 = vld [vmem:[#allocation4 + $0xd] ss:$2 sm:$0xf]  ;;  %v601_v46 = vld [vmem:[%s3295_s5 + $0x48] sm:$0xff] }
 0x1f2   :  { %v345_v51 = vrot.slane %v343_v50, 4  ;;  %v337_v52 = vld [vmem:[#allocation4 + $0xc] ss:$2 sm:$0xf]  ;;  %v616_v47 = vld [vmem:[%s3295_s5 + $0xc0] sm:$0xff]  ;;  %1761 = vmatpush3.msra.mxu0 %v601_v46  ;;  %v829_v41 = vld [vmem:[%s3297_s7 + $0x68] sm:$0xff] }
 0x1f3   :  { %335 = vst [vmem:[#allocation5] sm:$0xf0] %v333_v48  ;;  %329 = vst [vmem:[#allocation5 + $0x10] sm:$0xf0] %v327_v49  ;;  %v339_v53 = vrot.slane %v337_v52, 4  ;;  %v632_v48 = vld [vmem:[%s3295_s5 + $0x140] sm:$0xff]  ;;  %1762 = vmatprep.subr.mxu0 %v616_v47 }
 0x1f4   :  { %347 = vst [vmem:[#allocation5 + $0x8] sm:$0xf0] %v345_v51  ;;  %v600_v49 = vld [vmem:[%s3295_s5 + $0x40] sm:$0xff]  ;;  %v615_v50 = vld [vmem:[%s3295_s5 + $0xb8] sm:$0xff] }
 0x1f5   :  { %341 = vst [vmem:[#allocation5 + $0x18] sm:$0xf0] %v339_v53  ;;  %v631_v51 = vld [vmem:[%s3295_s5 + $0x138] sm:$0xff]  ;;  %1763 = vmatpush3.msra.mxu0 %v600_v49  ;;  %v614_v53 = vld [vmem:[%s3295_s5 + $0xb0] sm:$0xff] }
 0x1f6   :  { %v599_v52 = vld [vmem:[%s3295_s5 + $0x38] sm:$0xff]  ;;  %1764 = vmatprep.subr.mxu0 %v615_v50  ;;  %v858_v49 = vld [vmem:[%s3297_s7 + $0x150] sm:$0xff] }
 0x1f7   :  { %1765 = vmatpush3.msra.mxu0 %v599_v52  ;;  %v859_v46 = vld [vmem:[%s3297_s7 + $0x158] sm:$0xff]  ;;  %v826_v50 = vld [vmem:[%s3297_s7 + $0x50] sm:$0xff]  ;;  %v857_v52 = vld [vmem:[%s3297_s7 + $0x148] sm:$0xff] }
 0x1f8   :  { %1766 = vmatprep.subr.mxu0 %v614_v53  ;;  %v827_v47 = vld [vmem:[%s3297_s7 + $0x58] sm:$0xff]  ;;  %v825_v53 = vld [vmem:[%s3297_s7 + $0x48] sm:$0xff] }
 0x1fa   :  { %v349_v54 = vld [vmem:[#allocation5] sm:$0xff]  ;;  %v348_v55 = vld [vmem:[#allocation5 + $0x10] sm:$0xff] }
 0x1fb   :  { %487 = vmatprep.mubr.f32.mxu1 %v349_v54  ;;  %v351_v58 = vld [vmem:[#allocation5 + $0x8] sm:$0xff]  ;;  %v630_v54 = vld [vmem:[%s3295_s5 + $0x130] sm:$0xff] }
 0x1fc   :  { %488 = vmatmul.mubr.f32.vlgmr.msra.gmra.mxu1 %v348_v55  ;;  %v350_v25 = vld [vmem:[#allocation5 + $0x18] sm:$0xff]  ;;  %v598_v55 = vld [vmem:[%s3295_s5 + $0x30] sm:$0xff] }
 0x1fd   :  { %1714 = vmatpush3.msra.mxu1 %v399_v56  ;;  %557 = vmatprep.mubr.f32.mxu1 %v351_v58  ;;  %v613_v56 = vld [vmem:[%s3295_s5 + $0xa8] sm:$0xff] }
 0x1fe   :  { %1715 = vmatprep.subr.mxu1 %v414_v57  ;;  %v629_v57 = vld [vmem:[%s3295_s5 + $0x128] sm:$0xff]  ;;  %1767 = vmatpush3.msra.mxu0 %v598_v55  ;;  %v856_v55 = vld [vmem:[%s3297_s7 + $0x140] sm:$0xff] }
 0x1ff   :  { %1716 = vmatpush3.msra.mxu1 %v398_v59  ;;  %v597_v58 = vld [vmem:[%s3295_s5 + $0x28] sm:$0xff]  ;;  %v612_v59 = vld [vmem:[%s3295_s5 + $0xa0] sm:$0xff]  ;;  %1768 = vmatprep.subr.mxu0 %v613_v56 }
 0x200   :  { %1717 = vmatprep.subr.mxu1 %v413_v60  ;;  %v628_v60 = vld [vmem:[%s3295_s5 + $0x120] sm:$0xff]  ;;  %1769 = vmatpush3.msra.mxu0 %v597_v58  ;;  %v855_v58 = vld [vmem:[%s3297_s7 + $0x138] sm:$0xff] }
 0x201   :  { %1718 = vmatpush3.msra.mxu1 %v397_v61  ;;  %v596_v61 = vld [vmem:[%s3295_s5 + $0x20] sm:$0xff]  ;;  %1770 = vmatprep.subr.mxu0 %v612_v59  ;;  %v823_v59 = vld [vmem:[%s3297_s7 + $0x38] sm:$0xff] }
 0x202   :  { %1719 = vmatprep.subr.mxu1 %v412_v62  ;;  %v611_v62 = vld [vmem:[%s3295_s5 + $0x98] sm:$0xff]  ;;  %1771 = vmatpush3.msra.mxu0 %v596_v61  ;;  %v824_v56 = vld [vmem:[%s3297_s7 + $0x40] sm:$0xff]  ;;  %v854_v61 = vld [vmem:[%s3297_s7 + $0x130] sm:$0xff] }
 0x203   :  { %1720 = vmatpush3.msra.mxu1 %v396_v63  ;;  %v627_v63 = vld [vmem:[%s3295_s5 + $0x118] sm:$0xff]  ;;  %1772 = vmatprep.subr.mxu0 %v611_v62  ;;  %v822_v62 = vld [vmem:[%s3297_s7 + $0x30] sm:$0xff] }
 0x204   :  { %1721 = vmatprep.subr.mxu1 %v411_v1  ;;  %v595_v1 = vld [vmem:[%s3295_s5 + $0x18] sm:$0xff] }
 0x205   :  { %1722 = vmatpush3.msra.mxu1 %v395_v2  ;;  %v610_v2 = vld [vmem:[%s3295_s5 + $0x90] sm:$0xff]  ;;  %1773 = vmatpush3.msra.mxu0 %v595_v1  ;;  %v853_v1 = vld [vmem:[%s3297_s7 + $0x128] sm:$0xff] }
 0x206   :  { %1723 = vmatprep.subr.mxu1 %v410_v3  ;;  %v626_v3 = vld [vmem:[%s3295_s5 + $0x110] sm:$0xff]  ;;  %1774 = vmatprep.subr.mxu0 %v610_v2  ;;  %v821_v2 = vld [vmem:[%s3297_s7 + $0x28] sm:$0xff] }
 0x207   :  { %1724 = vmatpush3.msra.mxu1 %v394_v4  ;;  %v594_v4 = vld [vmem:[%s3295_s5 + $0x10] sm:$0xff] }
 0x208   :  { %1725 = vmatprep.subr.mxu1 %v409_v5  ;;  %v609_v5 = vld [vmem:[%s3295_s5 + $0x88] sm:$0xff]  ;;  %1775 = vmatpush3.msra.mxu0 %v594_v4  ;;  %v852_v4 = vld [vmem:[%s3297_s7 + $0x120] sm:$0xff] }
 0x209   :  { %1726 = vmatpush3.msra.mxu1 %v393_v6  ;;  %v625_v6 = vld [vmem:[%s3295_s5 + $0x108] sm:$0xff]  ;;  %1776 = vmatprep.subr.mxu0 %v609_v5  ;;  %v820_v5 = vld [vmem:[%s3297_s7 + $0x20] sm:$0xff] }
 0x20a   :  { %1727 = vmatprep.subr.mxu1 %v408_v7  ;;  %v593_v7 = vld [vmem:[%s3295_s5 + $0x8] sm:$0xff] }
 0x20b   :  { %1728 = vmatpush3.msra.mxu1 %v392_v8  ;;  %v608_v8 = vld [vmem:[%s3295_s5 + $0x80] sm:$0xff]  ;;  %1777 = vmatpush3.msra.mxu0 %v593_v7  ;;  %v851_v7 = vld [vmem:[%s3297_s7 + $0x118] sm:$0xff] }
 0x20c   :  { %1729 = vmatprep.subr.mxu1 %v407_v9  ;;  %v624_v9 = vld [vmem:[%s3295_s5 + $0x100] sm:$0xff]  ;;  %1778 = vmatprep.subr.mxu0 %v608_v8  ;;  %v819_v8 = vld [vmem:[%s3297_s7 + $0x18] sm:$0xff] }
 0x20d   :  { %1730 = vmatpush3.msra.mxu1 %v391_v10  ;;  %v592_v10 = vld [vmem:[%s3295_s5] sm:$0xff]  ;;  %s2137_s5 = smov 108  }
 0x20e   :  { %1731 = vmatprep.subr.mxu1 %v406_v11  ;;  %1779 = vmatpush3.msra.mxu0 %v592_v10  ;;  %v847_v11 = vld [vmem:[%s3297_s7 + $0xf8] sm:$0xff]  ;;  %v850_v10 = vld [vmem:[%s3297_s7 + $0x110] sm:$0xff] }
 0x20f   :  { %1732 = vmatpush3.msra.mxu1 %v390_v12  ;;  %1800 = vmatprep.subr.mxu0 %v847_v11  ;;  %v818_v11 = vld [vmem:[%s3297_s7 + $0x10] sm:$0xff] }
 0x210   :  { %1733 = vmatprep.subr.mxu1 %v405_v13 }
 0x211   :  { %1734 = vmatpush3.msra.mxu1 %v389_v14 }
 0x212   :  { %1735 = vmatprep.subr.mxu1 %v404_v15  ;;  %v1611_v15 = vld [vmem:[%s3294_s4] ss:$0 sm:$0xff]  ;;  %s2139_s4 = smov 88  }
 0x213   :  { %1736 = vmatpush3.msra.mxu1 %v388_v16 }
 0x214   :  { %1737 = vmatprep.subr.mxu1 %v403_v17 }
 0x215   :  { %1738 = vmatpush3.msra.mxu1 %v387_v18 }
 0x216   :  { %1739 = vmatprep.subr.mxu1 %v402_v19 }
 0x217   :  { %1740 = vmatpush3.msra.mxu1 %v386_v20 }
 0x218   :  { %1741 = vmatprep.subr.mxu1 %v401_v21 }
 0x219   :  { %1742 = vmatpush3.msra.mxu1 %v385_v22 }
 0x21a   :  { %1743 = vmatprep.subr.mxu1 %v400_v23 }
 0x21b   :  { %1744 = vmatpush3.msra.mxu1 %v384_v24 }
 0x21c   :  { %558 = vmatmul.mubr.f32.vlgmr.msra.gmra.mxu1 %v350_v25  ;;  %1914 = vmatprep.subr.mxu1 %v2126_v0 }
 0x21d   :  { %1915 = vmatpush3.msra.mxu1 %v639_v27  ;;  %1946 = vmatprep.mubr.msk.f32.mxu1 %vm2131_vm9, %v2126_v0 }
 0x21e   :  { %1916 = vmatprep.subr.mxu1 %v2126_v0 }
 0x21f   :  { %1917 = vmatpush3.msra.mxu1 %v638_v30 }
 0x220   :  { %1918 = vmatprep.subr.mxu1 %v2126_v0 }
 0x221   :  { %1919 = vmatpush3.msra.mxu1 %v637_v33 }
 0x222   :  { %1920 = vmatprep.subr.mxu1 %v2126_v0 }
 0x223   :  { %1921 = vmatpush3.msra.mxu1 %v636_v36  ;;  %v846_v36 = vld [vmem:[%s3297_s7 + $0xf0] sm:$0xff] }
 0x224   :  { %1922 = vmatprep.subr.mxu1 %v2126_v0 }
 0x225   :  { %1923 = vmatpush3.msra.mxu1 %v635_v39  ;;  %v845_v39 = vld [vmem:[%s3297_s7 + $0xe8] sm:$0xff] }
 0x226   :  { %1924 = vmatprep.subr.mxu1 %v2126_v0 }
 0x227   :  { %1925 = vmatpush3.msra.mxu1 %v634_v42  ;;  %v844_v42 = vld [vmem:[%s3297_s7 + $0xe0] sm:$0xff] }
 0x228   :  { %1926 = vmatprep.subr.mxu1 %v2126_v0 }
 0x229   :  { %1927 = vmatpush3.msra.mxu1 %v633_v45  ;;  %v843_v45 = vld [vmem:[%s3297_s7 + $0xd8] sm:$0xff] }
 0x22a   :  { %1928 = vmatprep.subr.mxu1 %v2126_v0 }
 0x22b   :  { %1929 = vmatpush3.msra.mxu1 %v632_v48  ;;  %v2710_v48 = vld [vmem:[#allocation8] sm:$0xff] }
 0x22c   :  { %1930 = vmatprep.subr.mxu1 %v2126_v0 }
 0x22d   :  { %1931 = vmatpush3.msra.mxu1 %v631_v51  ;;  %v841_v51 = vld [vmem:[%s3297_s7 + $0xc8] sm:$0xff] }
 0x22e   :  { %1932 = vmatprep.subr.mxu1 %v2126_v0 }
 0x22f   :  { %1933 = vmatpush3.msra.mxu1 %v630_v54  ;;  %v840_v54 = vld [vmem:[%s3297_s7 + $0xc0] sm:$0xff] }
 0x230   :  { %1934 = vmatprep.subr.mxu1 %v2126_v0 }
 0x231   :  { %1935 = vmatpush3.msra.mxu1 %v629_v57  ;;  %v839_v57 = vld [vmem:[%s3297_s7 + $0xb8] sm:$0xff] }
 0x232   :  { %1936 = vmatprep.subr.mxu1 %v2126_v0 }
 0x233   :  { %1937 = vmatpush3.msra.mxu1 %v628_v60  ;;  %v838_v60 = vld [vmem:[%s3297_s7 + $0xb0] sm:$0xff] }
 0x234   :  { %1938 = vmatprep.subr.mxu1 %v2126_v0 }
 0x235   :  { %1939 = vmatpush3.msra.mxu1 %v627_v63  ;;  %v837_v63 = vld [vmem:[%s3297_s7 + $0xa8] sm:$0xff] }
 0x236   :  { %1940 = vmatprep.subr.mxu1 %v2126_v0 }
 0x237   :  { %1941 = vmatpush3.msra.mxu1 %v626_v3  ;;  %v836_v3 = vld [vmem:[%s3297_s7 + $0xa0] sm:$0xff] }
 0x238   :  { %1942 = vmatprep.subr.mxu1 %v2126_v0 }
 0x239   :  { %1943 = vmatpush3.msra.mxu1 %v625_v6  ;;  %v835_v6 = vld [vmem:[%s3297_s7 + $0x98] sm:$0xff] }
 0x23a   :  { %1944 = vmatprep.subr.mxu1 %v2126_v0 }
 0x23b   :  { %1945 = vmatpush3.msra.mxu1 %v624_v9  ;;  %v834_v9 = vld [vmem:[%s3297_s7 + $0x90] sm:$0xff] }
 0x23c   :  { %1949 = vmatprep.subr.mxu1 %v2126_v0 }
 0x2bc   :  { %v1710_v12 = vpop.f32.mrf.mxu1 }
 0x2be   :  { %v1711_v13 = vpop.f32.mrf.mxu1 }
 0x2bf   :  { %v1712_v14 = vadd.f32 %v1711_v13, %v1710_v12  ;;  %v833_v12 = vld [vmem:[%s3297_s7 + $0x88] sm:$0xff] }
 0x2c0   :  { %v849_v13 = vld [vmem:[%s3297_s7 + $0x108] sm:$0xff] }
 0x2c1   :  { %v490_v18 = vadd.f32 %v1712_v14, %v1611_v15  ;;  %v817_v14 = vld [vmem:[%s3297_s7 + $0x8] sm:$0xff]  ;;  %v832_v15 = vld [vmem:[%s3297_s7 + $0x80] sm:$0xff] }
 0x2dc   :  { %v1745_v16 = vpop.f32.mrf.mxu1 }
 0x2de   :  { %v1746_v17 = vpop.f32.mrf.mxu1 }
 0x2df   :  { %v1747_v19 = vadd.f32 %v1746_v17, %v1745_v16  ;;  %v848_v16 = vld [vmem:[%s3297_s7 + $0x100] sm:$0xff] }
 0x2e0   :  { %v816_v17 = vld [vmem:[%s3297_s7] sm:$0xff] }
 0x2e1   :  { %v560_v20 = vadd.f32 %v1747_v19, %v490_v18 }
 0x2e3   :  { %v563_v21 = vmax.f32 %v560_v20, 0.0 }
 0x2e5   :  { %566 = vst [vmem:[#allocation6 + $0x1] ss:$6 sps:$4 sm:$0xff] %v563_v21   ;;  %v1612_v21 = vld [vmem:[%s3296_s6] ss:$0 sm:$0xff]  ;;  %s2133_s6 = smov 124  }
 0x2ec   :  { %v570_v22 = vld [vmem:[#allocation6 + $0x1] sm:$0xf]  ;;  %v579_v23 = vld [vmem:[#allocation6 + $0x7] sm:$0xf] }
 0x2ed   :  { %v572_v24 = vld [vmem:[#allocation6 + $0x2] sm:$0xf]  ;;  %571 = vst [vmem:[#allocation7 + $0x8] sm:$0xf] %v570_v22  ;;  %v581_v25 = vrot.slane %v579_v23, 4 }
 0x2ee   :  { %573 = vst [vmem:[#allocation7 + $0x10] sm:$0xf] %v572_v24  ;;  %v584_v26 = vld [vmem:[#allocation6 + $0x8] sm:$0xf]  ;;  %v568_v27 = vld [vmem:[#allocation6] sm:$0xf] }
 0x2ef   :  { %v586_v28 = vrot.slane %v584_v26, 4  ;;  %569 = vst [vmem:[#allocation7] sm:$0xf] %v568_v27  ;;  %v574_v29 = vld [vmem:[#allocation6 + $0x6] sm:$0xf] }
 0x2f0   :  { %583 = vst [vmem:[#allocation7 + $0x8] sm:$0xf0] %v581_v25  ;;  %v576_v30 = vrot.slane %v574_v29, 4 }
 0x2f1   :  { %588 = vst [vmem:[#allocation7 + $0x10] sm:$0xf0] %v586_v28 }
 0x2f2   :  { %578 = vst [vmem:[#allocation7] sm:$0xf0] %v576_v30 }
 0x2f7   :  { %v590_v31 = vld [vmem:[#allocation7 + $0x8] sm:$0xff] }
 0x2f8   :  { %711 = vmatprep.mubr.f32.mxu0 %v590_v31  ;;  %v591_v33 = vld [vmem:[#allocation7 + $0x10] sm:$0xff] }
 0x2f9   :  { %1947 = vmatmul.mubr.f32.vlgmr.msra.gmra.mxu1 %v591_v33  ;;  %v589_v34 = vld [vmem:[#allocation7] sm:$0xff] }
 0x2fa   :  { %712 = vmatmul.mubr.f32.vlgmr.msra.gmra.mxu0 %v589_v34  ;;  %1950 = vmatpush3.msra.mxu1 %v863_v32 }
 0x2fb   :  { %1951 = vmatprep.subr.mxu1 %v2126_v0  ;;  %1981 = vmatprep.mubr.msk.f32.mxu1 %vm2131_vm9, %v2126_v0 }
 0x2fc   :  { %1801 = vmatpush3.msra.mxu0 %v831_v35  ;;  %1952 = vmatpush3.msra.mxu1 %v862_v37 }
 0x2fd   :  { %1802 = vmatprep.subr.mxu0 %v846_v36  ;;  %1953 = vmatprep.subr.mxu1 %v2126_v0 }
 0x2fe   :  { %1803 = vmatpush3.msra.mxu0 %v830_v38  ;;  %1954 = vmatpush3.msra.mxu1 %v861_v40  ;;  %v1007_v40 = vld [vmem:[%s3298_s8 + $0x10] sm:$0xff] }
 0x2ff   :  { %1804 = vmatprep.subr.mxu0 %v845_v39  ;;  %1955 = vmatprep.subr.mxu1 %v2126_v0  ;;  %v1008_v39 = vld [vmem:[%s3298_s8 + $0x18] sm:$0xff] }
 0x300   :  { %1805 = vmatpush3.msra.mxu0 %v829_v41  ;;  %1956 = vmatpush3.msra.mxu1 %v860_v43  ;;  %v1006_v41 = vld [vmem:[%s3298_s8 + $0x8] sm:$0xff]  ;;  %v1143_v43 = vld [vmem:[%s3299_s9 + $0xf8] sm:$0xff] }
 0x301   :  { %1806 = vmatprep.subr.mxu0 %v844_v42  ;;  %1957 = vmatprep.subr.mxu1 %v2126_v0  ;;  %v842_v0 = vld [vmem:[%s3297_s7 + $0xd0] sm:$0xff]  ;;  %v1005_v42 = vld [vmem:[%s3298_s8] sm:$0xff]  ;;  %s2134_s7 = smov 112   ;;  %s2149_s8 = smov 52  }
 0x302   :  { %1807 = vmatpush3.msra.mxu0 %v828_v44  ;;  %1958 = vmatpush3.msra.mxu1 %v859_v46  ;;  %v1159_v44 = vld [vmem:[%s3299_s9 + $0x178] sm:$0xff]  ;;  %v1157_v46 = vld [vmem:[%s3299_s9 + $0x168] sm:$0xff] }
 0x303   :  { %1808 = vmatprep.subr.mxu0 %v843_v45  ;;  %1959 = vmatprep.subr.mxu1 %v2710_v48  ;;  %v1158_v45 = vld [vmem:[%s3299_s9 + $0x170] sm:$0xff] }
 0x304   :  { %1809 = vmatpush3.msra.mxu0 %v827_v47  ;;  %1960 = vmatpush3.msra.mxu1 %v858_v49  ;;  %v1156_v47 = vld [vmem:[%s3299_s9 + $0x160] sm:$0xff] }
 0x305   :  { %1810 = vmatprep.subr.mxu0 %v842_v0  ;;  %1961 = vmatprep.subr.mxu1 %v2710_v48 }
 0x306   :  { %1811 = vmatpush3.msra.mxu0 %v826_v50  ;;  %1962 = vmatpush3.msra.mxu1 %v857_v52 }
 0x307   :  { %1812 = vmatprep.subr.mxu0 %v841_v51  ;;  %1963 = vmatprep.subr.mxu1 %v2710_v48 }
 0x308   :  { %1813 = vmatpush3.msra.mxu0 %v825_v53  ;;  %1964 = vmatpush3.msra.mxu1 %v856_v55  ;;  %v1127_v55 = vld [vmem:[%s3299_s9 + $0x78] sm:$0xff] }
 0x309   :  { %1814 = vmatprep.subr.mxu0 %v840_v54  ;;  %1965 = vmatprep.subr.mxu1 %v2710_v48 }
 0x30a   :  { %1815 = vmatpush3.msra.mxu0 %v824_v56  ;;  %1966 = vmatpush3.msra.mxu1 %v855_v58  ;;  %v1142_v56 = vld [vmem:[%s3299_s9 + $0xf0] sm:$0xff]  ;;  %v1141_v58 = vld [vmem:[%s3299_s9 + $0xe8] sm:$0xff] }
 0x30b   :  { %1816 = vmatprep.subr.mxu0 %v839_v57  ;;  %1967 = vmatprep.subr.mxu1 %v2710_v48  ;;  %v1126_v57 = vld [vmem:[%s3299_s9 + $0x70] sm:$0xff] }
 0x30c   :  { %1817 = vmatpush3.msra.mxu0 %v823_v59  ;;  %1968 = vmatpush3.msra.mxu1 %v854_v61  ;;  %v1125_v59 = vld [vmem:[%s3299_s9 + $0x68] sm:$0xff]  ;;  %v1124_v61 = vld [vmem:[%s3299_s9 + $0x60] sm:$0xff] }
 0x30d   :  { %1818 = vmatprep.subr.mxu0 %v838_v60  ;;  %1969 = vmatprep.subr.mxu1 %v2710_v48  ;;  %v1140_v60 = vld [vmem:[%s3299_s9 + $0xe0] sm:$0xff] }
 0x30e   :  { %1819 = vmatpush3.msra.mxu0 %v822_v62  ;;  %1970 = vmatpush3.msra.mxu1 %v853_v1  ;;  %v1139_v62 = vld [vmem:[%s3299_s9 + $0xd8] sm:$0xff] }
 0x30f   :  { %1820 = vmatprep.subr.mxu0 %v837_v63  ;;  %1971 = vmatprep.subr.mxu1 %v2710_v48  ;;  %v1155_v63 = vld [vmem:[%s3299_s9 + $0x158] sm:$0xff] }
 0x310   :  { %1821 = vmatpush3.msra.mxu0 %v821_v2  ;;  %1972 = vmatpush3.msra.mxu1 %v852_v4  ;;  %v1123_v1 = vld [vmem:[%s3299_s9 + $0x58] sm:$0xff]  ;;  %v1138_v2 = vld [vmem:[%s3299_s9 + $0xd0] sm:$0xff] }
 0x311   :  { %1822 = vmatprep.subr.mxu0 %v836_v3  ;;  %1973 = vmatprep.subr.mxu1 %v2710_v48  ;;  %v1154_v3 = vld [vmem:[%s3299_s9 + $0x150] sm:$0xff] }
 0x312   :  { %1823 = vmatpush3.msra.mxu0 %v820_v5  ;;  %1974 = vmatpush3.msra.mxu1 %v851_v7  ;;  %v1122_v4 = vld [vmem:[%s3299_s9 + $0x50] sm:$0xff]  ;;  %v1137_v5 = vld [vmem:[%s3299_s9 + $0xc8] sm:$0xff] }
 0x313   :  { %1824 = vmatprep.subr.mxu0 %v835_v6  ;;  %1975 = vmatprep.subr.mxu1 %v2710_v48  ;;  %v1153_v6 = vld [vmem:[%s3299_s9 + $0x148] sm:$0xff] }
 0x314   :  { %1825 = vmatpush3.msra.mxu0 %v819_v8  ;;  %1976 = vmatpush3.msra.mxu1 %v850_v10  ;;  %v1121_v7 = vld [vmem:[%s3299_s9 + $0x48] sm:$0xff]  ;;  %v1136_v8 = vld [vmem:[%s3299_s9 + $0xc0] sm:$0xff] }
 0x315   :  { %1826 = vmatprep.subr.mxu0 %v834_v9  ;;  %1977 = vmatprep.subr.mxu1 %v2710_v48  ;;  %v1152_v9 = vld [vmem:[%s3299_s9 + $0x140] sm:$0xff] }
 0x316   :  { %1827 = vmatpush3.msra.mxu0 %v818_v11  ;;  %1978 = vmatpush3.msra.mxu1 %v849_v13  ;;  %v1120_v10 = vld [vmem:[%s3299_s9 + $0x40] sm:$0xff]  ;;  %v1135_v11 = vld [vmem:[%s3299_s9 + $0xb8] sm:$0xff] }
 0x317   :  { %1828 = vmatprep.subr.mxu0 %v833_v12  ;;  %1979 = vmatprep.subr.mxu1 %v2710_v48  ;;  %v1151_v12 = vld [vmem:[%s3299_s9 + $0x138] sm:$0xff] }
 0x318   :  { %1829 = vmatpush3.msra.mxu0 %v817_v14  ;;  %1980 = vmatpush3.msra.mxu1 %v848_v16  ;;  %v1119_v13 = vld [vmem:[%s3299_s9 + $0x38] sm:$0xff]  ;;  %v1134_v14 = vld [vmem:[%s3299_s9 + $0xb0] sm:$0xff] }
 0x319   :  { %1830 = vmatprep.subr.mxu0 %v832_v15  ;;  %1995 = vmatprep.subr.mxu1 %v2710_v48  ;;  %v1150_v15 = vld [vmem:[%s3299_s9 + $0x130] sm:$0xff] }
 0x31a   :  { %1831 = vmatpush3.msra.mxu0 %v816_v17  ;;  %v1118_v16 = vld [vmem:[%s3299_s9 + $0x30] sm:$0xff]  ;;  %v1133_v17 = vld [vmem:[%s3299_s9 + $0xa8] sm:$0xff] }
 0x31b   :  { %1984 = vmatprep.subr.mxu0 %v2710_v48 }
 0x3b9   :  { %v783_v18 = vpop.f32.mrf.mxu1 }
 0x3ba   :  { %v1780_v19 = vpop.f32.mrf.mxu0 }
 0x3bb   :  { %v1948_v20 = vpop.f32.mrf.mxu1 }
 0x3bc   :  { %v1781_v22 = vpop.f32.mrf.mxu0  ;;  %v1132_v20 = vld [vmem:[%s3299_s9 + $0xa0] sm:$0xff] }
 0x3bd   :  { %v1782_v23 = vadd.f32 %v1781_v22, %v1780_v19  ;;  %v1117_v19 = vld [vmem:[%s3299_s9 + $0x28] sm:$0xff]  ;;  %v1116_v22 = vld [vmem:[%s3299_s9 + $0x20] sm:$0xff] }
 0x3bf   :  { %v714_v24 = vadd.f32 %v1782_v23, %v1612_v21  ;;  %v1148_v21 = vld [vmem:[%s3299_s9 + $0x120] sm:$0xff]  ;;  %v1131_v23 = vld [vmem:[%s3299_s9 + $0x98] sm:$0xff] }
 0x3c1   :  { %v2827_v25 = vadd.f32 %v783_v18, %v714_v24  ;;  %v1149_v18 = vld [vmem:[%s3299_s9 + $0x128] sm:$0xff]  ;;  %v1147_v24 = vld [vmem:[%s3299_s9 + $0x118] sm:$0xff] }
 0x3c3   :  { %v787_v26 = vmax.f32 %v2827_v25, 0.0 }
 0x3c5   :  { %790 = vst [vmem:[#allocation8 + $0x1] ss:$6 sps:$4 sm:$0xff] %v787_v26   ;;  %v1115_v26 = vld [vmem:[%s3299_s9 + $0x18] sm:$0xff] }
 0x3cc   :  { %v794_v27 = vld [vmem:[#allocation8 + $0x1] sm:$0xf]  ;;  %v803_v28 = vld [vmem:[#allocation8 + $0x7] sm:$0xf] }
 0x3cd   :  { %v796_v29 = vld [vmem:[#allocation8 + $0x2] sm:$0xf]  ;;  %795 = vst [vmem:[#allocation9] sm:$0xf] %v794_v27  ;;  %v805_v30 = vrot.slane %v803_v28, 4  ;;  %v1130_v27 = vld [vmem:[%s3299_s9 + $0x90] sm:$0xff] }
 0x3ce   :  { %797 = vst [vmem:[#allocation9 + $0x10] sm:$0xf] %v796_v29  ;;  %v808_v31 = vld [vmem:[#allocation8 + $0x8] sm:$0xf]  ;;  %v792_v32 = vld [vmem:[#allocation8] sm:$0xf] }
 0x3cf   :  { %v810_v33 = vrot.slane %v808_v31, 4  ;;  %793 = vst [vmem:[#allocation9 + $0x8] sm:$0xf] %v792_v32  ;;  %v798_v34 = vld [vmem:[#allocation8 + $0x6] sm:$0xf] }
 0x3d0   :  { %807 = vst [vmem:[#allocation9] sm:$0xf0] %v805_v30  ;;  %v800_v35 = vrot.slane %v798_v34, 4  ;;  %v1146_v28 = vld [vmem:[%s3299_s9 + $0x110] sm:$0xff]  ;;  %v1129_v30 = vld [vmem:[%s3299_s9 + $0x88] sm:$0xff]  ;;  %v1144_v34 = vld [vmem:[%s3299_s9 + $0x100] sm:$0xff] }
 0x3d1   :  { %812 = vst [vmem:[#allocation9 + $0x10] sm:$0xf0] %v810_v33  ;;  %v1114_v29 = vld [vmem:[%s3299_s9 + $0x10] sm:$0xff]  ;;  %v1145_v31 = vld [vmem:[%s3299_s9 + $0x108] sm:$0xff]  ;;  %v1128_v33 = vld [vmem:[%s3299_s9 + $0x80] sm:$0xff] }
 0x3d2   :  { %802 = vst [vmem:[#allocation9 + $0x8] sm:$0xf0] %v800_v35  ;;  %v1113_v32 = vld [vmem:[%s3299_s9 + $0x8] sm:$0xff]  ;;  %v1112_v35 = vld [vmem:[%s3299_s9] sm:$0xff]  ;;  %s2145_s9 = smov 64  }
 0x3d7   :  { %v814_v36 = vld [vmem:[#allocation9] sm:$0xff] }
 0x3d8   :  { %928 = vmatprep.mubr.f32.mxu0 %v814_v36  ;;  %v815_v37 = vld [vmem:[#allocation9 + $0x10] sm:$0xff] }
 0x3d9   :  { %1982 = vmatmul.mubr.f32.vlgmr.msra.gmra.mxu1 %v815_v37  ;;  %v813_v38 = vld [vmem:[#allocation9 + $0x8] sm:$0xff] }
 0x3da   :  { %929 = vmatmul.mubr.f32.vlgmr.msra.gmra.mxu0 %v813_v38  ;;  %2027 = vmatprep.mubr.msk.f32.mxu1 %vm2131_vm9, %v2710_v48 }
 0x3db   :  { %1992 = vmatprep.mubr.msk.f32.mxu0 %vm2131_vm9, %v2710_v48  ;;  %1985 = vmatpush3.msra.mxu0 %v1008_v39 }
 0x3dc   :  { %1986 = vmatprep.subr.mxu0 %v2710_v48  ;;  %1996 = vmatpush3.msra.mxu1 %v1159_v44 }
 0x3dd   :  { %1987 = vmatpush3.msra.mxu0 %v1007_v40  ;;  %1997 = vmatprep.subr.mxu1 %v2710_v48 }
 0x3de   :  { %1988 = vmatprep.subr.mxu0 %v2710_v48  ;;  %1998 = vmatpush3.msra.mxu1 %v1158_v45 }
 0x3df   :  { %1989 = vmatpush3.msra.mxu0 %v1006_v41  ;;  %1999 = vmatprep.subr.mxu1 %v2710_v48 }
 0x3e0   :  { %1990 = vmatprep.subr.mxu0 %v2710_v48  ;;  %2000 = vmatpush3.msra.mxu1 %v1157_v46 }
 0x3e1   :  { %1991 = vmatpush3.msra.mxu0 %v1005_v42  ;;  %2001 = vmatprep.subr.mxu1 %v2710_v48 }
 0x3e2   :  { %1857 = vmatprep.subr.mxu0 %v1143_v43  ;;  %2002 = vmatpush3.msra.mxu1 %v1156_v47 }
 0x3e3   :  { %2003 = vmatprep.subr.mxu1 %v2710_v48 }
 0x3e4   :  { %2004 = vmatpush3.msra.mxu1 %v1155_v63 }
 0x3e5   :  { %2005 = vmatprep.subr.mxu1 %v2710_v48 }
 0x3e6   :  { %2006 = vmatpush3.msra.mxu1 %v1154_v3 }
 0x3e7   :  { %2007 = vmatprep.subr.mxu1 %v2710_v48 }
 0x3e8   :  { %2008 = vmatpush3.msra.mxu1 %v1153_v6 }
 0x3e9   :  { %2009 = vmatprep.subr.mxu1 %v2710_v48 }
 0x3ea   :  { %2010 = vmatpush3.msra.mxu1 %v1152_v9 }
 0x3eb   :  { %2011 = vmatprep.subr.mxu1 %v2710_v48 }
 0x3ec   :  { %2012 = vmatpush3.msra.mxu1 %v1151_v12 }
 0x3ed   :  { %2013 = vmatprep.subr.mxu1 %v2710_v48 }
 0x3ee   :  { %2014 = vmatpush3.msra.mxu1 %v1150_v15 }
 0x3ef   :  { %2015 = vmatprep.subr.mxu1 %v2710_v48 }
 0x3f0   :  { %2016 = vmatpush3.msra.mxu1 %v1149_v18 }
 0x3f1   :  { %2017 = vmatprep.subr.mxu1 %v2710_v48 }
 0x3f2   :  { %2018 = vmatpush3.msra.mxu1 %v1148_v21 }
 0x3f3   :  { %2019 = vmatprep.subr.mxu1 %v2710_v48 }
 0x3f4   :  { %2020 = vmatpush3.msra.mxu1 %v1147_v24 }
 0x3f5   :  { %2021 = vmatprep.subr.mxu1 %v2710_v48 }
 0x3f6   :  { %2022 = vmatpush3.msra.mxu1 %v1146_v28 }
 0x3f7   :  { %2023 = vmatprep.subr.mxu1 %v2710_v48 }
 0x3f8   :  { %2024 = vmatpush3.msra.mxu1 %v1145_v31 }
 0x3f9   :  { %2025 = vmatprep.subr.mxu1 %v2710_v48 }
 0x3fa   :  { %2026 = vmatpush3.msra.mxu1 %v1144_v34 }
 0x499   :  { %v1000_v0 = vpop.f32.mrf.mxu1 }
 0x49a   :  { %v1832_v49 = vpop.f32.mrf.mxu0 }
 0x49b   :  { %v1983_v50 = vpop.f32.mrf.mxu1 }
 0x49c   :  { %v1833_v51 = vpop.f32.mrf.mxu0 }
 0x49d   :  { %v1834_v52 = vadd.f32 %v1833_v51, %v1832_v49  ;;  %v1304_v51 = vld [vmem:[%s3300_s10 + $0x18] sm:$0xff] }
 0x49f   :  { %v1001_v53 = vadd.f32 %v1834_v52, %v1000_v0  ;;  %v1303_v52 = vld [vmem:[%s3300_s10 + $0x10] sm:$0xff] }
 0x4a1   :  { %v1004_v54 = vmax.f32 %v1001_v53, 0.0  ;;  %v1302_v53 = vld [vmem:[%s3300_s10 + $0x8] sm:$0xff] }
 0x4a3   :  { %1993 = vmatmul.mubr.msk.f32.vlgmr.msra.gmra.mxu0 %vm1009_vm10, %v1004_v54  ;;  %v1301_v54 = vld [vmem:[%s3300_s10] sm:$0xff]  ;;  %s2154_s10 = smov 28  }
 0x4a4   :  { %1858 = vmatpush3.msra.mxu0 %v1127_v55 }
 0x4a5   :  { %1859 = vmatprep.subr.mxu0 %v1142_v56 }
 0x4a6   :  { %1860 = vmatpush3.msra.mxu0 %v1126_v57 }
 0x4a7   :  { %1861 = vmatprep.subr.mxu0 %v1141_v58 }
 0x4a8   :  { %1862 = vmatpush3.msra.mxu0 %v1125_v59 }
 0x4a9   :  { %1863 = vmatprep.subr.mxu0 %v1140_v60 }
 0x4aa   :  { %1864 = vmatpush3.msra.mxu0 %v1124_v61 }
 0x4ab   :  { %1865 = vmatprep.subr.mxu0 %v1139_v62 }
 0x4ac   :  { %1866 = vmatpush3.msra.mxu0 %v1123_v1 }
 0x4ad   :  { %1867 = vmatprep.subr.mxu0 %v1138_v2 }
 0x4ae   :  { %1868 = vmatpush3.msra.mxu0 %v1122_v4 }
 0x4af   :  { %1869 = vmatprep.subr.mxu0 %v1137_v5 }
 0x4b0   :  { %1870 = vmatpush3.msra.mxu0 %v1121_v7 }
 0x4b1   :  { %1871 = vmatprep.subr.mxu0 %v1136_v8 }
 0x4b2   :  { %1872 = vmatpush3.msra.mxu0 %v1120_v10 }
 0x4b3   :  { %1873 = vmatprep.subr.mxu0 %v1135_v11 }
 0x4b4   :  { %1874 = vmatpush3.msra.mxu0 %v1119_v13 }
 0x4b5   :  { %1875 = vmatprep.subr.mxu0 %v1134_v14 }
 0x4b6   :  { %1876 = vmatpush3.msra.mxu0 %v1118_v16 }
 0x4b7   :  { %1877 = vmatprep.subr.mxu0 %v1133_v17 }
 0x4b8   :  { %1878 = vmatpush3.msra.mxu0 %v1117_v19 }
 0x4b9   :  { %1879 = vmatprep.subr.mxu0 %v1132_v20 }
 0x4ba   :  { %1880 = vmatpush3.msra.mxu0 %v1116_v22 }
 0x4bb   :  { %1881 = vmatprep.subr.mxu0 %v1131_v23 }
 0x4bc   :  { %1882 = vmatpush3.msra.mxu0 %v1115_v26 }
 0x4bd   :  { %1883 = vmatprep.subr.mxu0 %v1130_v27 }
 0x4be   :  { %1884 = vmatpush3.msra.mxu0 %v1114_v29 }
 0x4bf   :  { %1885 = vmatprep.subr.mxu0 %v1129_v30 }
 0x4c0   :  { %1886 = vmatpush3.msra.mxu0 %v1113_v32 }
 0x4c1   :  { %1887 = vmatprep.subr.mxu0 %v1128_v33 }
 0x4c2   :  { %1888 = vmatpush3.msra.mxu0 %v1112_v35 }
 0x4c3   :  { %2030 = vmatprep.subr.mxu0 %v2710_v48 }
 0x563   :  { %v1079_v36 = vpop.f32.mrf.mxu0 }
 0x564   :  { %v1080_v37 = vadd.f32 %v1079_v36, %v2827_v25 }
 0x565   :  { %v1994_v38 = vpop.f32.mrf.mxu0 }
 0x566   :  { %v1083_v39 = vmax.f32 %v1080_v37, 0.0 }
 0x568   :  { %1086 = vst [vmem:[#allocation10 + $0x1] ss:$6 sps:$4 sm:$0xff] %v1083_v39  }
 0x56f   :  { %v1090_v40 = vld [vmem:[#allocation10 + $0x1] sm:$0xf]  ;;  %v1099_v41 = vld [vmem:[#allocation10 + $0x7] sm:$0xf] }
 0x570   :  { %v1092_v42 = vld [vmem:[#allocation10 + $0x2] sm:$0xf]  ;;  %1091 = vst [vmem:[#allocation11 + $0x8] sm:$0xf] %v1090_v40  ;;  %v1101_v43 = vrot.slane %v1099_v41, 4 }
 0x571   :  { %1093 = vst [vmem:[#allocation11 + $0x10] sm:$0xf] %v1092_v42  ;;  %v1104_v44 = vld [vmem:[#allocation10 + $0x8] sm:$0xf]  ;;  %v1088_v45 = vld [vmem:[#allocation10] sm:$0xf] }
 0x572   :  { %v1106_v46 = vrot.slane %v1104_v44, 4  ;;  %1089 = vst [vmem:[#allocation11] sm:$0xf] %v1088_v45  ;;  %v1094_v47 = vld [vmem:[#allocation10 + $0x6] sm:$0xf] }
 0x573   :  { %1103 = vst [vmem:[#allocation11 + $0x8] sm:$0xf0] %v1101_v43  ;;  %v1096_v0 = vrot.slane %v1094_v47, 4 }
 0x574   :  { %1108 = vst [vmem:[#allocation11 + $0x10] sm:$0xf0] %v1106_v46 }
 0x575   :  { %1098 = vst [vmem:[#allocation11] sm:$0xf0] %v1096_v0 }
 0x57a   :  { %v1110_v49 = vld [vmem:[#allocation11 + $0x8] sm:$0xff] }
 0x57b   :  { %1224 = vmatprep.mubr.f32.mxu0 %v1110_v49  ;;  %v1111_v25 = vld [vmem:[#allocation11 + $0x10] sm:$0xff] }
 0x57c   :  { %2028 = vmatmul.mubr.f32.vlgmr.msra.gmra.mxu1 %v1111_v25  ;;  %v1109_v50 = vld [vmem:[#allocation11] sm:$0xff] }
 0x57d   :  { %1225 = vmatmul.mubr.f32.vlgmr.msra.gmra.mxu0 %v1109_v50 }
 0x57e   :  { %2038 = vmatprep.mubr.msk.f32.mxu0 %vm2131_vm9, %v2710_v48  ;;  %2031 = vmatpush3.msra.mxu0 %v1304_v51 }
 0x57f   :  { %2032 = vmatprep.subr.mxu0 %v2710_v48 }
 0x580   :  { %2033 = vmatpush3.msra.mxu0 %v1303_v52 }
 0x581   :  { %2034 = vmatprep.subr.mxu0 %v2710_v48 }
 0x582   :  { %2035 = vmatpush3.msra.mxu0 %v1302_v53 }
 0x583   :  { %2036 = vmatprep.subr.mxu0 %v2710_v48 }
 0x584   :  { %2037 = vmatpush3.msra.mxu0 %v1301_v54 }
 0x63c   :  { %v1296_v55 = vpop.f32.mrf.mxu1 }
 0x63d   :  { %v1889_v56 = vpop.f32.mrf.mxu0 }
 0x63e   :  { %v2029_v57 = vpop.f32.mrf.mxu1 }
 0x63f   :  { %v1890_v58 = vpop.f32.mrf.mxu0 }
 0x640   :  { %v1891_v59 = vadd.f32 %v1890_v58, %v1889_v56 }
 0x642   :  { %v1297_v60 = vadd.f32 %v1891_v59, %v1296_v55 }
 0x644   :  { %v1300_v61 = vmax.f32 %v1297_v60, 0.0 }
 0x646   :  { %2039 = vmatmul.mubr.msk.f32.vlgmr.msra.gmra.mxu0 %vm1009_vm10, %v1300_v61 }
 0x706   :  { %v1374_v62 = vpop.f32.mrf.mxu0 }
 0x707   :  { %v1375_v63 = vadd.f32 %v1374_v62, %v1080_v37 }
 0x708   :  { %v2040_v1 = vpop.f32.mrf.mxu0 }
 0x709   :  { %v1378_v2 = vmax.f32 %v1375_v63, 0.0 }
 0x70b   :  { %1380 = vst.msk [vmem:[%s3301_s11] sm:$0xf] %vm1379_vm11, %v1378_v2  ;;  %1387 = vrot.lane.b32.xlu1 %v1378_v2, %s2132_s15  ;;  %1382 = vrot.lane.b32.xlu0 %v1378_v2, %s2133_s6 }
 0x70c   :  { %1646 = vst.msk [vmem:[%s3301_s11 + $0x7c] sm:$0xf0] %vm1538_vm12, %v1378_v2 }
 0x70f   :  { %1397 = vrot.lane.b32.xlu1 %v1378_v2, %s2134_s7  ;;  %1392 = vrot.lane.b32.xlu0 %v1378_v2, %s2135_s3 }
 0x713   :  { %1407 = vrot.lane.b32.xlu1 %v1378_v2, %s2136_s2  ;;  %1402 = vrot.lane.b32.xlu0 %v1378_v2, %s2137_s5 }
 0x717   :  { %1417 = vrot.lane.b32.xlu1 %v1378_v2, %s2129_s29  ;;  %1412 = vrot.lane.b32.xlu0 %v1378_v2, %s2138_s16  ;;  %s2148_s29 = smov 60  }
 0x71b   :  { %1427 = vrot.lane.b32.xlu1 %v1378_v2, %s2139_s4  ;;  %1422 = vrot.lane.b32.xlu0 %v1378_v2, %s2140_s17 }
 0x71f   :  { %1437 = vrot.lane.b32.xlu1 %v1378_v2, %s2141_s18  ;;  %1432 = vrot.lane.b32.xlu0 %v1378_v2, %s2142_s19 }
 0x723   :  { %1447 = vrot.lane.b32.xlu1 %v1378_v2, %s2143_s20  ;;  %1442 = vrot.lane.b32.xlu0 %v1378_v2, %s2144_s22 }
 0x727   :  { %1457 = vrot.lane.b32.xlu1 %v1378_v2, %s2145_s9  ;;  %1452 = vrot.lane.b32.xlu0 %v1378_v2, %s2146_s23 }
 0x72b   :  { %1467 = vrot.lane.b32.xlu1 %v1378_v2, %s2147_s24  ;;  %1462 = vrot.lane.b32.xlu0 %v1378_v2, %s2148_s29 }
 0x72f   :  { %1477 = vrot.lane.b32.xlu1 %v1378_v2, %s2130_s30  ;;  %1472 = vrot.lane.b32.xlu0 %v1378_v2, %s2149_s8  ;;  %s2156_s30 = smov 12  }
 0x733   :  { %1487 = vrot.lane.b32.xlu1 %v1378_v2, %s2150_s25  ;;  %1482 = vrot.lane.b32.xlu0 %v1378_v2, %s2151_s26 }
 0x737   :  { %1497 = vrot.lane.b32.xlu1 %v1378_v2, %s2127_s0  ;;  %1492 = vrot.lane.b32.xlu0 %v1378_v2, %s2152_s27 }
 0x73b   :  { %1507 = vrot.lane.b32.xlu1 %v1378_v2, %s2153_s28  ;;  %1502 = vrot.lane.b32.xlu0 %v1378_v2, %s2154_s10 }
 0x73f   :  { %1517 = vrot.lane.b32.xlu1 %v1378_v2, %s2128_s1  ;;  %1512 = vrot.lane.b32.xlu0 %v1378_v2, %s2155_s12 }
 0x743   :  { %1527 = vrot.lane.b32.xlu1 %v1378_v2, %s2124_s21  ;;  %1522 = vrot.lane.b32.xlu0 %v1378_v2, %s2156_s30 }
 0x747   :  { %1532 = vrot.lane.b32.xlu0 %v1378_v2, %s2157_s13 }
 0x77d   :  { %v1388_v48 = vpop.permute.xlu1 %1387  ;;  %v1383_v3 = vpop.permute.xlu0 %1382 }
 0x77e   :  { %1616 = vst.msk [vmem:[%s3301_s11 + $0x8] sm:$0xf] %vm1379_vm11, %v1388_v48  ;;  %1615 = vst.msk [vmem:[%s3301_s11 + $0x4] sm:$0xf] %vm1379_vm11, %v1383_v3 }
 0x77f   :  { %1648 = vst.msk [vmem:[%s3301_s11 + $0x84] sm:$0xf0] %vm1538_vm12, %v1388_v48  ;;  %1647 = vst.msk [vmem:[%s3301_s11 + $0x80] sm:$0xf0] %vm1538_vm12, %v1383_v3 }
 0x781   :  { %v1398_v4 = vpop.permute.xlu1 %1397  ;;  %v1393_v5 = vpop.permute.xlu0 %1392 }
 0x782   :  { %1618 = vst.msk [vmem:[%s3301_s11 + $0x10] sm:$0xf] %vm1379_vm11, %v1398_v4  ;;  %1617 = vst.msk [vmem:[%s3301_s11 + $0xc] sm:$0xf] %vm1379_vm11, %v1393_v5 }
 0x783   :  { %1650 = vst.msk [vmem:[%s3301_s11 + $0x8c] sm:$0xf0] %vm1538_vm12, %v1398_v4  ;;  %1649 = vst.msk [vmem:[%s3301_s11 + $0x88] sm:$0xf0] %vm1538_vm12, %v1393_v5 }
 0x785   :  { %v1408_v6 = vpop.permute.xlu1 %1407  ;;  %v1403_v7 = vpop.permute.xlu0 %1402 }
 0x786   :  { %1620 = vst.msk [vmem:[%s3301_s11 + $0x18] sm:$0xf] %vm1379_vm11, %v1408_v6  ;;  %1619 = vst.msk [vmem:[%s3301_s11 + $0x14] sm:$0xf] %vm1379_vm11, %v1403_v7 }
 0x787   :  { %1652 = vst.msk [vmem:[%s3301_s11 + $0x94] sm:$0xf0] %vm1538_vm12, %v1408_v6  ;;  %1651 = vst.msk [vmem:[%s3301_s11 + $0x90] sm:$0xf0] %vm1538_vm12, %v1403_v7 }
 0x789   :  { %v1418_v8 = vpop.permute.xlu1 %1417  ;;  %v1413_v9 = vpop.permute.xlu0 %1412 }
 0x78a   :  { %1622 = vst.msk [vmem:[%s3301_s11 + $0x20] sm:$0xf] %vm1379_vm11, %v1418_v8  ;;  %1621 = vst.msk [vmem:[%s3301_s11 + $0x1c] sm:$0xf] %vm1379_vm11, %v1413_v9 }
 0x78b   :  { %1654 = vst.msk [vmem:[%s3301_s11 + $0x9c] sm:$0xf0] %vm1538_vm12, %v1418_v8  ;;  %1653 = vst.msk [vmem:[%s3301_s11 + $0x98] sm:$0xf0] %vm1538_vm12, %v1413_v9 }
 0x78d   :  { %v1428_v10 = vpop.permute.xlu1 %1427  ;;  %v1423_v11 = vpop.permute.xlu0 %1422 }
 0x78e   :  { %1624 = vst.msk [vmem:[%s3301_s11 + $0x28] sm:$0xf] %vm1379_vm11, %v1428_v10  ;;  %1623 = vst.msk [vmem:[%s3301_s11 + $0x24] sm:$0xf] %vm1379_vm11, %v1423_v11 }
 0x78f   :  { %1656 = vst.msk [vmem:[%s3301_s11 + $0xa4] sm:$0xf0] %vm1538_vm12, %v1428_v10  ;;  %1655 = vst.msk [vmem:[%s3301_s11 + $0xa0] sm:$0xf0] %vm1538_vm12, %v1423_v11 }
 0x791   :  { %v1438_v12 = vpop.permute.xlu1 %1437  ;;  %v1433_v13 = vpop.permute.xlu0 %1432 }
 0x792   :  { %1626 = vst.msk [vmem:[%s3301_s11 + $0x30] sm:$0xf] %vm1379_vm11, %v1438_v12  ;;  %1625 = vst.msk [vmem:[%s3301_s11 + $0x2c] sm:$0xf] %vm1379_vm11, %v1433_v13 }
 0x793   :  { %1658 = vst.msk [vmem:[%s3301_s11 + $0xac] sm:$0xf0] %vm1538_vm12, %v1438_v12  ;;  %1657 = vst.msk [vmem:[%s3301_s11 + $0xa8] sm:$0xf0] %vm1538_vm12, %v1433_v13 }
 0x795   :  { %v1448_v14 = vpop.permute.xlu1 %1447  ;;  %v1443_v15 = vpop.permute.xlu0 %1442 }
 0x796   :  { %1628 = vst.msk [vmem:[%s3301_s11 + $0x38] sm:$0xf] %vm1379_vm11, %v1448_v14  ;;  %1627 = vst.msk [vmem:[%s3301_s11 + $0x34] sm:$0xf] %vm1379_vm11, %v1443_v15 }
 0x797   :  { %1660 = vst.msk [vmem:[%s3301_s11 + $0xb4] sm:$0xf0] %vm1538_vm12, %v1448_v14  ;;  %1659 = vst.msk [vmem:[%s3301_s11 + $0xb0] sm:$0xf0] %vm1538_vm12, %v1443_v15 }
 0x799   :  { %v1458_v16 = vpop.permute.xlu1 %1457  ;;  %v1453_v17 = vpop.permute.xlu0 %1452 }
 0x79a   :  { %1630 = vst.msk [vmem:[%s3301_s11 + $0x40] sm:$0xf] %vm1379_vm11, %v1458_v16  ;;  %1629 = vst.msk [vmem:[%s3301_s11 + $0x3c] sm:$0xf] %vm1379_vm11, %v1453_v17 }
 0x79b   :  { %1662 = vst.msk [vmem:[%s3301_s11 + $0xbc] sm:$0xf0] %vm1538_vm12, %v1458_v16  ;;  %1661 = vst.msk [vmem:[%s3301_s11 + $0xb8] sm:$0xf0] %vm1538_vm12, %v1453_v17 }
 0x79d   :  { %v1468_v18 = vpop.permute.xlu1 %1467  ;;  %v1463_v19 = vpop.permute.xlu0 %1462 }
 0x79e   :  { %1632 = vst.msk [vmem:[%s3301_s11 + $0x48] sm:$0xf] %vm1379_vm11, %v1468_v18  ;;  %1631 = vst.msk [vmem:[%s3301_s11 + $0x44] sm:$0xf] %vm1379_vm11, %v1463_v19 }
 0x79f   :  { %1664 = vst.msk [vmem:[%s3301_s11 + $0xc4] sm:$0xf0] %vm1538_vm12, %v1468_v18  ;;  %1663 = vst.msk [vmem:[%s3301_s11 + $0xc0] sm:$0xf0] %vm1538_vm12, %v1463_v19 }
 0x7a1   :  { %v1478_v20 = vpop.permute.xlu1 %1477  ;;  %v1473_v21 = vpop.permute.xlu0 %1472 }
 0x7a2   :  { %1634 = vst.msk [vmem:[%s3301_s11 + $0x50] sm:$0xf] %vm1379_vm11, %v1478_v20  ;;  %1633 = vst.msk [vmem:[%s3301_s11 + $0x4c] sm:$0xf] %vm1379_vm11, %v1473_v21 }
 0x7a3   :  { %1666 = vst.msk [vmem:[%s3301_s11 + $0xcc] sm:$0xf0] %vm1538_vm12, %v1478_v20  ;;  %1665 = vst.msk [vmem:[%s3301_s11 + $0xc8] sm:$0xf0] %vm1538_vm12, %v1473_v21 }
 0x7a5   :  { %v1488_v22 = vpop.permute.xlu1 %1487  ;;  %v1483_v23 = vpop.permute.xlu0 %1482 }
 0x7a6   :  { %1636 = vst.msk [vmem:[%s3301_s11 + $0x58] sm:$0xf] %vm1379_vm11, %v1488_v22  ;;  %1635 = vst.msk [vmem:[%s3301_s11 + $0x54] sm:$0xf] %vm1379_vm11, %v1483_v23 }
 0x7a7   :  { %1668 = vst.msk [vmem:[%s3301_s11 + $0xd4] sm:$0xf0] %vm1538_vm12, %v1488_v22  ;;  %1667 = vst.msk [vmem:[%s3301_s11 + $0xd0] sm:$0xf0] %vm1538_vm12, %v1483_v23 }
 0x7a9   :  { %v1498_v24 = vpop.permute.xlu1 %1497  ;;  %v1493_v26 = vpop.permute.xlu0 %1492 }
 0x7aa   :  { %1638 = vst.msk [vmem:[%s3301_s11 + $0x60] sm:$0xf] %vm1379_vm11, %v1498_v24  ;;  %1637 = vst.msk [vmem:[%s3301_s11 + $0x5c] sm:$0xf] %vm1379_vm11, %v1493_v26 }
 0x7ab   :  { %1670 = vst.msk [vmem:[%s3301_s11 + $0xdc] sm:$0xf0] %vm1538_vm12, %v1498_v24  ;;  %1669 = vst.msk [vmem:[%s3301_s11 + $0xd8] sm:$0xf0] %vm1538_vm12, %v1493_v26 }
 0x7ad   :  { %v1508_v27 = vpop.permute.xlu1 %1507  ;;  %v1503_v28 = vpop.permute.xlu0 %1502 }
 0x7ae   :  { %1640 = vst.msk [vmem:[%s3301_s11 + $0x68] sm:$0xf] %vm1379_vm11, %v1508_v27  ;;  %1639 = vst.msk [vmem:[%s3301_s11 + $0x64] sm:$0xf] %vm1379_vm11, %v1503_v28 }
 0x7af   :  { %1672 = vst.msk [vmem:[%s3301_s11 + $0xe4] sm:$0xf0] %vm1538_vm12, %v1508_v27  ;;  %1671 = vst.msk [vmem:[%s3301_s11 + $0xe0] sm:$0xf0] %vm1538_vm12, %v1503_v28 }
 0x7b1   :  { %v1518_v29 = vpop.permute.xlu1 %1517  ;;  %v1513_v30 = vpop.permute.xlu0 %1512 }
 0x7b2   :  { %1642 = vst.msk [vmem:[%s3301_s11 + $0x70] sm:$0xf] %vm1379_vm11, %v1518_v29  ;;  %1641 = vst.msk [vmem:[%s3301_s11 + $0x6c] sm:$0xf] %vm1379_vm11, %v1513_v30 }
 0x7b3   :  { %1674 = vst.msk [vmem:[%s3301_s11 + $0xec] sm:$0xf0] %vm1538_vm12, %v1518_v29  ;;  %1673 = vst.msk [vmem:[%s3301_s11 + $0xe8] sm:$0xf0] %vm1538_vm12, %v1513_v30 }
 0x7b5   :  { %v1528_v31 = vpop.permute.xlu1 %1527  ;;  %v1523_v32 = vpop.permute.xlu0 %1522 }
 0x7b6   :  { %1644 = vst.msk [vmem:[%s3301_s11 + $0x78] sm:$0xf] %vm1379_vm11, %v1528_v31  ;;  %1643 = vst.msk [vmem:[%s3301_s11 + $0x74] sm:$0xf] %vm1379_vm11, %v1523_v32 }
 0x7b7   :  { %1676 = vst.msk [vmem:[%s3301_s11 + $0xf4] sm:$0xf0] %vm1538_vm12, %v1528_v31  ;;  %1675 = vst.msk [vmem:[%s3301_s11 + $0xf0] sm:$0xf0] %vm1538_vm12, %v1523_v32 }
 0x7b9   :  { %v1533_v33 = vpop.permute.xlu0 %1532 }
 0x7ba   :  { %1645 = vst.msk [vmem:[%s3301_s11 + $0x7c] sm:$0xf] %vm1379_vm11, %v1533_v33 }
 0x7bb   :  { %1677 = vst.msk [vmem:[%s3301_s11 + $0xf8] sm:$0xf0] %vm1538_vm12, %v1533_v33 }
 0x7bc   :  { %1606 = vsyncpa [#allocation13], 1 }
 0x7bd   :  { %1607 = vsyncpa [#allocation15], 1 }

</bundles_post_ra>
